<compile_context>
chip_gen: v7x
topology: tpu7x:2x2x1
jax: 0.10.0
libtpu: 0.0.40
codegen_flags: <defaults>
</compile_context>

<pallas_src>
import math
import functools
import numpy as np

import jax
import jax.numpy as jnp
from jax.experimental import pallas as pl
from jax.experimental.pallas import tpu as pltpu

F32 = jnp.float32
BF16 = jnp.bfloat16
LN_EPS = 1e-5
NEG_BIG = -1e30


def _dotT(a, b):
    # a:(m,k), b:(n,k) -> (m,n), contracting last dims (avoids explicit transpose). f32 accum.
    return jax.lax.dot_general(a, b, (((1,), (1,)), ((), ())),
                               preferred_element_type=F32)


def _layernorm(x, g, b):
    mu = jnp.mean(x, axis=-1, keepdims=True)
    var = jnp.mean(jnp.square(x - mu), axis=-1, keepdims=True)
    return (x - mu) * jax.lax.rsqrt(var + LN_EPS) * g + b


def _rel_shift(pos_h, C, F):
    # Exact PyTorch rel-shift semantics: pad one zero column on the left, view as
    # (F+1, C), drop the first row, view back as (C, F).  Equivalent flat-slice form:
    #   z[i] = concat(xp[i, C-i:], xp[i+1, :C-i-1])   with xp = [0 | pos_h]   (C, F+1)
    # Built from static slices of a per-row two-row window (all shapes static).
    zcol = jnp.zeros((C, 1), F32)
    xp = jnp.concatenate([zcol, pos_h], axis=-1)                      # (C, F+1)
    if C > 1:
        xp_next = jnp.concatenate(
            [xp[1:, :], jnp.zeros((1, F + 1), F32)], axis=0)          # rows shifted up by 1
    else:
        xp_next = jnp.zeros((1, F + 1), F32)
    w = jnp.concatenate([xp, xp_next], axis=-1)                       # (C, 2F+2)
    rows = [w[i:i + 1, C - i: C - i + F] for i in range(C)]           # static slices
    return jnp.concatenate(rows, axis=0)                              # (C, F)


# ----------------------------------------------------------------------------
# Fused kernel: LN1 + kv/q proj + per-head scores + rel-shift + softmax + AV +
#               out-proj + ReLU + GRU gate1 + LN2 + MLP + GRU gate2
# ----------------------------------------------------------------------------
def _gtrxl_kernel(inp_ref, full_ref, addmask_ref, r_ref,
                  ln1g_ref, ln1b_ref,
                  wk_ref, bk_ref, wv_ref, bv_ref, wq_ref, bq_ref,
                  u_ref, v_ref,
                  wproj_ref, bproj_ref,
                  g1w_ref, g1bg_ref,
                  ln2g_ref, ln2b_ref,
                  w1_ref, b1_ref, w2_ref, b2_ref,
                  g2w_ref, g2bg_ref,
                  out_ref,
                  *, head_num, head_dim, scale):
    C, D = inp_ref.shape
    F = full_ref.shape[0]

    x = inp_ref[...]                                   # (C, D) f32 (also GRU residual input)
    x_full = full_ref[...]                             # (F, D) f32

    # --- LayerNorm1 (f32) + projections (bf16 MXU, f32 accumulation) ---------
    x1 = _layernorm(x_full, ln1g_ref[...], ln1b_ref[...])
    x1b = x1.astype(BF16)
    xb = x.astype(BF16)

    key = jnp.dot(x1b, wk_ref[...], preferred_element_type=F32) + bk_ref[...]      # (F, HH)
    value = jnp.dot(x1b, wv_ref[...], preferred_element_type=F32) + bv_ref[...]    # (F, HH)
    q = jnp.dot(xb, wq_ref[...], preferred_element_type=F32) + bq_ref[...]         # (C, HH)

    keyb = key.astype(BF16)
    valb = value.astype(BF16)
    r_all = r_ref[...]                                  # (F, HH) bf16  (hoisted pos proj)
    addmask = addmask_ref[...]                          # (C, F) f32, 0 / -1e30
    u_all = u_ref[...]                                  # (H, hd) f32
    v_all = v_ref[...]

    # --- per-head scores, exact relative shift, softmax, attn @ V ------------
    # TODO(synk): batch the H head contractions into one head-major dot_general
    #             (needs an in-kernel (C,H,hd)->(H,C,hd) relayout / einshape).
    av_parts = []
    for h in range(head_num):
        sl = slice(h * head_dim, (h + 1) * head_dim)
        qh = q[:, sl]                                   # (C, hd) f32
        uh = u_all[h:h + 1, :]                          # (1, hd)
        vh = v_all[h:h + 1, :]
        content = _dotT((qh + uh).astype(BF16), keyb[:, sl])          # (C, F) f32
        posat = _dotT((qh + vh).astype(BF16), r_all[:, sl])           # (C, F) f32
        pshift = _rel_shift(posat, C, F)                              # (C, F) f32

        s = (content + pshift) * scale + addmask
        m = jnp.max(s, axis=-1, keepdims=True)
        e = jnp.exp(s - m)
        p = e * pl.reciprocal(jnp.sum(e, axis=-1, keepdims=True), approx=True)
        av_parts.append(jnp.dot(p.astype(BF16), valb[:, sl],
                                preferred_element_type=F32))          # (C, hd)
    attn_vec = jnp.concatenate(av_parts, axis=-1)                     # (C, HH), lane-dense

    # --- output projection + activation ---------------------------------------
    a1 = jnp.dot(attn_vec.astype(BF16), wproj_ref[...],
                 preferred_element_type=F32) + bproj_ref[...]
    a1 = jnp.maximum(a1, 0.0)                                          # ReLU; dropout = id

    # --- GRU gating unit (DI-engine: Wr,Ur,Wz,Uz,Wg,Ug stacked) ---------------
    def gru_gate(gw_ref, bg, xg, yg):
        xgb = xg.astype(BF16)
        ygb = yg.astype(BF16)
        r_ = jax.nn.sigmoid(jnp.dot(ygb, gw_ref[0], preferred_element_type=F32) +
                            jnp.dot(xgb, gw_ref[1], preferred_element_type=F32))
        z_ = jax.nn.sigmoid(jnp.dot(ygb, gw_ref[2], preferred_element_type=F32) +
                            jnp.dot(xgb, gw_ref[3], preferred_element_type=F32) - bg)
        h_ = jnp.tanh(jnp.dot(ygb, gw_ref[4], preferred_element_type=F32) +
                      jnp.dot((r_ * xg).astype(BF16), gw_ref[5],
                              preferred_element_type=F32))
        return (1.0 - z_) * xg + z_ * h_

    o1 = gru_gate(g1w_ref, g1bg_ref[...], x, a1)

    # --- LayerNorm2 + MLP (two fc_blocks with ReLU) ---------------------------
    x2 = _layernorm(o1, ln2g_ref[...], ln2b_ref[...])
    h1 = jnp.maximum(jnp.dot(x2.astype(BF16), w1_ref[...],
                             preferred_element_type=F32) + b1_ref[...], 0.0)
    m2 = jnp.maximum(jnp.dot(h1.astype(BF16), w2_ref[...],
                             preferred_element_type=F32) + b2_ref[...], 0.0)

    out_ref[...] = gru_gate(g2w_ref, g2bg_ref[...], o1, m2)


# ----------------------------------------------------------------------------
# Wrapper
# ----------------------------------------------------------------------------
def _const_spec(a):
    n = a.ndim
    return pl.BlockSpec(a.shape, lambda b, n=n: (0,) * n)


def _batch_spec(*tail):
    k = len(tail)
    return pl.BlockSpec((None,) + tuple(tail), lambda b, k=k: (b,) + (0,) * k)


def gtrxl_layer_forward(params, inputs, pos_embedding, u, v, memory, mask=None):
    cur_seq, bs, D = inputs.shape
    prev_seq = memory.shape[0]
    full_seq = cur_seq + prev_seq
    head_num, head_dim = u.shape
    HH = head_num * head_dim
    scale = 1.0 / math.sqrt(head_dim)

    full_input = jnp.concatenate([memory, inputs], axis=0)            # (full, bs, D)
    inp_b = jnp.transpose(inputs, (1, 0, 2)).astype(F32)              # (bs, cur, D)
    full_b = jnp.transpose(full_input, (1, 0, 2)).astype(F32)         # (bs, full, D)
    pos = pos_embedding.reshape(full_seq, D).astype(F32)              # (full, D)

    # Hoisted, batch-invariant position projection (computed once, outside the grid).
    r = (pos @ params['w_pos'] + params['b_pos'][0]).astype(BF16)     # (full, HH)

    # Additive mask: 0 where allowed, -1e30 where masked (cheaper + NaN-safe vs -inf fill).
    if mask is None:
        add_mask = jnp.zeros((cur_seq, full_seq), F32)
    else:
        add_mask = jnp.where(mask.reshape(cur_seq, full_seq), NEG_BIG, 0.0).astype(F32)

    # Split the fused kv projection into k / v weights (mathematically identical).
    w_k = params['w_kv'][:, :HH].astype(BF16)
    w_v = params['w_kv'][:, HH:].astype(BF16)
    b_k = params['b_kv'][:, :HH]
    b_v = params['b_kv'][:, HH:]

    const_args = [
        add_mask, r,
        params['ln1_g'], params['ln1_b'],
        w_k, b_k, w_v, b_v,
        params['w_q'].astype(BF16), params['b_q'],
        u.astype(F32), v.astype(F32),
        params['w_proj'].astype(BF16), params['b_proj'],
        params['gate1_w'].astype(BF16), params['gate1_bg'],
        params['ln2_g'], params['ln2_b'],
        params['mlp_w1'].astype(BF16), params['mlp_b1'],
        params['mlp_w2'].astype(BF16), params['mlp_b2'],
        params['gate2_w'].astype(BF16), params['gate2_bg'],
    ]

    kernel = functools.partial(_gtrxl_kernel, head_num=head_num,
                               head_dim=head_dim, scale=scale)

    out_b = pl.pallas_call(
        kernel,
        grid=(bs,),
        in_specs=[_batch_spec(cur_seq, D), _batch_spec(full_seq, D)]
                 + [_const_spec(a) for a in const_args],
        out_specs=_batch_spec(cur_seq, D),
        out_shape=jax.ShapeDtypeStruct((bs, cur_seq, D), F32),
        compiler_params=pltpu.CompilerParams(
            dimension_semantics=("parallel",),          # independent batches -> megacore on v7x
            vmem_limit_bytes=48 * 1024 * 1024),
    )(inp_b, full_b, *const_args)

    return jnp.transpose(out_b, (1, 0, 2))              # (cur_seq, bs, D)


# ----------------------------------------------------------------------------
# Deterministic parameter init (shapes from the module __init__; synthetic values)
# ----------------------------------------------------------------------------
def init_params(key, D, head_dim, head_num, hidden_dim, gru_bias=2.0):
    HH = head_dim * head_num
    keys = iter(jax.random.split(key, 24))

    def w(shape, scale=0.1):
        return jax.random.normal(next(keys), shape, F32) * scale

    return dict(
        ln1_g=jnp.ones((1, D), F32), ln1_b=jnp.zeros((1, D), F32),
        ln2_g=jnp.ones((1, D), F32), ln2_b=jnp.zeros((1, D), F32),
        w_kv=w((D, 2 * HH)), b_kv=w((1, 2 * HH), 0.05),
        w_q=w((D, HH)), b_q=w((1, HH), 0.05),
        w_pos=w((D, HH)), b_pos=w((1, HH), 0.05),
        w_proj=w((HH, D)), b_proj=w((1, D), 0.05),
        mlp_w1=w((D, hidden_dim)), mlp_b1=w((1, hidden_dim), 0.05),
        mlp_w2=w((hidden_dim, D)), mlp_b2=w((1, D), 0.05),
        gate1_w=w((6, D, D)), gate1_bg=jnp.full((1, D), gru_bias, F32),
        gate2_w=w((6, D, D)), gate2_bg=jnp.full((1, D), gru_bias, F32),
    )


# ----------------------------------------------------------------------------
# Pure-JAX reference mirroring the PyTorch forward (for correctness check)
# ----------------------------------------------------------------------------
def reference_forward(params, inputs, pos_embedding, u, v, memory, mask):
    cur_seq, bs, D = inputs.shape
    prev_seq = memory.shape[0]
    full_seq = cur_seq + prev_seq
    H, hd = u.shape
    HH = H * hd

    def layernorm(x, g, b):
        mu = jnp.mean(x, -1, keepdims=True)
        var = jnp.mean((x - mu) ** 2, -1, keepdims=True)
        return (x - mu) / jnp.sqrt(var + LN_EPS) * g.reshape(-1) + b.reshape(-1)

    full_input = jnp.concatenate([memory, inputs], axis=0)
    x1 = layernorm(full_input, params['ln1_g'], params['ln1_b'])
    kv = x1 @ params['w_kv'] + params['b_kv'][0]
    key, value = kv[..., :HH], kv[..., HH:]
    q = inputs @ params['w_q'] + params['b_q'][0]
    r = pos_embedding.reshape(full_seq, D) @ params['w_pos'] + params['b_pos'][0]

    key = key.reshape(full_seq, bs, H, hd)
    query = q.reshape(cur_seq, bs, H, hd)
    value = value.reshape(full_seq, bs, H, hd)
    r = r.reshape(full_seq, H, hd)

    content = jnp.einsum('ibhd,jbhd->bhij', query + u, key)
    posattn = jnp.einsum('ibhd,jhd->bhij', query + v, r)
    xp = jnp.pad(posattn, ((0, 0), (0, 0), (0, 0), (1, 0)))
    xp = xp.reshape(bs, H, full_seq + 1, cur_seq)
    posattn = xp[:, :, 1:, :].reshape(bs, H, cur_seq, full_seq)

    attn = (content + posattn) * (1.0 / math.sqrt(hd))
    if mask is not None:
        m = mask.reshape(cur_seq, full_seq)[None, None]
        attn = jnp.where(m, -jnp.inf, attn)
    attn = jax.nn.softmax(attn, axis=-1)
    attn_vec = jnp.einsum('bhij,jbhd->ibhd', attn, value).reshape(cur_seq, bs, HH)
    a1 = jnp.maximum(attn_vec @ params['w_proj'] + params['b_proj'][0], 0.0)

    def gru(gw, bg, x, y):
        r_ = jax.nn.sigmoid(y @ gw[0] + x @ gw[1])
        z_ = jax.nn.sigmoid(y @ gw[2] + x @ gw[3] - bg[0])
        h_ = jnp.tanh(y @ gw[4] + (r_ * x) @ gw[5])
        return (1.0 - z_) * x + z_ * h_

    o1 = gru(params['gate1_w'], params['gate1_bg'], inputs, a1)
    x2 = layernorm(o1, params['ln2_g'], params['ln2_b'])
    h1 = jnp.maximum(x2 @ params['mlp_w1'] + params['mlp_b1'][0], 0.0)
    m2 = jnp.maximum(h1 @ params['mlp_w2'] + params['mlp_b2'][0], 0.0)
    return gru(params['gate2_w'], params['gate2_bg'], o1, m2)


if __name__ == "__main__":
    cur_seq, prev_seq, bs = 8, 8, 2
    D, head_dim, head_num, hidden_dim = 32, 8, 4, 32
    full_seq = cur_seq + prev_seq

    key = jax.random.PRNGKey(0)
    k1, k2, k3, k4, k5, kp = jax.random.split(key, 6)
    inputs = jax.random.normal(k1, (cur_seq, bs, D), F32)
    memory = jax.random.normal(k2, (prev_seq, bs, D), F32)
    pos_embedding = jax.random.normal(k3, (full_seq, 1, D), F32)
    u = jax.random.normal(k4, (head_num, head_dim), F32) * 0.1
    v = jax.random.normal(k5, (head_num, head_dim), F32) * 0.1
    # GTrXL-style causal attention mask: True => masked (future positions)
    mask = jnp.asarray(np.triu(np.ones((cur_seq, full_seq)), k=1 + prev_seq) > 0)[..., None]

    params = init_params(kp, D, head_dim, head_num, hidden_dim)

    out = gtrxl_layer_forward(params, inputs, pos_embedding, u, v, memory, mask)
    out = jax.block_until_ready(out)

    ref = reference_forward(params, inputs, pos_embedding, u, v, memory, mask)
    # Tolerances account for bf16 MXU operands (f32 accumulation) and approx reciprocal.
    np.testing.assert_allclose(np.asarray(out), np.asarray(ref), rtol=3e-2, atol=3e-2)
    print("KERNEL_OK")
</pallas_src>

<mosaic_0001>
module attributes {stable_mosaic.version = 11 : i64} {
  func.func @_gtrxl_kernel(%arg0: i32, %arg1: memref<1x8x32xf32, #tpu.memory_space<vmem>>, %arg2: memref<1x16x32xf32, #tpu.memory_space<vmem>>, %arg3: memref<8x16xf32, #tpu.memory_space<vmem>>, %arg4: memref<16x32xbf16, #tpu.memory_space<vmem>>, %arg5: memref<1x32xf32, #tpu.memory_space<vmem>>, %arg6: memref<1x32xf32, #tpu.memory_space<vmem>>, %arg7: memref<32x32xbf16, #tpu.memory_space<vmem>>, %arg8: memref<1x32xf32, #tpu.memory_space<vmem>>, %arg9: memref<32x32xbf16, #tpu.memory_space<vmem>>, %arg10: memref<1x32xf32, #tpu.memory_space<vmem>>, %arg11: memref<32x32xbf16, #tpu.memory_space<vmem>>, %arg12: memref<1x32xf32, #tpu.memory_space<vmem>>, %arg13: memref<4x8xf32, #tpu.memory_space<vmem>>, %arg14: memref<4x8xf32, #tpu.memory_space<vmem>>, %arg15: memref<32x32xbf16, #tpu.memory_space<vmem>>, %arg16: memref<1x32xf32, #tpu.memory_space<vmem>>, %arg17: memref<6x32x32xbf16, #tpu.memory_space<vmem>>, %arg18: memref<1x32xf32, #tpu.memory_space<vmem>>, %arg19: memref<1x32xf32, #tpu.memory_space<vmem>>, %arg20: memref<1x32xf32, #tpu.memory_space<vmem>>, %arg21: memref<32x32xbf16, #tpu.memory_space<vmem>>, %arg22: memref<1x32xf32, #tpu.memory_space<vmem>>, %arg23: memref<32x32xbf16, #tpu.memory_space<vmem>>, %arg24: memref<1x32xf32, #tpu.memory_space<vmem>>, %arg25: memref<6x32x32xbf16, #tpu.memory_space<vmem>>, %arg26: memref<1x32xf32, #tpu.memory_space<vmem>>, %arg27: memref<1x8x32xf32, #tpu.memory_space<vmem>>) attributes {dimension_semantics = [#tpu.dimension_semantics<parallel>], iteration_bounds = array<i64: 2>, scalar_prefetch = 0 : i64, scratch_operands = 0 : i64, tpu.core_type = #tpu.core_type<tc>, window_params = [{transform_indices = @transform_0, window_bounds = array<i64: 1, 8, 32>}, {transform_indices = @transform_1, window_bounds = array<i64: 1, 16, 32>}, {pipeline_mode = #tpu.pipeline_mode<synchronous>, transform_indices = @transform_2, window_bounds = array<i64: 8, 16>}, {pipeline_mode = #tpu.pipeline_mode<synchronous>, transform_indices = @transform_3, window_bounds = array<i64: 16, 32>}, {pipeline_mode = #tpu.pipeline_mode<synchronous>, transform_indices = @transform_4, window_bounds = array<i64: 1, 32>}, {pipeline_mode = #tpu.pipeline_mode<synchronous>, transform_indices = @transform_5, window_bounds = array<i64: 1, 32>}, {pipeline_mode = #tpu.pipeline_mode<synchronous>, transform_indices = @transform_6, window_bounds = array<i64: 32, 32>}, {pipeline_mode = #tpu.pipeline_mode<synchronous>, transform_indices = @transform_7, window_bounds = array<i64: 1, 32>}, {pipeline_mode = #tpu.pipeline_mode<synchronous>, transform_indices = @transform_8, window_bounds = array<i64: 32, 32>}, {pipeline_mode = #tpu.pipeline_mode<synchronous>, transform_indices = @transform_9, window_bounds = array<i64: 1, 32>}, {pipeline_mode = #tpu.pipeline_mode<synchronous>, transform_indices = @transform_10, window_bounds = array<i64: 32, 32>}, {pipeline_mode = #tpu.pipeline_mode<synchronous>, transform_indices = @transform_11, window_bounds = array<i64: 1, 32>}, {pipeline_mode = #tpu.pipeline_mode<synchronous>, transform_indices = @transform_12, window_bounds = array<i64: 4, 8>}, {pipeline_mode = #tpu.pipeline_mode<synchronous>, transform_indices = @transform_13, window_bounds = array<i64: 4, 8>}, {pipeline_mode = #tpu.pipeline_mode<synchronous>, transform_indices = @transform_14, window_bounds = array<i64: 32, 32>}, {pipeline_mode = #tpu.pipeline_mode<synchronous>, transform_indices = @transform_15, window_bounds = array<i64: 1, 32>}, {pipeline_mode = #tpu.pipeline_mode<synchronous>, transform_indices = @transform_16, window_bounds = array<i64: 6, 32, 32>}, {pipeline_mode = #tpu.pipeline_mode<synchronous>, transform_indices = @transform_17, window_bounds = array<i64: 1, 32>}, {pipeline_mode = #tpu.pipeline_mode<synchronous>, transform_indices = @transform_18, window_bounds = array<i64: 1, 32>}, {pipeline_mode = #tpu.pipeline_mode<synchronous>, transform_indices = @transform_19, window_bounds = array<i64: 1, 32>}, {pipeline_mode = #tpu.pipeline_mode<synchronous>, transform_indices = @transform_20, window_bounds = array<i64: 32, 32>}, {pipeline_mode = #tpu.pipeline_mode<synchronous>, transform_indices = @transform_21, window_bounds = array<i64: 1, 32>}, {pipeline_mode = #tpu.pipeline_mode<synchronous>, transform_indices = @transform_22, window_bounds = array<i64: 32, 32>}, {pipeline_mode = #tpu.pipeline_mode<synchronous>, transform_indices = @transform_23, window_bounds = array<i64: 1, 32>}, {pipeline_mode = #tpu.pipeline_mode<synchronous>, transform_indices = @transform_24, window_bounds = array<i64: 6, 32, 32>}, {pipeline_mode = #tpu.pipeline_mode<synchronous>, transform_indices = @transform_25, window_bounds = array<i64: 1, 32>}, {transform_indices = @transform_26, window_bounds = array<i64: 1, 8, 32>}]} {
    %c0 = arith.constant 0 : index
    %c0_0 = arith.constant 0 : index
    %c0_1 = arith.constant 0 : index
    %0 = vector.load %arg1[%c0, %c0_0, %c0_1] : memref<1x8x32xf32, #tpu.memory_space<vmem>>, vector<1x8x32xf32>
    %1 = vector.shape_cast %0 : vector<1x8x32xf32> to vector<8x32xf32>
    %c0_2 = arith.constant 0 : index
    %c0_3 = arith.constant 0 : index
    %c0_4 = arith.constant 0 : index
    %2 = vector.load %arg2[%c0_2, %c0_3, %c0_4] : memref<1x16x32xf32, #tpu.memory_space<vmem>>, vector<1x16x32xf32>
    %3 = vector.shape_cast %2 : vector<1x16x32xf32> to vector<16x32xf32>
    %c0_5 = arith.constant 0 : index
    %c0_6 = arith.constant 0 : index
    %4 = vector.load %arg5[%c0_5, %c0_6] : memref<1x32xf32, #tpu.memory_space<vmem>>, vector<1x32xf32>
    %c0_7 = arith.constant 0 : index
    %c0_8 = arith.constant 0 : index
    %5 = vector.load %arg6[%c0_7, %c0_8] : memref<1x32xf32, #tpu.memory_space<vmem>>, vector<1x32xf32>
    %cst = arith.constant dense<0.000000e+00> : vector<16xf32>
    %6 = vector.multi_reduction <add>, %3, %cst [1] : vector<16x32xf32> to vector<16xf32>
    %7 = vector.shape_cast %6 : vector<16xf32> to vector<16x1xf32>
    %cst_9 = arith.constant 3.200000e+01 : f32
    %8 = vector.broadcast %cst_9 : f32 to vector<16x1xf32>
    %9 = arith.divf %7, %8 : vector<16x1xf32>
    %10 = vector.broadcast %9 : vector<16x1xf32> to vector<16x32xf32>
    %11 = arith.subf %3, %10 : vector<16x32xf32>
    %12 = arith.mulf %11, %11 : vector<16x32xf32>
    %cst_10 = arith.constant dense<0.000000e+00> : vector<16xf32>
    %13 = vector.multi_reduction <add>, %12, %cst_10 [1] : vector<16x32xf32> to vector<16xf32>
    %14 = vector.shape_cast %13 : vector<16xf32> to vector<16x1xf32>
    %cst_11 = arith.constant 3.200000e+01 : f32
    %15 = vector.broadcast %cst_11 : f32 to vector<16x1xf32>
    %16 = arith.divf %14, %15 : vector<16x1xf32>
    %17 = vector.broadcast %9 : vector<16x1xf32> to vector<16x32xf32>
    %18 = arith.subf %3, %17 : vector<16x32xf32>
    %cst_12 = arith.constant 9.99999974E-6 : f32
    %19 = vector.broadcast %cst_12 : f32 to vector<16x1xf32>
    %20 = arith.addf %16, %19 : vector<16x1xf32>
    %21 = math.rsqrt %20 : vector<16x1xf32>
    %22 = vector.broadcast %21 : vector<16x1xf32> to vector<16x32xf32>
    %23 = arith.mulf %18, %22 : vector<16x32xf32>
    %24 = vector.broadcast %4 : vector<1x32xf32> to vector<16x32xf32>
    %25 = arith.mulf %23, %24 : vector<16x32xf32>
    %26 = vector.broadcast %5 : vector<1x32xf32> to vector<16x32xf32>
    %27 = arith.addf %25, %26 : vector<16x32xf32>
    %28 = arith.truncf %27 : vector<16x32xf32> to vector<16x32xbf16>
    %29 = arith.truncf %1 : vector<8x32xf32> to vector<8x32xbf16>
    %c0_13 = arith.constant 0 : index
    %c0_14 = arith.constant 0 : index
    %30 = vector.load %arg7[%c0_13, %c0_14] : memref<32x32xbf16, #tpu.memory_space<vmem>>, vector<32x32xbf16>
    %cst_15 = arith.constant dense<0.000000e+00> : vector<16x32xf32>
    %31 = tpu.matmul %28, %30, %cst_15 {dimension_numbers = #tpu.dot_dimension_numbers<[1], [0], [0], [1], [0, 0, 1, 1], [], []>} : vector<16x32xbf16>, vector<32x32xbf16>, vector<16x32xf32> -> vector<16x32xf32>
    %c0_16 = arith.constant 0 : index
    %c0_17 = arith.constant 0 : index
    %32 = vector.load %arg8[%c0_16, %c0_17] : memref<1x32xf32, #tpu.memory_space<vmem>>, vector<1x32xf32>
    %33 = vector.broadcast %32 : vector<1x32xf32> to vector<16x32xf32>
    %34 = arith.addf %31, %33 : vector<16x32xf32>
    %c0_18 = arith.constant 0 : index
    %c0_19 = arith.constant 0 : index
    %35 = vector.load %arg9[%c0_18, %c0_19] : memref<32x32xbf16, #tpu.memory_space<vmem>>, vector<32x32xbf16>
    %cst_20 = arith.constant dense<0.000000e+00> : vector<16x32xf32>
    %36 = tpu.matmul %28, %35, %cst_20 {dimension_numbers = #tpu.dot_dimension_numbers<[1], [0], [0], [1], [0, 0, 1, 1], [], []>} : vector<16x32xbf16>, vector<32x32xbf16>, vector<16x32xf32> -> vector<16x32xf32>
    %c0_21 = arith.constant 0 : index
    %c0_22 = arith.constant 0 : index
    %37 = vector.load %arg10[%c0_21, %c0_22] : memref<1x32xf32, #tpu.memory_space<vmem>>, vector<1x32xf32>
    %38 = vector.broadcast %37 : vector<1x32xf32> to vector<16x32xf32>
    %39 = arith.addf %36, %38 : vector<16x32xf32>
    %c0_23 = arith.constant 0 : index
    %c0_24 = arith.constant 0 : index
    %40 = vector.load %arg11[%c0_23, %c0_24] : memref<32x32xbf16, #tpu.memory_space<vmem>>, vector<32x32xbf16>
    %cst_25 = arith.constant dense<0.000000e+00> : vector<8x32xf32>
    %41 = tpu.matmul %29, %40, %cst_25 {dimension_numbers = #tpu.dot_dimension_numbers<[1], [0], [0], [1], [0, 0, 1, 1], [], []>} : vector<8x32xbf16>, vector<32x32xbf16>, vector<8x32xf32> -> vector<8x32xf32>
    %c0_26 = arith.constant 0 : index
    %c0_27 = arith.constant 0 : index
    %42 = vector.load %arg12[%c0_26, %c0_27] : memref<1x32xf32, #tpu.memory_space<vmem>>, vector<1x32xf32>
    %43 = vector.broadcast %42 : vector<1x32xf32> to vector<8x32xf32>
    %44 = arith.addf %41, %43 : vector<8x32xf32>
    %45 = arith.truncf %34 : vector<16x32xf32> to vector<16x32xbf16>
    %46 = arith.truncf %39 : vector<16x32xf32> to vector<16x32xbf16>
    %c0_28 = arith.constant 0 : index
    %c0_29 = arith.constant 0 : index
    %47 = vector.load %arg4[%c0_28, %c0_29] : memref<16x32xbf16, #tpu.memory_space<vmem>>, vector<16x32xbf16>
    %c0_30 = arith.constant 0 : index
    %c0_31 = arith.constant 0 : index
    %48 = vector.load %arg3[%c0_30, %c0_31] : memref<8x16xf32, #tpu.memory_space<vmem>>, vector<8x16xf32>
    %c0_32 = arith.constant 0 : index
    %c0_33 = arith.constant 0 : index
    %49 = vector.load %arg13[%c0_32, %c0_33] : memref<4x8xf32, #tpu.memory_space<vmem>>, vector<4x8xf32>
    %c0_34 = arith.constant 0 : index
    %c0_35 = arith.constant 0 : index
    %50 = vector.load %arg14[%c0_34, %c0_35] : memref<4x8xf32, #tpu.memory_space<vmem>>, vector<4x8xf32>
    %51 = vector.extract_strided_slice %44 {offsets = [0, 0], sizes = [8, 8], strides = [1, 1]} : vector<8x32xf32> to vector<8x8xf32>
    %52 = vector.extract_strided_slice %49 {offsets = [0, 0], sizes = [1, 8], strides = [1, 1]} : vector<4x8xf32> to vector<1x8xf32>
    %53 = vector.extract_strided_slice %50 {offsets = [0, 0], sizes = [1, 8], strides = [1, 1]} : vector<4x8xf32> to vector<1x8xf32>
    %54 = vector.broadcast %52 : vector<1x8xf32> to vector<8x8xf32>
    %55 = arith.addf %51, %54 : vector<8x8xf32>
    %56 = arith.truncf %55 : vector<8x8xf32> to vector<8x8xbf16>
    %57 = vector.extract_strided_slice %45 {offsets = [0, 0], sizes = [16, 8], strides = [1, 1]} : vector<16x32xbf16> to vector<16x8xbf16>
    %cst_36 = arith.constant dense<0.000000e+00> : vector<8x16xf32>
    %58 = tpu.matmul %56, %57, %cst_36 {dimension_numbers = #tpu.dot_dimension_numbers<[1], [1], [0], [0], [0, 0, 1, 0], [], []>} : vector<8x8xbf16>, vector<16x8xbf16>, vector<8x16xf32> -> vector<8x16xf32>
    %59 = vector.broadcast %53 : vector<1x8xf32> to vector<8x8xf32>
    %60 = arith.addf %51, %59 : vector<8x8xf32>
    %61 = arith.truncf %60 : vector<8x8xf32> to vector<8x8xbf16>
    %62 = vector.extract_strided_slice %47 {offsets = [0, 0], sizes = [16, 8], strides = [1, 1]} : vector<16x32xbf16> to vector<16x8xbf16>
    %cst_37 = arith.constant dense<0.000000e+00> : vector<8x16xf32>
    %63 = tpu.matmul %61, %62, %cst_37 {dimension_numbers = #tpu.dot_dimension_numbers<[1], [1], [0], [0], [0, 0, 1, 0], [], []>} : vector<8x8xbf16>, vector<16x8xbf16>, vector<8x16xf32> -> vector<8x16xf32>
    %cst_38 = arith.constant 0.000000e+00 : f32
    %64 = vector.broadcast %cst_38 : f32 to vector<8x1xf32>
    %65 = tpu.concatenate %64, %63 in 1 : vector<8x1xf32>, vector<8x16xf32> -> vector<8x17xf32>
    %66 = vector.extract_strided_slice %65 {offsets = [1, 0], sizes = [7, 17], strides = [1, 1]} : vector<8x17xf32> to vector<7x17xf32>
    %cst_39 = arith.constant 0.000000e+00 : f32
    %67 = vector.broadcast %cst_39 : f32 to vector<1x17xf32>
    %68 = tpu.concatenate %66, %67 in 0 : vector<7x17xf32>, vector<1x17xf32> -> vector<8x17xf32>
    %69 = tpu.concatenate %65, %68 in 1 : vector<8x17xf32>, vector<8x17xf32> -> vector<8x34xf32>
    %70 = vector.extract_strided_slice %69 {offsets = [0, 8], sizes = [1, 16], strides = [1, 1]} : vector<8x34xf32> to vector<1x16xf32>
    %71 = vector.extract_strided_slice %69 {offsets = [1, 7], sizes = [1, 16], strides = [1, 1]} : vector<8x34xf32> to vector<1x16xf32>
    %72 = vector.extract_strided_slice %69 {offsets = [2, 6], sizes = [1, 16], strides = [1, 1]} : vector<8x34xf32> to vector<1x16xf32>
    %73 = vector.extract_strided_slice %69 {offsets = [3, 5], sizes = [1, 16], strides = [1, 1]} : vector<8x34xf32> to vector<1x16xf32>
    %74 = vector.extract_strided_slice %69 {offsets = [4, 4], sizes = [1, 16], strides = [1, 1]} : vector<8x34xf32> to vector<1x16xf32>
    %75 = vector.extract_strided_slice %69 {offsets = [5, 3], sizes = [1, 16], strides = [1, 1]} : vector<8x34xf32> to vector<1x16xf32>
    %76 = vector.extract_strided_slice %69 {offsets = [6, 2], sizes = [1, 16], strides = [1, 1]} : vector<8x34xf32> to vector<1x16xf32>
    %77 = vector.extract_strided_slice %69 {offsets = [7, 1], sizes = [1, 16], strides = [1, 1]} : vector<8x34xf32> to vector<1x16xf32>
    %78 = tpu.concatenate %70, %71, %72, %73, %74, %75, %76, %77 in 0 : vector<1x16xf32>, vector<1x16xf32>, vector<1x16xf32>, vector<1x16xf32>, vector<1x16xf32>, vector<1x16xf32>, vector<1x16xf32>, vector<1x16xf32> -> vector<8x16xf32>
    %79 = arith.addf %58, %78 : vector<8x16xf32>
    %cst_40 = arith.constant 0.353553385 : f32
    %80 = vector.broadcast %cst_40 : f32 to vector<8x16xf32>
    %81 = arith.mulf %79, %80 : vector<8x16xf32>
    %82 = arith.addf %81, %48 : vector<8x16xf32>
    %cst_41 = arith.constant dense<0xFF800000> : vector<8xf32>
    %83 = vector.multi_reduction <maximumf>, %82, %cst_41 [1] : vector<8x16xf32> to vector<8xf32>
    %84 = vector.shape_cast %83 : vector<8xf32> to vector<8x1xf32>
    %85 = vector.broadcast %84 : vector<8x1xf32> to vector<8x16xf32>
    %86 = arith.subf %82, %85 : vector<8x16xf32>
    %87 = math.exp %86 : vector<8x16xf32>
    %cst_42 = arith.constant dense<0.000000e+00> : vector<8xf32>
    %88 = vector.multi_reduction <add>, %87, %cst_42 [1] : vector<8x16xf32> to vector<8xf32>
    %89 = vector.shape_cast %88 : vector<8xf32> to vector<8x1xf32>
    %90 = tpu.reciprocal %89 {approx = true} : vector<8x1xf32> -> vector<8x1xf32>
    %91 = vector.broadcast %90 : vector<8x1xf32> to vector<8x16xf32>
    %92 = arith.mulf %87, %91 : vector<8x16xf32>
    %93 = arith.truncf %92 : vector<8x16xf32> to vector<8x16xbf16>
    %94 = vector.extract_strided_slice %46 {offsets = [0, 0], sizes = [16, 8], strides = [1, 1]} : vector<16x32xbf16> to vector<16x8xbf16>
    %cst_43 = arith.constant dense<0.000000e+00> : vector<8x8xf32>
    %95 = tpu.matmul %93, %94, %cst_43 {dimension_numbers = #tpu.dot_dimension_numbers<[1], [0], [0], [1], [0, 0, 1, 1], [], []>} : vector<8x16xbf16>, vector<16x8xbf16>, vector<8x8xf32> -> vector<8x8xf32>
    %96 = vector.extract_strided_slice %44 {offsets = [0, 8], sizes = [8, 8], strides = [1, 1]} : vector<8x32xf32> to vector<8x8xf32>
    %97 = vector.extract_strided_slice %49 {offsets = [1, 0], sizes = [1, 8], strides = [1, 1]} : vector<4x8xf32> to vector<1x8xf32>
    %98 = vector.extract_strided_slice %50 {offsets = [1, 0], sizes = [1, 8], strides = [1, 1]} : vector<4x8xf32> to vector<1x8xf32>
    %99 = vector.broadcast %97 : vector<1x8xf32> to vector<8x8xf32>
    %100 = arith.addf %96, %99 : vector<8x8xf32>
    %101 = arith.truncf %100 : vector<8x8xf32> to vector<8x8xbf16>
    %102 = vector.extract_strided_slice %45 {offsets = [0, 8], sizes = [16, 8], strides = [1, 1]} : vector<16x32xbf16> to vector<16x8xbf16>
    %cst_44 = arith.constant dense<0.000000e+00> : vector<8x16xf32>
    %103 = tpu.matmul %101, %102, %cst_44 {dimension_numbers = #tpu.dot_dimension_numbers<[1], [1], [0], [0], [0, 0, 1, 0], [], []>} : vector<8x8xbf16>, vector<16x8xbf16>, vector<8x16xf32> -> vector<8x16xf32>
    %104 = vector.broadcast %98 : vector<1x8xf32> to vector<8x8xf32>
    %105 = arith.addf %96, %104 : vector<8x8xf32>
    %106 = arith.truncf %105 : vector<8x8xf32> to vector<8x8xbf16>
    %107 = vector.extract_strided_slice %47 {offsets = [0, 8], sizes = [16, 8], strides = [1, 1]} : vector<16x32xbf16> to vector<16x8xbf16>
    %cst_45 = arith.constant dense<0.000000e+00> : vector<8x16xf32>
    %108 = tpu.matmul %106, %107, %cst_45 {dimension_numbers = #tpu.dot_dimension_numbers<[1], [1], [0], [0], [0, 0, 1, 0], [], []>} : vector<8x8xbf16>, vector<16x8xbf16>, vector<8x16xf32> -> vector<8x16xf32>
    %cst_46 = arith.constant 0.000000e+00 : f32
    %109 = vector.broadcast %cst_46 : f32 to vector<8x1xf32>
    %110 = tpu.concatenate %109, %108 in 1 : vector<8x1xf32>, vector<8x16xf32> -> vector<8x17xf32>
    %111 = vector.extract_strided_slice %110 {offsets = [1, 0], sizes = [7, 17], strides = [1, 1]} : vector<8x17xf32> to vector<7x17xf32>
    %cst_47 = arith.constant 0.000000e+00 : f32
    %112 = vector.broadcast %cst_47 : f32 to vector<1x17xf32>
    %113 = tpu.concatenate %111, %112 in 0 : vector<7x17xf32>, vector<1x17xf32> -> vector<8x17xf32>
    %114 = tpu.concatenate %110, %113 in 1 : vector<8x17xf32>, vector<8x17xf32> -> vector<8x34xf32>
    %115 = vector.extract_strided_slice %114 {offsets = [0, 8], sizes = [1, 16], strides = [1, 1]} : vector<8x34xf32> to vector<1x16xf32>
    %116 = vector.extract_strided_slice %114 {offsets = [1, 7], sizes = [1, 16], strides = [1, 1]} : vector<8x34xf32> to vector<1x16xf32>
    %117 = vector.extract_strided_slice %114 {offsets = [2, 6], sizes = [1, 16], strides = [1, 1]} : vector<8x34xf32> to vector<1x16xf32>
    %118 = vector.extract_strided_slice %114 {offsets = [3, 5], sizes = [1, 16], strides = [1, 1]} : vector<8x34xf32> to vector<1x16xf32>
    %119 = vector.extract_strided_slice %114 {offsets = [4, 4], sizes = [1, 16], strides = [1, 1]} : vector<8x34xf32> to vector<1x16xf32>
    %120 = vector.extract_strided_slice %114 {offsets = [5, 3], sizes = [1, 16], strides = [1, 1]} : vector<8x34xf32> to vector<1x16xf32>
    %121 = vector.extract_strided_slice %114 {offsets = [6, 2], sizes = [1, 16], strides = [1, 1]} : vector<8x34xf32> to vector<1x16xf32>
    %122 = vector.extract_strided_slice %114 {offsets = [7, 1], sizes = [1, 16], strides = [1, 1]} : vector<8x34xf32> to vector<1x16xf32>
    %123 = tpu.concatenate %115, %116, %117, %118, %119, %120, %121, %122 in 0 : vector<1x16xf32>, vector<1x16xf32>, vector<1x16xf32>, vector<1x16xf32>, vector<1x16xf32>, vector<1x16xf32>, vector<1x16xf32>, vector<1x16xf32> -> vector<8x16xf32>
    %124 = arith.addf %103, %123 : vector<8x16xf32>
    %cst_48 = arith.constant 0.353553385 : f32
    %125 = vector.broadcast %cst_48 : f32 to vector<8x16xf32>
    %126 = arith.mulf %124, %125 : vector<8x16xf32>
    %127 = arith.addf %126, %48 : vector<8x16xf32>
    %cst_49 = arith.constant dense<0xFF800000> : vector<8xf32>
    %128 = vector.multi_reduction <maximumf>, %127, %cst_49 [1] : vector<8x16xf32> to vector<8xf32>
    %129 = vector.shape_cast %128 : vector<8xf32> to vector<8x1xf32>
    %130 = vector.broadcast %129 : vector<8x1xf32> to vector<8x16xf32>
    %131 = arith.subf %127, %130 : vector<8x16xf32>
    %132 = math.exp %131 : vector<8x16xf32>
    %cst_50 = arith.constant dense<0.000000e+00> : vector<8xf32>
    %133 = vector.multi_reduction <add>, %132, %cst_50 [1] : vector<8x16xf32> to vector<8xf32>
    %134 = vector.shape_cast %133 : vector<8xf32> to vector<8x1xf32>
    %135 = tpu.reciprocal %134 {approx = true} : vector<8x1xf32> -> vector<8x1xf32>
    %136 = vector.broadcast %135 : vector<8x1xf32> to vector<8x16xf32>
    %137 = arith.mulf %132, %136 : vector<8x16xf32>
    %138 = arith.truncf %137 : vector<8x16xf32> to vector<8x16xbf16>
    %139 = vector.extract_strided_slice %46 {offsets = [0, 8], sizes = [16, 8], strides = [1, 1]} : vector<16x32xbf16> to vector<16x8xbf16>
    %cst_51 = arith.constant dense<0.000000e+00> : vector<8x8xf32>
    %140 = tpu.matmul %138, %139, %cst_51 {dimension_numbers = #tpu.dot_dimension_numbers<[1], [0], [0], [1], [0, 0, 1, 1], [], []>} : vector<8x16xbf16>, vector<16x8xbf16>, vector<8x8xf32> -> vector<8x8xf32>
    %141 = vector.extract_strided_slice %44 {offsets = [0, 16], sizes = [8, 8], strides = [1, 1]} : vector<8x32xf32> to vector<8x8xf32>
    %142 = vector.extract_strided_slice %49 {offsets = [2, 0], sizes = [1, 8], strides = [1, 1]} : vector<4x8xf32> to vector<1x8xf32>
    %143 = vector.extract_strided_slice %50 {offsets = [2, 0], sizes = [1, 8], strides = [1, 1]} : vector<4x8xf32> to vector<1x8xf32>
    %144 = vector.broadcast %142 : vector<1x8xf32> to vector<8x8xf32>
    %145 = arith.addf %141, %144 : vector<8x8xf32>
    %146 = arith.truncf %145 : vector<8x8xf32> to vector<8x8xbf16>
    %147 = vector.extract_strided_slice %45 {offsets = [0, 16], sizes = [16, 8], strides = [1, 1]} : vector<16x32xbf16> to vector<16x8xbf16>
    %cst_52 = arith.constant dense<0.000000e+00> : vector<8x16xf32>
    %148 = tpu.matmul %146, %147, %cst_52 {dimension_numbers = #tpu.dot_dimension_numbers<[1], [1], [0], [0], [0, 0, 1, 0], [], []>} : vector<8x8xbf16>, vector<16x8xbf16>, vector<8x16xf32> -> vector<8x16xf32>
    %149 = vector.broadcast %143 : vector<1x8xf32> to vector<8x8xf32>
    %150 = arith.addf %141, %149 : vector<8x8xf32>
    %151 = arith.truncf %150 : vector<8x8xf32> to vector<8x8xbf16>
    %152 = vector.extract_strided_slice %47 {offsets = [0, 16], sizes = [16, 8], strides = [1, 1]} : vector<16x32xbf16> to vector<16x8xbf16>
    %cst_53 = arith.constant dense<0.000000e+00> : vector<8x16xf32>
    %153 = tpu.matmul %151, %152, %cst_53 {dimension_numbers = #tpu.dot_dimension_numbers<[1], [1], [0], [0], [0, 0, 1, 0], [], []>} : vector<8x8xbf16>, vector<16x8xbf16>, vector<8x16xf32> -> vector<8x16xf32>
    %cst_54 = arith.constant 0.000000e+00 : f32
    %154 = vector.broadcast %cst_54 : f32 to vector<8x1xf32>
    %155 = tpu.concatenate %154, %153 in 1 : vector<8x1xf32>, vector<8x16xf32> -> vector<8x17xf32>
    %156 = vector.extract_strided_slice %155 {offsets = [1, 0], sizes = [7, 17], strides = [1, 1]} : vector<8x17xf32> to vector<7x17xf32>
    %cst_55 = arith.constant 0.000000e+00 : f32
    %157 = vector.broadcast %cst_55 : f32 to vector<1x17xf32>
    %158 = tpu.concatenate %156, %157 in 0 : vector<7x17xf32>, vector<1x17xf32> -> vector<8x17xf32>
    %159 = tpu.concatenate %155, %158 in 1 : vector<8x17xf32>, vector<8x17xf32> -> vector<8x34xf32>
    %160 = vector.extract_strided_slice %159 {offsets = [0, 8], sizes = [1, 16], strides = [1, 1]} : vector<8x34xf32> to vector<1x16xf32>
    %161 = vector.extract_strided_slice %159 {offsets = [1, 7], sizes = [1, 16], strides = [1, 1]} : vector<8x34xf32> to vector<1x16xf32>
    %162 = vector.extract_strided_slice %159 {offsets = [2, 6], sizes = [1, 16], strides = [1, 1]} : vector<8x34xf32> to vector<1x16xf32>
    %163 = vector.extract_strided_slice %159 {offsets = [3, 5], sizes = [1, 16], strides = [1, 1]} : vector<8x34xf32> to vector<1x16xf32>
    %164 = vector.extract_strided_slice %159 {offsets = [4, 4], sizes = [1, 16], strides = [1, 1]} : vector<8x34xf32> to vector<1x16xf32>
    %165 = vector.extract_strided_slice %159 {offsets = [5, 3], sizes = [1, 16], strides = [1, 1]} : vector<8x34xf32> to vector<1x16xf32>
    %166 = vector.extract_strided_slice %159 {offsets = [6, 2], sizes = [1, 16], strides = [1, 1]} : vector<8x34xf32> to vector<1x16xf32>
    %167 = vector.extract_strided_slice %159 {offsets = [7, 1], sizes = [1, 16], strides = [1, 1]} : vector<8x34xf32> to vector<1x16xf32>
    %168 = tpu.concatenate %160, %161, %162, %163, %164, %165, %166, %167 in 0 : vector<1x16xf32>, vector<1x16xf32>, vector<1x16xf32>, vector<1x16xf32>, vector<1x16xf32>, vector<1x16xf32>, vector<1x16xf32>, vector<1x16xf32> -> vector<8x16xf32>
    %169 = arith.addf %148, %168 : vector<8x16xf32>
    %cst_56 = arith.constant 0.353553385 : f32
    %170 = vector.broadcast %cst_56 : f32 to vector<8x16xf32>
    %171 = arith.mulf %169, %170 : vector<8x16xf32>
    %172 = arith.addf %171, %48 : vector<8x16xf32>
    %cst_57 = arith.constant dense<0xFF800000> : vector<8xf32>
    %173 = vector.multi_reduction <maximumf>, %172, %cst_57 [1] : vector<8x16xf32> to vector<8xf32>
    %174 = vector.shape_cast %173 : vector<8xf32> to vector<8x1xf32>
    %175 = vector.broadcast %174 : vector<8x1xf32> to vector<8x16xf32>
    %176 = arith.subf %172, %175 : vector<8x16xf32>
    %177 = math.exp %176 : vector<8x16xf32>
    %cst_58 = arith.constant dense<0.000000e+00> : vector<8xf32>
    %178 = vector.multi_reduction <add>, %177, %cst_58 [1] : vector<8x16xf32> to vector<8xf32>
    %179 = vector.shape_cast %178 : vector<8xf32> to vector<8x1xf32>
    %180 = tpu.reciprocal %179 {approx = true} : vector<8x1xf32> -> vector<8x1xf32>
    %181 = vector.broadcast %180 : vector<8x1xf32> to vector<8x16xf32>
    %182 = arith.mulf %177, %181 : vector<8x16xf32>
    %183 = arith.truncf %182 : vector<8x16xf32> to vector<8x16xbf16>
    %184 = vector.extract_strided_slice %46 {offsets = [0, 16], sizes = [16, 8], strides = [1, 1]} : vector<16x32xbf16> to vector<16x8xbf16>
    %cst_59 = arith.constant dense<0.000000e+00> : vector<8x8xf32>
    %185 = tpu.matmul %183, %184, %cst_59 {dimension_numbers = #tpu.dot_dimension_numbers<[1], [0], [0], [1], [0, 0, 1, 1], [], []>} : vector<8x16xbf16>, vector<16x8xbf16>, vector<8x8xf32> -> vector<8x8xf32>
    %186 = vector.extract_strided_slice %44 {offsets = [0, 24], sizes = [8, 8], strides = [1, 1]} : vector<8x32xf32> to vector<8x8xf32>
    %187 = vector.extract_strided_slice %49 {offsets = [3, 0], sizes = [1, 8], strides = [1, 1]} : vector<4x8xf32> to vector<1x8xf32>
    %188 = vector.extract_strided_slice %50 {offsets = [3, 0], sizes = [1, 8], strides = [1, 1]} : vector<4x8xf32> to vector<1x8xf32>
    %189 = vector.broadcast %187 : vector<1x8xf32> to vector<8x8xf32>
    %190 = arith.addf %186, %189 : vector<8x8xf32>
    %191 = arith.truncf %190 : vector<8x8xf32> to vector<8x8xbf16>
    %192 = vector.extract_strided_slice %45 {offsets = [0, 24], sizes = [16, 8], strides = [1, 1]} : vector<16x32xbf16> to vector<16x8xbf16>
    %cst_60 = arith.constant dense<0.000000e+00> : vector<8x16xf32>
    %193 = tpu.matmul %191, %192, %cst_60 {dimension_numbers = #tpu.dot_dimension_numbers<[1], [1], [0], [0], [0, 0, 1, 0], [], []>} : vector<8x8xbf16>, vector<16x8xbf16>, vector<8x16xf32> -> vector<8x16xf32>
    %194 = vector.broadcast %188 : vector<1x8xf32> to vector<8x8xf32>
    %195 = arith.addf %186, %194 : vector<8x8xf32>
    %196 = arith.truncf %195 : vector<8x8xf32> to vector<8x8xbf16>
    %197 = vector.extract_strided_slice %47 {offsets = [0, 24], sizes = [16, 8], strides = [1, 1]} : vector<16x32xbf16> to vector<16x8xbf16>
    %cst_61 = arith.constant dense<0.000000e+00> : vector<8x16xf32>
    %198 = tpu.matmul %196, %197, %cst_61 {dimension_numbers = #tpu.dot_dimension_numbers<[1], [1], [0], [0], [0, 0, 1, 0], [], []>} : vector<8x8xbf16>, vector<16x8xbf16>, vector<8x16xf32> -> vector<8x16xf32>
    %cst_62 = arith.constant 0.000000e+00 : f32
    %199 = vector.broadcast %cst_62 : f32 to vector<8x1xf32>
    %200 = tpu.concatenate %199, %198 in 1 : vector<8x1xf32>, vector<8x16xf32> -> vector<8x17xf32>
    %201 = vector.extract_strided_slice %200 {offsets = [1, 0], sizes = [7, 17], strides = [1, 1]} : vector<8x17xf32> to vector<7x17xf32>
    %cst_63 = arith.constant 0.000000e+00 : f32
    %202 = vector.broadcast %cst_63 : f32 to vector<1x17xf32>
    %203 = tpu.concatenate %201, %202 in 0 : vector<7x17xf32>, vector<1x17xf32> -> vector<8x17xf32>
    %204 = tpu.concatenate %200, %203 in 1 : vector<8x17xf32>, vector<8x17xf32> -> vector<8x34xf32>
    %205 = vector.extract_strided_slice %204 {offsets = [0, 8], sizes = [1, 16], strides = [1, 1]} : vector<8x34xf32> to vector<1x16xf32>
    %206 = vector.extract_strided_slice %204 {offsets = [1, 7], sizes = [1, 16], strides = [1, 1]} : vector<8x34xf32> to vector<1x16xf32>
    %207 = vector.extract_strided_slice %204 {offsets = [2, 6], sizes = [1, 16], strides = [1, 1]} : vector<8x34xf32> to vector<1x16xf32>
    %208 = vector.extract_strided_slice %204 {offsets = [3, 5], sizes = [1, 16], strides = [1, 1]} : vector<8x34xf32> to vector<1x16xf32>
    %209 = vector.extract_strided_slice %204 {offsets = [4, 4], sizes = [1, 16], strides = [1, 1]} : vector<8x34xf32> to vector<1x16xf32>
    %210 = vector.extract_strided_slice %204 {offsets = [5, 3], sizes = [1, 16], strides = [1, 1]} : vector<8x34xf32> to vector<1x16xf32>
    %211 = vector.extract_strided_slice %204 {offsets = [6, 2], sizes = [1, 16], strides = [1, 1]} : vector<8x34xf32> to vector<1x16xf32>
    %212 = vector.extract_strided_slice %204 {offsets = [7, 1], sizes = [1, 16], strides = [1, 1]} : vector<8x34xf32> to vector<1x16xf32>
    %213 = tpu.concatenate %205, %206, %207, %208, %209, %210, %211, %212 in 0 : vector<1x16xf32>, vector<1x16xf32>, vector<1x16xf32>, vector<1x16xf32>, vector<1x16xf32>, vector<1x16xf32>, vector<1x16xf32>, vector<1x16xf32> -> vector<8x16xf32>
    %214 = arith.addf %193, %213 : vector<8x16xf32>
    %cst_64 = arith.constant 0.353553385 : f32
    %215 = vector.broadcast %cst_64 : f32 to vector<8x16xf32>
    %216 = arith.mulf %214, %215 : vector<8x16xf32>
    %217 = arith.addf %216, %48 : vector<8x16xf32>
    %cst_65 = arith.constant dense<0xFF800000> : vector<8xf32>
    %218 = vector.multi_reduction <maximumf>, %217, %cst_65 [1] : vector<8x16xf32> to vector<8xf32>
    %219 = vector.shape_cast %218 : vector<8xf32> to vector<8x1xf32>
    %220 = vector.broadcast %219 : vector<8x1xf32> to vector<8x16xf32>
    %221 = arith.subf %217, %220 : vector<8x16xf32>
    %222 = math.exp %221 : vector<8x16xf32>
    %cst_66 = arith.constant dense<0.000000e+00> : vector<8xf32>
    %223 = vector.multi_reduction <add>, %222, %cst_66 [1] : vector<8x16xf32> to vector<8xf32>
    %224 = vector.shape_cast %223 : vector<8xf32> to vector<8x1xf32>
    %225 = tpu.reciprocal %224 {approx = true} : vector<8x1xf32> -> vector<8x1xf32>
    %226 = vector.broadcast %225 : vector<8x1xf32> to vector<8x16xf32>
    %227 = arith.mulf %222, %226 : vector<8x16xf32>
    %228 = arith.truncf %227 : vector<8x16xf32> to vector<8x16xbf16>
    %229 = vector.extract_strided_slice %46 {offsets = [0, 24], sizes = [16, 8], strides = [1, 1]} : vector<16x32xbf16> to vector<16x8xbf16>
    %cst_67 = arith.constant dense<0.000000e+00> : vector<8x8xf32>
    %230 = tpu.matmul %228, %229, %cst_67 {dimension_numbers = #tpu.dot_dimension_numbers<[1], [0], [0], [1], [0, 0, 1, 1], [], []>} : vector<8x16xbf16>, vector<16x8xbf16>, vector<8x8xf32> -> vector<8x8xf32>
    %231 = tpu.concatenate %95, %140, %185, %230 in 1 : vector<8x8xf32>, vector<8x8xf32>, vector<8x8xf32>, vector<8x8xf32> -> vector<8x32xf32>
    %232 = arith.truncf %231 : vector<8x32xf32> to vector<8x32xbf16>
    %c0_68 = arith.constant 0 : index
    %c0_69 = arith.constant 0 : index
    %233 = vector.load %arg15[%c0_68, %c0_69] : memref<32x32xbf16, #tpu.memory_space<vmem>>, vector<32x32xbf16>
    %cst_70 = arith.constant dense<0.000000e+00> : vector<8x32xf32>
    %234 = tpu.matmul %232, %233, %cst_70 {dimension_numbers = #tpu.dot_dimension_numbers<[1], [0], [0], [1], [0, 0, 1, 1], [], []>} : vector<8x32xbf16>, vector<32x32xbf16>, vector<8x32xf32> -> vector<8x32xf32>
    %c0_71 = arith.constant 0 : index
    %c0_72 = arith.constant 0 : index
    %235 = vector.load %arg16[%c0_71, %c0_72] : memref<1x32xf32, #tpu.memory_space<vmem>>, vector<1x32xf32>
    %236 = vector.broadcast %235 : vector<1x32xf32> to vector<8x32xf32>
    %237 = arith.addf %234, %236 : vector<8x32xf32>
    %cst_73 = arith.constant 0.000000e+00 : f32
    %238 = vector.broadcast %cst_73 : f32 to vector<8x32xf32>
    %239 = arith.maximumf %237, %238 : vector<8x32xf32>
    %c0_74 = arith.constant 0 : index
    %c0_75 = arith.constant 0 : index
    %240 = vector.load %arg18[%c0_74, %c0_75] : memref<1x32xf32, #tpu.memory_space<vmem>>, vector<1x32xf32>
    %241 = arith.truncf %1 : vector<8x32xf32> to vector<8x32xbf16>
    %242 = arith.truncf %239 : vector<8x32xf32> to vector<8x32xbf16>
    %c0_76 = arith.constant 0 : index
    %c0_77 = arith.constant 0 : index
    %c0_78 = arith.constant 0 : index
    %243 = vector.load %arg17[%c0_76, %c0_77, %c0_78] : memref<6x32x32xbf16, #tpu.memory_space<vmem>>, vector<1x32x32xbf16>
    %244 = vector.shape_cast %243 : vector<1x32x32xbf16> to vector<32x32xbf16>
    %cst_79 = arith.constant dense<0.000000e+00> : vector<8x32xf32>
    %245 = tpu.matmul %242, %244, %cst_79 {dimension_numbers = #tpu.dot_dimension_numbers<[1], [0], [0], [1], [0, 0, 1, 1], [], []>} : vector<8x32xbf16>, vector<32x32xbf16>, vector<8x32xf32> -> vector<8x32xf32>
    %c1 = arith.constant 1 : index
    %c0_80 = arith.constant 0 : index
    %c0_81 = arith.constant 0 : index
    %246 = vector.load %arg17[%c1, %c0_80, %c0_81] : memref<6x32x32xbf16, #tpu.memory_space<vmem>>, vector<1x32x32xbf16>
    %247 = vector.shape_cast %246 : vector<1x32x32xbf16> to vector<32x32xbf16>
    %cst_82 = arith.constant dense<0.000000e+00> : vector<8x32xf32>
    %248 = tpu.matmul %241, %247, %cst_82 {dimension_numbers = #tpu.dot_dimension_numbers<[1], [0], [0], [1], [0, 0, 1, 1], [], []>} : vector<8x32xbf16>, vector<32x32xbf16>, vector<8x32xf32> -> vector<8x32xf32>
    %249 = arith.addf %245, %248 : vector<8x32xf32>
    %250 = arith.negf %249 : vector<8x32xf32>
    %251 = math.exp %250 : vector<8x32xf32>
    %cst_83 = arith.constant 1.000000e+00 : f32
    %252 = vector.broadcast %cst_83 : f32 to vector<8x32xf32>
    %253 = arith.addf %252, %251 : vector<8x32xf32>
    %254 = arith.divf %252, %253 : vector<8x32xf32>
    %c2 = arith.constant 2 : index
    %c0_84 = arith.constant 0 : index
    %c0_85 = arith.constant 0 : index
    %255 = vector.load %arg17[%c2, %c0_84, %c0_85] : memref<6x32x32xbf16, #tpu.memory_space<vmem>>, vector<1x32x32xbf16>
    %256 = vector.shape_cast %255 : vector<1x32x32xbf16> to vector<32x32xbf16>
    %cst_86 = arith.constant dense<0.000000e+00> : vector<8x32xf32>
    %257 = tpu.matmul %242, %256, %cst_86 {dimension_numbers = #tpu.dot_dimension_numbers<[1], [0], [0], [1], [0, 0, 1, 1], [], []>} : vector<8x32xbf16>, vector<32x32xbf16>, vector<8x32xf32> -> vector<8x32xf32>
    %c3 = arith.constant 3 : index
    %c0_87 = arith.constant 0 : index
    %c0_88 = arith.constant 0 : index
    %258 = vector.load %arg17[%c3, %c0_87, %c0_88] : memref<6x32x32xbf16, #tpu.memory_space<vmem>>, vector<1x32x32xbf16>
    %259 = vector.shape_cast %258 : vector<1x32x32xbf16> to vector<32x32xbf16>
    %cst_89 = arith.constant dense<0.000000e+00> : vector<8x32xf32>
    %260 = tpu.matmul %241, %259, %cst_89 {dimension_numbers = #tpu.dot_dimension_numbers<[1], [0], [0], [1], [0, 0, 1, 1], [], []>} : vector<8x32xbf16>, vector<32x32xbf16>, vector<8x32xf32> -> vector<8x32xf32>
    %261 = arith.addf %257, %260 : vector<8x32xf32>
    %262 = vector.broadcast %240 : vector<1x32xf32> to vector<8x32xf32>
    %263 = arith.subf %261, %262 : vector<8x32xf32>
    %264 = arith.negf %263 : vector<8x32xf32>
    %265 = math.exp %264 : vector<8x32xf32>
    %cst_90 = arith.constant 1.000000e+00 : f32
    %266 = vector.broadcast %cst_90 : f32 to vector<8x32xf32>
    %267 = arith.addf %266, %265 : vector<8x32xf32>
    %268 = arith.divf %266, %267 : vector<8x32xf32>
    %c4 = arith.constant 4 : index
    %c0_91 = arith.constant 0 : index
    %c0_92 = arith.constant 0 : index
    %269 = vector.load %arg17[%c4, %c0_91, %c0_92] : memref<6x32x32xbf16, #tpu.memory_space<vmem>>, vector<1x32x32xbf16>
    %270 = vector.shape_cast %269 : vector<1x32x32xbf16> to vector<32x32xbf16>
    %cst_93 = arith.constant dense<0.000000e+00> : vector<8x32xf32>
    %271 = tpu.matmul %242, %270, %cst_93 {dimension_numbers = #tpu.dot_dimension_numbers<[1], [0], [0], [1], [0, 0, 1, 1], [], []>} : vector<8x32xbf16>, vector<32x32xbf16>, vector<8x32xf32> -> vector<8x32xf32>
    %272 = arith.mulf %254, %1 : vector<8x32xf32>
    %273 = arith.truncf %272 : vector<8x32xf32> to vector<8x32xbf16>
    %c5 = arith.constant 5 : index
    %c0_94 = arith.constant 0 : index
    %c0_95 = arith.constant 0 : index
    %274 = vector.load %arg17[%c5, %c0_94, %c0_95] : memref<6x32x32xbf16, #tpu.memory_space<vmem>>, vector<1x32x32xbf16>
    %275 = vector.shape_cast %274 : vector<1x32x32xbf16> to vector<32x32xbf16>
    %cst_96 = arith.constant dense<0.000000e+00> : vector<8x32xf32>
    %276 = tpu.matmul %273, %275, %cst_96 {dimension_numbers = #tpu.dot_dimension_numbers<[1], [0], [0], [1], [0, 0, 1, 1], [], []>} : vector<8x32xbf16>, vector<32x32xbf16>, vector<8x32xf32> -> vector<8x32xf32>
    %277 = arith.addf %271, %276 : vector<8x32xf32>
    %278 = math.tanh %277 : vector<8x32xf32>
    %cst_97 = arith.constant 1.000000e+00 : f32
    %279 = vector.broadcast %cst_97 : f32 to vector<8x32xf32>
    %280 = arith.subf %279, %268 : vector<8x32xf32>
    %281 = arith.mulf %280, %1 : vector<8x32xf32>
    %282 = arith.mulf %268, %278 : vector<8x32xf32>
    %283 = arith.addf %281, %282 : vector<8x32xf32>
    %c0_98 = arith.constant 0 : index
    %c0_99 = arith.constant 0 : index
    %284 = vector.load %arg19[%c0_98, %c0_99] : memref<1x32xf32, #tpu.memory_space<vmem>>, vector<1x32xf32>
    %c0_100 = arith.constant 0 : index
    %c0_101 = arith.constant 0 : index
    %285 = vector.load %arg20[%c0_100, %c0_101] : memref<1x32xf32, #tpu.memory_space<vmem>>, vector<1x32xf32>
    %cst_102 = arith.constant dense<0.000000e+00> : vector<8xf32>
    %286 = vector.multi_reduction <add>, %283, %cst_102 [1] : vector<8x32xf32> to vector<8xf32>
    %287 = vector.shape_cast %286 : vector<8xf32> to vector<8x1xf32>
    %cst_103 = arith.constant 3.200000e+01 : f32
    %288 = vector.broadcast %cst_103 : f32 to vector<8x1xf32>
    %289 = arith.divf %287, %288 : vector<8x1xf32>
    %290 = vector.broadcast %289 : vector<8x1xf32> to vector<8x32xf32>
    %291 = arith.subf %283, %290 : vector<8x32xf32>
    %292 = arith.mulf %291, %291 : vector<8x32xf32>
    %cst_104 = arith.constant dense<0.000000e+00> : vector<8xf32>
    %293 = vector.multi_reduction <add>, %292, %cst_104 [1] : vector<8x32xf32> to vector<8xf32>
    %294 = vector.shape_cast %293 : vector<8xf32> to vector<8x1xf32>
    %cst_105 = arith.constant 3.200000e+01 : f32
    %295 = vector.broadcast %cst_105 : f32 to vector<8x1xf32>
    %296 = arith.divf %294, %295 : vector<8x1xf32>
    %297 = vector.broadcast %289 : vector<8x1xf32> to vector<8x32xf32>
    %298 = arith.subf %283, %297 : vector<8x32xf32>
    %cst_106 = arith.constant 9.99999974E-6 : f32
    %299 = vector.broadcast %cst_106 : f32 to vector<8x1xf32>
    %300 = arith.addf %296, %299 : vector<8x1xf32>
    %301 = math.rsqrt %300 : vector<8x1xf32>
    %302 = vector.broadcast %301 : vector<8x1xf32> to vector<8x32xf32>
    %303 = arith.mulf %298, %302 : vector<8x32xf32>
    %304 = vector.broadcast %284 : vector<1x32xf32> to vector<8x32xf32>
    %305 = arith.mulf %303, %304 : vector<8x32xf32>
    %306 = vector.broadcast %285 : vector<1x32xf32> to vector<8x32xf32>
    %307 = arith.addf %305, %306 : vector<8x32xf32>
    %308 = arith.truncf %307 : vector<8x32xf32> to vector<8x32xbf16>
    %c0_107 = arith.constant 0 : index
    %c0_108 = arith.constant 0 : index
    %309 = vector.load %arg21[%c0_107, %c0_108] : memref<32x32xbf16, #tpu.memory_space<vmem>>, vector<32x32xbf16>
    %cst_109 = arith.constant dense<0.000000e+00> : vector<8x32xf32>
    %310 = tpu.matmul %308, %309, %cst_109 {dimension_numbers = #tpu.dot_dimension_numbers<[1], [0], [0], [1], [0, 0, 1, 1], [], []>} : vector<8x32xbf16>, vector<32x32xbf16>, vector<8x32xf32> -> vector<8x32xf32>
    %c0_110 = arith.constant 0 : index
    %c0_111 = arith.constant 0 : index
    %311 = vector.load %arg22[%c0_110, %c0_111] : memref<1x32xf32, #tpu.memory_space<vmem>>, vector<1x32xf32>
    %312 = vector.broadcast %311 : vector<1x32xf32> to vector<8x32xf32>
    %313 = arith.addf %310, %312 : vector<8x32xf32>
    %cst_112 = arith.constant 0.000000e+00 : f32
    %314 = vector.broadcast %cst_112 : f32 to vector<8x32xf32>
    %315 = arith.maximumf %313, %314 : vector<8x32xf32>
    %316 = arith.truncf %315 : vector<8x32xf32> to vector<8x32xbf16>
    %c0_113 = arith.constant 0 : index
    %c0_114 = arith.constant 0 : index
    %317 = vector.load %arg23[%c0_113, %c0_114] : memref<32x32xbf16, #tpu.memory_space<vmem>>, vector<32x32xbf16>
    %cst_115 = arith.constant dense<0.000000e+00> : vector<8x32xf32>
    %318 = tpu.matmul %316, %317, %cst_115 {dimension_numbers = #tpu.dot_dimension_numbers<[1], [0], [0], [1], [0, 0, 1, 1], [], []>} : vector<8x32xbf16>, vector<32x32xbf16>, vector<8x32xf32> -> vector<8x32xf32>
    %c0_116 = arith.constant 0 : index
    %c0_117 = arith.constant 0 : index
    %319 = vector.load %arg24[%c0_116, %c0_117] : memref<1x32xf32, #tpu.memory_space<vmem>>, vector<1x32xf32>
    %320 = vector.broadcast %319 : vector<1x32xf32> to vector<8x32xf32>
    %321 = arith.addf %318, %320 : vector<8x32xf32>
    %cst_118 = arith.constant 0.000000e+00 : f32
    %322 = vector.broadcast %cst_118 : f32 to vector<8x32xf32>
    %323 = arith.maximumf %321, %322 : vector<8x32xf32>
    %c0_119 = arith.constant 0 : index
    %c0_120 = arith.constant 0 : index
    %324 = vector.load %arg26[%c0_119, %c0_120] : memref<1x32xf32, #tpu.memory_space<vmem>>, vector<1x32xf32>
    %325 = arith.truncf %283 : vector<8x32xf32> to vector<8x32xbf16>
    %326 = arith.truncf %323 : vector<8x32xf32> to vector<8x32xbf16>
    %c0_121 = arith.constant 0 : index
    %c0_122 = arith.constant 0 : index
    %c0_123 = arith.constant 0 : index
    %327 = vector.load %arg25[%c0_121, %c0_122, %c0_123] : memref<6x32x32xbf16, #tpu.memory_space<vmem>>, vector<1x32x32xbf16>
    %328 = vector.shape_cast %327 : vector<1x32x32xbf16> to vector<32x32xbf16>
    %cst_124 = arith.constant dense<0.000000e+00> : vector<8x32xf32>
    %329 = tpu.matmul %326, %328, %cst_124 {dimension_numbers = #tpu.dot_dimension_numbers<[1], [0], [0], [1], [0, 0, 1, 1], [], []>} : vector<8x32xbf16>, vector<32x32xbf16>, vector<8x32xf32> -> vector<8x32xf32>
    %c1_125 = arith.constant 1 : index
    %c0_126 = arith.constant 0 : index
    %c0_127 = arith.constant 0 : index
    %330 = vector.load %arg25[%c1_125, %c0_126, %c0_127] : memref<6x32x32xbf16, #tpu.memory_space<vmem>>, vector<1x32x32xbf16>
    %331 = vector.shape_cast %330 : vector<1x32x32xbf16> to vector<32x32xbf16>
    %cst_128 = arith.constant dense<0.000000e+00> : vector<8x32xf32>
    %332 = tpu.matmul %325, %331, %cst_128 {dimension_numbers = #tpu.dot_dimension_numbers<[1], [0], [0], [1], [0, 0, 1, 1], [], []>} : vector<8x32xbf16>, vector<32x32xbf16>, vector<8x32xf32> -> vector<8x32xf32>
    %333 = arith.addf %329, %332 : vector<8x32xf32>
    %334 = arith.negf %333 : vector<8x32xf32>
    %335 = math.exp %334 : vector<8x32xf32>
    %cst_129 = arith.constant 1.000000e+00 : f32
    %336 = vector.broadcast %cst_129 : f32 to vector<8x32xf32>
    %337 = arith.addf %336, %335 : vector<8x32xf32>
    %338 = arith.divf %336, %337 : vector<8x32xf32>
    %c2_130 = arith.constant 2 : index
    %c0_131 = arith.constant 0 : index
    %c0_132 = arith.constant 0 : index
    %339 = vector.load %arg25[%c2_130, %c0_131, %c0_132] : memref<6x32x32xbf16, #tpu.memory_space<vmem>>, vector<1x32x32xbf16>
    %340 = vector.shape_cast %339 : vector<1x32x32xbf16> to vector<32x32xbf16>
    %cst_133 = arith.constant dense<0.000000e+00> : vector<8x32xf32>
    %341 = tpu.matmul %326, %340, %cst_133 {dimension_numbers = #tpu.dot_dimension_numbers<[1], [0], [0], [1], [0, 0, 1, 1], [], []>} : vector<8x32xbf16>, vector<32x32xbf16>, vector<8x32xf32> -> vector<8x32xf32>
    %c3_134 = arith.constant 3 : index
    %c0_135 = arith.constant 0 : index
    %c0_136 = arith.constant 0 : index
    %342 = vector.load %arg25[%c3_134, %c0_135, %c0_136] : memref<6x32x32xbf16, #tpu.memory_space<vmem>>, vector<1x32x32xbf16>
    %343 = vector.shape_cast %342 : vector<1x32x32xbf16> to vector<32x32xbf16>
    %cst_137 = arith.constant dense<0.000000e+00> : vector<8x32xf32>
    %344 = tpu.matmul %325, %343, %cst_137 {dimension_numbers = #tpu.dot_dimension_numbers<[1], [0], [0], [1], [0, 0, 1, 1], [], []>} : vector<8x32xbf16>, vector<32x32xbf16>, vector<8x32xf32> -> vector<8x32xf32>
    %345 = arith.addf %341, %344 : vector<8x32xf32>
    %346 = vector.broadcast %324 : vector<1x32xf32> to vector<8x32xf32>
    %347 = arith.subf %345, %346 : vector<8x32xf32>
    %348 = arith.negf %347 : vector<8x32xf32>
    %349 = math.exp %348 : vector<8x32xf32>
    %cst_138 = arith.constant 1.000000e+00 : f32
    %350 = vector.broadcast %cst_138 : f32 to vector<8x32xf32>
    %351 = arith.addf %350, %349 : vector<8x32xf32>
    %352 = arith.divf %350, %351 : vector<8x32xf32>
    %c4_139 = arith.constant 4 : index
    %c0_140 = arith.constant 0 : index
    %c0_141 = arith.constant 0 : index
    %353 = vector.load %arg25[%c4_139, %c0_140, %c0_141] : memref<6x32x32xbf16, #tpu.memory_space<vmem>>, vector<1x32x32xbf16>
    %354 = vector.shape_cast %353 : vector<1x32x32xbf16> to vector<32x32xbf16>
    %cst_142 = arith.constant dense<0.000000e+00> : vector<8x32xf32>
    %355 = tpu.matmul %326, %354, %cst_142 {dimension_numbers = #tpu.dot_dimension_numbers<[1], [0], [0], [1], [0, 0, 1, 1], [], []>} : vector<8x32xbf16>, vector<32x32xbf16>, vector<8x32xf32> -> vector<8x32xf32>
    %356 = arith.mulf %338, %283 : vector<8x32xf32>
    %357 = arith.truncf %356 : vector<8x32xf32> to vector<8x32xbf16>
    %c5_143 = arith.constant 5 : index
    %c0_144 = arith.constant 0 : index
    %c0_145 = arith.constant 0 : index
    %358 = vector.load %arg25[%c5_143, %c0_144, %c0_145] : memref<6x32x32xbf16, #tpu.memory_space<vmem>>, vector<1x32x32xbf16>
    %359 = vector.shape_cast %358 : vector<1x32x32xbf16> to vector<32x32xbf16>
    %cst_146 = arith.constant dense<0.000000e+00> : vector<8x32xf32>
    %360 = tpu.matmul %357, %359, %cst_146 {dimension_numbers = #tpu.dot_dimension_numbers<[1], [0], [0], [1], [0, 0, 1, 1], [], []>} : vector<8x32xbf16>, vector<32x32xbf16>, vector<8x32xf32> -> vector<8x32xf32>
    %361 = arith.addf %355, %360 : vector<8x32xf32>
    %362 = math.tanh %361 : vector<8x32xf32>
    %cst_147 = arith.constant 1.000000e+00 : f32
    %363 = vector.broadcast %cst_147 : f32 to vector<8x32xf32>
    %364 = arith.subf %363, %352 : vector<8x32xf32>
    %365 = arith.mulf %364, %283 : vector<8x32xf32>
    %366 = arith.mulf %352, %362 : vector<8x32xf32>
    %367 = arith.addf %365, %366 : vector<8x32xf32>
    %c0_148 = arith.constant 0 : index
    %c0_149 = arith.constant 0 : index
    %c0_150 = arith.constant 0 : index
    %368 = vector.load %arg27[%c0_148, %c0_149, %c0_150] : memref<1x8x32xf32, #tpu.memory_space<vmem>>, vector<1x8x32xf32>
    %369 = vector.shape_cast %368 : vector<1x8x32xf32> to vector<8x32xf32>
    %370 = vector.shape_cast %367 : vector<8x32xf32> to vector<1x8x32xf32>
    tpu.vector_store %arg27[%c0_148, %c0_149, %c0_150], %370 {strides = array<i32>} : memref<1x8x32xf32, #tpu.memory_space<vmem>>, vector<1x8x32xf32>,
    return
  }
  func.func @transform_0(%arg0: i32) -> (i32, i32, i32) {
    %c0_i32 = arith.constant 0 : i32
    %c0_i32_0 = arith.constant 0 : i32
    %c0_i32_1 = arith.constant 0 : i32
    return %arg0, %c0_i32, %c0_i32_0 : i32, i32, i32
  }
  func.func @transform_1(%arg0: i32) -> (i32, i32, i32) {
    %c0_i32 = arith.constant 0 : i32
    %c0_i32_0 = arith.constant 0 : i32
    %c0_i32_1 = arith.constant 0 : i32
    return %arg0, %c0_i32, %c0_i32_0 : i32, i32, i32
  }
  func.func @transform_2(%arg0: i32) -> (i32, i32) {
    %c0_i32 = arith.constant 0 : i32
    %c0_i32_0 = arith.constant 0 : i32
    %c0_i32_1 = arith.constant 0 : i32
    return %c0_i32, %c0_i32_0 : i32, i32
  }
  func.func @transform_3(%arg0: i32) -> (i32, i32) {
    %c0_i32 = arith.constant 0 : i32
    %c0_i32_0 = arith.constant 0 : i32
    %c0_i32_1 = arith.constant 0 : i32
    return %c0_i32, %c0_i32_0 : i32, i32
  }
  func.func @transform_4(%arg0: i32) -> (i32, i32) {
    %c0_i32 = arith.constant 0 : i32
    %c0_i32_0 = arith.constant 0 : i32
    %c0_i32_1 = arith.constant 0 : i32
    return %c0_i32, %c0_i32_0 : i32, i32
  }
  func.func @transform_5(%arg0: i32) -> (i32, i32) {
    %c0_i32 = arith.constant 0 : i32
    %c0_i32_0 = arith.constant 0 : i32
    %c0_i32_1 = arith.constant 0 : i32
    return %c0_i32, %c0_i32_0 : i32, i32
  }
  func.func @transform_6(%arg0: i32) -> (i32, i32) {
    %c0_i32 = arith.constant 0 : i32
    %c0_i32_0 = arith.constant 0 : i32
    %c0_i32_1 = arith.constant 0 : i32
    return %c0_i32, %c0_i32_0 : i32, i32
  }
  func.func @transform_7(%arg0: i32) -> (i32, i32) {
    %c0_i32 = arith.constant 0 : i32
    %c0_i32_0 = arith.constant 0 : i32
    %c0_i32_1 = arith.constant 0 : i32
    return %c0_i32, %c0_i32_0 : i32, i32
  }
  func.func @transform_8(%arg0: i32) -> (i32, i32) {
    %c0_i32 = arith.constant 0 : i32
    %c0_i32_0 = arith.constant 0 : i32
    %c0_i32_1 = arith.constant 0 : i32
    return %c0_i32, %c0_i32_0 : i32, i32
  }
  func.func @transform_9(%arg0: i32) -> (i32, i32) {
    %c0_i32 = arith.constant 0 : i32
    %c0_i32_0 = arith.constant 0 : i32
    %c0_i32_1 = arith.constant 0 : i32
    return %c0_i32, %c0_i32_0 : i32, i32
  }
  func.func @transform_10(%arg0: i32) -> (i32, i32) {
    %c0_i32 = arith.constant 0 : i32
    %c0_i32_0 = arith.constant 0 : i32
    %c0_i32_1 = arith.constant 0 : i32
    return %c0_i32, %c0_i32_0 : i32, i32
  }
  func.func @transform_11(%arg0: i32) -> (i32, i32) {
    %c0_i32 = arith.constant 0 : i32
    %c0_i32_0 = arith.constant 0 : i32
    %c0_i32_1 = arith.constant 0 : i32
    return %c0_i32, %c0_i32_0 : i32, i32
  }
  func.func @transform_12(%arg0: i32) -> (i32, i32) {
    %c0_i32 = arith.constant 0 : i32
    %c0_i32_0 = arith.constant 0 : i32
    %c0_i32_1 = arith.constant 0 : i32
    return %c0_i32, %c0_i32_0 : i32, i32
  }
  func.func @transform_13(%arg0: i32) -> (i32, i32) {
    %c0_i32 = arith.constant 0 : i32
    %c0_i32_0 = arith.constant 0 : i32
    %c0_i32_1 = arith.constant 0 : i32
    return %c0_i32, %c0_i32_0 : i32, i32
  }
  func.func @transform_14(%arg0: i32) -> (i32, i32) {
    %c0_i32 = arith.constant 0 : i32
    %c0_i32_0 = arith.constant 0 : i32
    %c0_i32_1 = arith.constant 0 : i32
    return %c0_i32, %c0_i32_0 : i32, i32
  }
  func.func @transform_15(%arg0: i32) -> (i32, i32) {
    %c0_i32 = arith.constant 0 : i32
    %c0_i32_0 = arith.constant 0 : i32
    %c0_i32_1 = arith.constant 0 : i32
    return %c0_i32, %c0_i32_0 : i32, i32
  }
  func.func @transform_16(%arg0: i32) -> (i32, i32, i32) {
    %c0_i32 = arith.constant 0 : i32
    %c0_i32_0 = arith.constant 0 : i32
    %c0_i32_1 = arith.constant 0 : i32
    %c0_i32_2 = arith.constant 0 : i32
    return %c0_i32, %c0_i32_0, %c0_i32_1 : i32, i32, i32
  }
  func.func @transform_17(%arg0: i32) -> (i32, i32) {
    %c0_i32 = arith.constant 0 : i32
    %c0_i32_0 = arith.constant 0 : i32
    %c0_i32_1 = arith.constant 0 : i32
    return %c0_i32, %c0_i32_0 : i32, i32
  }
  func.func @transform_18(%arg0: i32) -> (i32, i32) {
    %c0_i32 = arith.constant 0 : i32
    %c0_i32_0 = arith.constant 0 : i32
    %c0_i32_1 = arith.constant 0 : i32
    return %c0_i32, %c0_i32_0 : i32, i32
  }
  func.func @transform_19(%arg0: i32) -> (i32, i32) {
    %c0_i32 = arith.constant 0 : i32
    %c0_i32_0 = arith.constant 0 : i32
    %c0_i32_1 = arith.constant 0 : i32
    return %c0_i32, %c0_i32_0 : i32, i32
  }
  func.func @transform_20(%arg0: i32) -> (i32, i32) {
    %c0_i32 = arith.constant 0 : i32
    %c0_i32_0 = arith.constant 0 : i32
    %c0_i32_1 = arith.constant 0 : i32
    return %c0_i32, %c0_i32_0 : i32, i32
  }
  func.func @transform_21(%arg0: i32) -> (i32, i32) {
    %c0_i32 = arith.constant 0 : i32
    %c0_i32_0 = arith.constant 0 : i32
    %c0_i32_1 = arith.constant 0 : i32
    return %c0_i32, %c0_i32_0 : i32, i32
  }
  func.func @transform_22(%arg0: i32) -> (i32, i32) {
    %c0_i32 = arith.constant 0 : i32
    %c0_i32_0 = arith.constant 0 : i32
    %c0_i32_1 = arith.constant 0 : i32
    return %c0_i32, %c0_i32_0 : i32, i32
  }
  func.func @transform_23(%arg0: i32) -> (i32, i32) {
    %c0_i32 = arith.constant 0 : i32
    %c0_i32_0 = arith.constant 0 : i32
    %c0_i32_1 = arith.constant 0 : i32
    return %c0_i32, %c0_i32_0 : i32, i32
  }
  func.func @transform_24(%arg0: i32) -> (i32, i32, i32) {
    %c0_i32 = arith.constant 0 : i32
    %c0_i32_0 = arith.constant 0 : i32
    %c0_i32_1 = arith.constant 0 : i32
    %c0_i32_2 = arith.constant 0 : i32
    return %c0_i32, %c0_i32_0, %c0_i32_1 : i32, i32, i32
  }
  func.func @transform_25(%arg0: i32) -> (i32, i32) {
    %c0_i32 = arith.constant 0 : i32
    %c0_i32_0 = arith.constant 0 : i32
    %c0_i32_1 = arith.constant 0 : i32
    return %c0_i32, %c0_i32_0 : i32, i32
  }
  func.func @transform_26(%arg0: i32) -> (i32, i32, i32) {
    %c0_i32 = arith.constant 0 : i32
    %c0_i32_0 = arith.constant 0 : i32
    %c0_i32_1 = arith.constant 0 : i32
    return %arg0, %c0_i32, %c0_i32_0 : i32, i32, i32
  }
}

</mosaic_0001>

<bundles_post_ra>
// kernel: tpu_custom_call.1
= control target key start
LH: loop header
LB: loop body
LE: loop exit
PB: predicated region body
PF: predicated region fallthrough
CT: control target
= control target key end

     0   :  { %s5844_s0 = inlined_call_operand.hbm [shape: f32[2,8,32], index: 0, kind: input, shape index: {}]   ;;  %s5845_s1 = inlined_call_operand.hbm [shape: f32[2,16,32], index: 1, kind: input, shape index: {}]   ;;  %s5846_s2 = inlined_call_operand.hbm [shape: f32[8,16], index: 2, kind: input, shape index: {}]   ;;  %s5847_s3 = inlined_call_operand.hbm [shape: bf16[16,32], index: 3, kind: input, shape index: {}]   ;;  %s5848_s4 = inlined_call_operand.hbm [shape: f32[1,32], index: 4, kind: input, shape index: {}]   ;;  %s5849_s5 = inlined_call_operand.hbm [shape: f32[1,32], index: 5, kind: input, shape index: {}]   ;;  %s5850_s6 = inlined_call_operand.vmem [shape: bf16[32,32], index: 6, kind: input, shape index: {}]   ;;  %s5851_s7 = inlined_call_operand.hbm [shape: f32[1,32], index: 7, kind: input, shape index: {}]   ;;  %s5852_s8 = inlined_call_operand.hbm [shape: bf16[32,32], index: 8, kind: input, shape index: {}]   ;;  %s5853_s9 = inlined_call_operand.hbm [shape: f32[1,32], index: 9, kind: input, shape index: {}]   ;;  %s5854_s10 = inlined_call_operand.vmem [shape: bf16[32,32], index: 10, kind: input, shape index: {}]   ;;  %s5855_s11 = inlined_call_operand.hbm [shape: f32[1,32], index: 11, kind: input, shape index: {}]   ;;  %s5856_s12 = inlined_call_operand.hbm [shape: f32[4,8], index: 12, kind: input, shape index: {}]   ;;  %s5857_s13 = inlined_call_operand.hbm [shape: f32[4,8], index: 13, kind: input, shape index: {}]   ;;  %s5858_s14 = inlined_call_operand.vmem [shape: bf16[32,32], index: 14, kind: input, shape index: {}]   ;;  %s5859_s15 = inlined_call_operand.hbm [shape: f32[1,32], index: 15, kind: input, shape index: {}]   ;;  %s5860_s16 = inlined_call_operand.hbm [shape: bf16[6,32,32], index: 16, kind: input, shape index: {}]   ;;  %s5861_s17 = inlined_call_operand.hbm [shape: f32[1,32], index: 17, kind: input, shape index: {}]   ;;  %s5862_s18 = inlined_call_operand.vmem [shape: f32[1,32], index: 18, kind: input, shape index: {}]   ;;  %s5863_s19 = inlined_call_operand.vmem [shape: f32[1,32], index: 19, kind: input, shape index: {}]   ;;  %s5864_s20 = inlined_call_operand.vmem [shape: bf16[32,32], index: 20, kind: input, shape index: {}]   ;;  %s5865_s21 = inlined_call_operand.vmem [shape: f32[1,32], index: 21, kind: input, shape index: {}]   ;;  %s5866_s22 = inlined_call_operand.vmem [shape: bf16[32,32], index: 22, kind: input, shape index: {}]   ;;  %s5867_s23 = inlined_call_operand.vmem [shape: f32[1,32], index: 23, kind: input, shape index: {}]   ;;  %s5868_s24 = inlined_call_operand.hbm [shape: bf16[6,32,32], index: 24, kind: input, shape index: {}]   ;;  %s5869_s25 = inlined_call_operand.vmem [shape: f32[1,32], index: 25, kind: input, shape index: {}]   ;;  %s5870_s26 = inlined_call_operand.hbm [shape: f32[2,8,32], index: 26, kind: output, shape index: {}]  }
   0x1   :  { %5900 = sst [smem:[#allocation40_spill]] %s5844_s0 }
   0x2   :  { %5901 = sst [smem:[#allocation41_spill]] %s5845_s1 }
   0x3   :  { %5902 = sst [smem:[#allocation42_spill]] %s5846_s2 }
   0x4   :  { %5903 = sst [smem:[#allocation43_spill]] %s5847_s3 }
   0x5   :  { %5904 = sst [smem:[#allocation44_spill]] %s5848_s4 }
   0x6   :  { %5905 = sst [smem:[#allocation45_spill]] %s5849_s5 }
   0x7   :  { %5906 = sst [smem:[#allocation46_spill]] %s5850_s6 }
   0x8   :  { %5907 = sst [smem:[#allocation47_spill]] %s5851_s7 }
   0x9   :  { %5908 = sst [smem:[#allocation48_spill]] %s5852_s8 }
   0xa   :  { %5909 = sst [smem:[#allocation49_spill]] %s5853_s9 }
   0xb   :  { %5910 = sst [smem:[#allocation50_spill]] %s5854_s10 }
   0xc   :  { %5911 = sst [smem:[#allocation51_spill]] %s5855_s11 }
   0xd   :  { %5912 = sst [smem:[#allocation52_spill]] %s5856_s12 }
   0xe   :  { %5913 = sst [smem:[#allocation53_spill]] %s5857_s13 }
   0xf   :  { %5914 = sst [smem:[#allocation54_spill]] %s5859_s15 }
  0x10   :  { %5915 = sst [smem:[#allocation55_spill]] %s5860_s16 }
  0x11   :  { %5916 = sst [smem:[#allocation56_spill]] %s5861_s17 }
  0x12   :  { %5917 = sst [smem:[#allocation57_spill]] %s5862_s18 }
  0x13   :  { %5918 = sst [smem:[#allocation58_spill]] %s5863_s19 }
  0x14   :  { %5919 = sst [smem:[#allocation59_spill]] %s5864_s20 }
  0x15   :  { %5920 = sst [smem:[#allocation60_spill]] %s5865_s21 }
  0x16   :  { %5921 = sst [smem:[#allocation61_spill]] %s5866_s22 }
  0x17   :  { %5922 = sst [smem:[#allocation62_spill]] %s5867_s23 }
  0x18   :  { %5923 = sst [smem:[#allocation63_spill]] %s5869_s25 }
  0x19   :  { %5924 = sst [smem:[#allocation64_spill]] %s5870_s26 }
  0x1a   :  { %31 = vsyncpa [#allocation3], 0 }
  0x1b   :  { %33 = vsyncpa [#allocation3 + $0x1], 0 }
  0x1c   :  { %34 = vsyncpa [#allocation6], 0 }
  0x1d   :  { %36 = vsyncpa [#allocation6 + $0x1], 0 }
  0x1e   :  { %37 = vsyncpa [#allocation9], 0 }
  0x1f   :  { %38 = vsyncpa [#allocation12], 0 }
  0x20   :  { %39 = vsyncpa [#allocation15], 0 }
  0x21   :  { %40 = vsyncpa [#allocation18], 0 }
  0x22   :  { %41 = vsyncpa [#allocation21], 0 }
  0x23   :  { %42 = vsyncpa [#allocation24], 0 }
  0x24   :  { %43 = vsyncpa [#allocation27], 0 }
  0x25   :  { %44 = vsyncpa [#allocation4], 0 }
  0x26   :  { %46 = vsyncpa [#allocation4 + $0x1], 0  ;;  %s4909_s27 = smov 0   ;;  %s4911_s3 = smov 0  }
  0x27   :  { %s4913_s7 = smov 0   ;;  %s4915_s28 = smov 0  }
  0x28 LB: > { %s4737_s8 = smov [#allocation7]   ;;  %s4930_s29 = sadd.s32 4294967295, %s4735_s28   ;;  %s4735_s28 = sphi %s4915_s28, %s5987_s28   ;;  %s4731_s7 = sphi %s4913_s7, %s5986_s7   ;;  %s4727_s3 = sphi %s4911_s3, %s5985_s3   ;;  %s4723_s27 = sphi %s4909_s27, %s5984_s27  }
  0x29   : > { %s652_s4 = sshll.u32 %s4737_s8, 4  ;;  %p3444_p0 = scmp.ge.s32.totalorder %s4735_s28, 1  ;;  %s653_s4 = int_to_ptr.vmem [resolvable:$true] %s652_s4 }
  0x2a   : > { %p5883_p1 = scmp.eq.s32.totalorder %s4930_s29, 0  ;;  %p639_p2 = scmp.lt.s32.totalorder %s4735_s28, 3 }
  0x2b   : > { %s4738_s9 = smov [#allocation8]   ;;  %s4739_s5 = smov [#allocation11]  }
  0x2c   : > { %p4935_p3 = pnand %p3444_p0, %p639_p2  ;;  %s662_s30 = sshll.u32 %s4738_s9, 4  ;;  %s4942_s30 = int_to_ptr.vmem [resolvable:$true] %s662_s30 }
  0x2d   : > { %s687_s10 = sshll.u32 %s4739_s5, 4  ;;  %s5927_s8 = sld [smem:[#allocation42_spill]]  ;;  %s4950_s10 = int_to_ptr.vmem [resolvable:$true] %s687_s10 }
  0x2e   : > { %s5925_s0 = scalar_select %p4935_p3, 1, 0 }
  0x2f   : > { %p3951_p5 = pneg %p4935_p3 }
  0x31   : > { %p4946_p6 = pnand %p3951_p5, %p5883_p1 }
  0x33   : > { %s4181_s26 = scalar_lea.hbm %s5927_s8, 128  ;;  %p4960_p8 = pneg %p4946_p6 }
  0x34   : > { %p4182_p7 = scmp.ne.s32.totalorder %s5927_s8, %s4181_s26  ;;  %p4188_p11 = scmp.lt.u32.totalorder %s4181_s26, %s5927_s8 }
  0x36   : > { %p4184_p9 = pnand %p4960_p8, %p4182_p7 }
  0x38   : > { %p4185_p10 = pneg %p4184_p9 }
  0x3a   : > { %p4190_p12 = pnand %p4188_p11, %p4185_p10 }
  0x3c   : > { %4193 = shalt.err (!%p4190_p12)
}
  0x3d   : > { %s4194_s6 = scalar_lea.vmem %s653_s4, 128  ;;  %p4202_p5 = scmp.lt.s32.totalorder %s653_s4, %s653_s4 }
  0x3e   : > { %p4195_p13 = scmp.ne.s32.totalorder %s653_s4, %s4194_s6  ;;  %p4203_p4 = scmp.lt.s32.totalorder %s4194_s6, %s4194_s6 }
  0x40   : > { %p4197_p0 = pnand %p4195_p13, %p4960_p8  ;;  %p4204_p1 = por %p4203_p4, %p4202_p5 }
  0x42   : > { %p4198_p2 = pneg %p4197_p0 }
  0x44   : > { %p4205_p3 = pnand %p4204_p1, %p4198_p2 }
  0x46   : > { %4208 = shalt.err (!%p4205_p3)
}
  0x47   : > { %3954 = dma.hbm_to_vmem [thread:$0]  (!%p4946_p6), %s5927_s8, 128, %s653_s4, [#allocation6]  }
  0x48   : > { %s5929_s1 = sld [smem:[#allocation43_spill]] }
  0x4e   : > { %s4209_s5 = scalar_lea.hbm %s5929_s1, 128 }
  0x4f   : > { %p4210_p7 = scmp.ne.s32.totalorder %s5929_s1, %s4209_s5  ;;  %p4216_p1 = scmp.lt.u32.totalorder %s4209_s5, %s5929_s1 }
  0x51   : > { %p4212_p9 = pnand %p4210_p7, %p4960_p8 }
  0x53   : > { %p4213_p4 = pneg %p4212_p9 }
  0x55   : > { %p4218_p3 = pnand %p4216_p1, %p4213_p4 }
  0x57   : > { %4221 = shalt.err (!%p4218_p3)
}
  0x58   : > { %s4222_s4 = scalar_lea.vmem %s4942_s30, 128  ;;  %p4230_p13 = scmp.lt.s32.totalorder %s4942_s30, %s4942_s30 }
  0x59   : > { %p4223_p10 = scmp.ne.s32.totalorder %s4942_s30, %s4222_s4  ;;  %p4231_p0 = scmp.lt.s32.totalorder %s4222_s4, %s4222_s4 }
  0x5b   : > { %p4225_p11 = pnand %p4223_p10, %p4960_p8  ;;  %p4232_p2 = por %p4231_p0, %p4230_p13 }
  0x5d   : > { %p4226_p12 = pneg %p4225_p11 }
  0x5f   : > { %p4233_p5 = pnand %p4232_p2, %p4226_p12 }
  0x61   : > { %4236 = shalt.err (!%p4233_p5)
}
  0x62   : > { %s5888_s19 = smov 64   ;;  %s5890_s18 = smov 4  }
  0x63   : > { %3957 = dma.hbm_to_vmem [thread:$0]  (!%p4946_p6), %s5929_s1, 128, %s4942_s30, [#allocation9], %s5888_s19, %s5888_s19, %s5890_s18  }
  0x64   : > { %s5930_s26 = sld [smem:[#allocation45_spill]] }
  0x6a   : > { %s4237_s5 = scalar_lea.hbm %s5930_s26, 16 }
  0x6b   : > { %p4238_p7 = scmp.ne.s32.totalorder %s5930_s26, %s4237_s5  ;;  %p4244_p1 = scmp.lt.u32.totalorder %s4237_s5, %s5930_s26 }
  0x6d   : > { %p4240_p9 = pnand %p4238_p7, %p4960_p8 }
  0x6f   : > { %p4241_p4 = pneg %p4240_p9 }
  0x71   : > { %p4246_p3 = pnand %p4244_p1, %p4241_p4 }
  0x73   : > { %4249 = shalt.err (!%p4246_p3)
}
  0x74   : > { %s4250_s30 = scalar_lea.vmem %s4950_s10, 16  ;;  %s4257_s22 = scalar_lea.vmem %s4950_s10, 32 }
  0x75   : > { %p4251_p10 = scmp.ne.s32.totalorder %s4950_s10, %s4250_s30  ;;  %p4258_p13 = scmp.lt.s32.totalorder %s4950_s10, %s4950_s10 }
  0x76   : > { %p4259_p0 = scmp.lt.s32.totalorder %s4257_s22, %s4250_s30 }
  0x77   : > { %p4253_p11 = pnand %p4251_p10, %p4960_p8 }
  0x78   : > { %p4260_p2 = por %p4259_p0, %p4258_p13 }
  0x79   : > { %p4254_p12 = pneg %p4253_p11 }
  0x7b   : > { %p4261_p5 = pnand %p4260_p2, %p4254_p12 }
  0x7d   : > { %4264 = shalt.err (!%p4261_p5)
}
  0x7e   : > { %3963 = dma.hbm_to_vmem [thread:$0]  (!%p4946_p6), %s5930_s26, 16, %s4950_s10, [#allocation12]  }
  0x7f   : > { %s4742_s23 = smov [#allocation14]   ;;  %s4743_s21 = smov [#allocation17]  }
  0x80   : > { %s711_s25 = sshll.u32 %s4742_s23, 4  ;;  %s739_s5 = sshll.u32 %s4743_s21, 4  ;;  %s712_s25 = int_to_ptr.vmem [resolvable:$true] %s711_s25  ;;  %s740_s5 = int_to_ptr.vmem [resolvable:$true] %s739_s5 }
  0x81   : > { %s5931_s19 = sld [smem:[#allocation48_spill]] }
  0x87   : > { %s4265_s30 = scalar_lea.hbm %s5931_s19, 256 }
  0x88   : > { %p4266_p7 = scmp.ne.s32.totalorder %s5931_s19, %s4265_s30  ;;  %p4272_p1 = scmp.lt.u32.totalorder %s4265_s30, %s5931_s19 }
  0x8a   : > { %p4268_p9 = pnand %p4266_p7, %p4960_p8 }
  0x8c   : > { %p4269_p4 = pneg %p4268_p9 }
  0x8e   : > { %p4274_p3 = pnand %p4272_p1, %p4269_p4 }
  0x90   : > { %4277 = shalt.err (!%p4274_p3)
}
  0x91   : > { %s4278_s10 = scalar_lea.vmem %s712_s25, 256  ;;  %p4286_p13 = scmp.lt.s32.totalorder %s712_s25, %s712_s25 }
  0x92   : > { %p4279_p10 = scmp.ne.s32.totalorder %s712_s25, %s4278_s10  ;;  %p4287_p0 = scmp.lt.s32.totalorder %s4278_s10, %s4278_s10 }
  0x94   : > { %p4281_p11 = pnand %p4279_p10, %p4960_p8  ;;  %p4288_p2 = por %p4287_p0, %p4286_p13 }
  0x96   : > { %p4282_p12 = pneg %p4281_p11 }
  0x98   : > { %p4289_p5 = pnand %p4288_p2, %p4282_p12 }
  0x9a   : > { %4292 = shalt.err (!%p4289_p5)
}
  0x9b   : > { %s5932_s18 = smov 4   ;;  %s5933_s8 = smov 64  }
  0x9c   : > { %3969 = dma.hbm_to_vmem [thread:$0]  (!%p4946_p6), %s5931_s19, 256, %s712_s25, [#allocation15], %s5933_s8, %s5933_s8, %s5932_s18  }
  0x9d   : > { %s5934_s11 = sld [smem:[#allocation51_spill]] }
  0xa3   : > { %s4293_s4 = scalar_lea.hbm %s5934_s11, 16 }
  0xa4   : > { %p4294_p7 = scmp.ne.s32.totalorder %s5934_s11, %s4293_s4  ;;  %p4300_p1 = scmp.lt.u32.totalorder %s4293_s4, %s5934_s11 }
  0xa6   : > { %p4296_p9 = pnand %p4294_p7, %p4960_p8 }
  0xa8   : > { %p4297_p4 = pneg %p4296_p9 }
  0xaa   : > { %p4302_p3 = pnand %p4300_p1, %p4297_p4 }
  0xac   : > { %4305 = shalt.err (!%p4302_p3)
}
  0xad   : > { %s4306_s1 = scalar_lea.vmem %s740_s5, 16  ;;  %s4313_s25 = scalar_lea.vmem %s740_s5, 32 }
  0xae   : > { %p4307_p10 = scmp.ne.s32.totalorder %s740_s5, %s4306_s1  ;;  %p4314_p13 = scmp.lt.s32.totalorder %s740_s5, %s740_s5 }
  0xaf   : > { %p4315_p0 = scmp.lt.s32.totalorder %s4313_s25, %s4306_s1 }
  0xb0   : > { %p4309_p11 = pnand %p4307_p10, %p4960_p8 }
  0xb1   : > { %p4316_p2 = por %p4315_p0, %p4314_p13 }
  0xb2   : > { %p4310_p12 = pneg %p4309_p11 }
  0xb4   : > { %p4317_p5 = pnand %p4316_p2, %p4310_p12 }
  0xb6   : > { %4320 = shalt.err (!%p4317_p5)
}
  0xb7   : > { %3975 = dma.hbm_to_vmem [thread:$0]  (!%p4946_p6), %s5934_s11, 16, %s740_s5, [#allocation18]  }
  0xb8   : > { %s4744_s6 = smov [#allocation20]   ;;  %s4745_s30 = smov [#allocation23]  }
  0xb9   : > { %s761_s4 = sshll.u32 %s4744_s6, 4  ;;  %s785_s22 = sshll.u32 %s4745_s30, 4  ;;  %s762_s4 = int_to_ptr.vmem [resolvable:$true] %s761_s4  ;;  %s786_s22 = int_to_ptr.vmem [resolvable:$true] %s785_s22 }
  0xba   : > { %s5935_s13 = sld [smem:[#allocation53_spill]] }
  0xc0   : > { %s4321_s19 = scalar_lea.hbm %s5935_s13, 64 }
  0xc1   : > { %p4322_p7 = scmp.ne.s32.totalorder %s5935_s13, %s4321_s19  ;;  %p4328_p1 = scmp.lt.u32.totalorder %s4321_s19, %s5935_s13 }
  0xc3   : > { %p4324_p9 = pnand %p4322_p7, %p4960_p8 }
  0xc5   : > { %p4325_p4 = pneg %p4324_p9 }
  0xc7   : > { %p4330_p3 = pnand %p4328_p1, %p4325_p4 }
  0xc9   : > { %4333 = shalt.err (!%p4330_p3)
}
  0xca   : > { %s4334_s5 = scalar_lea.vmem %s762_s4, 64  ;;  %p4342_p13 = scmp.lt.s32.totalorder %s762_s4, %s762_s4 }
  0xcb   : > { %p4335_p10 = scmp.ne.s32.totalorder %s762_s4, %s4334_s5  ;;  %p4343_p0 = scmp.lt.s32.totalorder %s4334_s5, %s4334_s5 }
  0xcd   : > { %p4337_p11 = pnand %p4335_p10, %p4960_p8  ;;  %p4344_p2 = por %p4343_p0, %p4342_p13 }
  0xcf   : > { %p4338_p12 = pneg %p4337_p11 }
  0xd1   : > { %p4345_p5 = pnand %p4344_p2, %p4338_p12 }
  0xd3   : > { %4348 = shalt.err (!%p4345_p5)
}
  0xd4   : > { %3981 = dma.hbm_to_vmem [thread:$0]  (!%p4946_p6), %s5935_s13, 64, %s762_s4, [#allocation21]  }
  0xd5   : > { %s5936_s16 = sld [smem:[#allocation55_spill]] }
  0xdb   : > { %s4349_s30 = scalar_lea.hbm %s5936_s16, 1536 }
  0xdc   : > { %p4350_p7 = scmp.ne.s32.totalorder %s5936_s16, %s4349_s30  ;;  %p4356_p1 = scmp.lt.u32.totalorder %s4349_s30, %s5936_s16 }
  0xde   : > { %p4352_p9 = pnand %p4350_p7, %p4960_p8 }
  0xe0   : > { %p4353_p4 = pneg %p4352_p9 }
  0xe2   : > { %p4358_p3 = pnand %p4356_p1, %p4353_p4 }
  0xe4   : > { %4361 = shalt.err (!%p4358_p3)
}
  0xe5   : > { %s4362_s23 = scalar_lea.vmem %s786_s22, 1536  ;;  %p4370_p13 = scmp.lt.s32.totalorder %s786_s22, %s786_s22 }
  0xe6   : > { %p4363_p10 = scmp.ne.s32.totalorder %s786_s22, %s4362_s23  ;;  %p4371_p0 = scmp.lt.s32.totalorder %s4362_s23, %s4362_s23 }
  0xe8   : > { %p4365_p11 = pnand %p4363_p10, %p4960_p8  ;;  %p4372_p2 = por %p4371_p0, %p4370_p13 }
  0xea   : > { %p4366_p12 = pneg %p4365_p11 }
  0xec   : > { %p4373_p5 = pnand %p4372_p2, %p4366_p12 }
  0xee   : > { %4376 = shalt.err (!%p4373_p5)
}
  0xef   : > { %3987 = dma.hbm_to_vmem [thread:$0]  (!%p4946_p6), %s5936_s16, 1536, %s786_s22, [#allocation24], %s5933_s8, %s5933_s8, %s5932_s18  }
  0xf0   : > { %s4746_s21 = smov [#allocation10]   ;;  %s4747_s19 = smov [#allocation13]  }
  0xf1   : > { %s676_s6 = sshll.u32 %s4746_s21, 4  ;;  %s701_s26 = sshll.u32 %s4747_s19, 4  ;;  %s677_s6 = int_to_ptr.vmem [resolvable:$true] %s676_s6  ;;  %s702_s26 = int_to_ptr.vmem [resolvable:$true] %s701_s26 }
  0xf2   : > { %s5937_s10 = sld [smem:[#allocation44_spill]] }
  0xf8   : > { %s4377_s1 = scalar_lea.hbm %s5937_s10, 16 }
  0xf9   : > { %p4378_p7 = scmp.ne.s32.totalorder %s5937_s10, %s4377_s1  ;;  %p4384_p1 = scmp.lt.u32.totalorder %s4377_s1, %s5937_s10 }
  0xfb   : > { %p4380_p9 = pnand %p4378_p7, %p4960_p8 }
  0xfd   : > { %p4381_p4 = pneg %p4380_p9 }
  0xff   : > { %p4386_p3 = pnand %p4384_p1, %p4381_p4 }
 0x101   : > { %4389 = shalt.err (!%p4386_p3)
}
 0x102   : > { %s4390_s22 = scalar_lea.vmem %s677_s6, 16  ;;  %s4397_s5 = scalar_lea.vmem %s677_s6, 32 }
 0x103   : > { %p4391_p10 = scmp.ne.s32.totalorder %s677_s6, %s4390_s22  ;;  %p4398_p13 = scmp.lt.s32.totalorder %s677_s6, %s677_s6 }
 0x104   : > { %p4399_p0 = scmp.lt.s32.totalorder %s4397_s5, %s4390_s22 }
 0x105   : > { %p4393_p11 = pnand %p4391_p10, %p4960_p8 }
 0x106   : > { %p4400_p2 = por %p4399_p0, %p4398_p13 }
 0x107   : > { %p4394_p12 = pneg %p4393_p11 }
 0x109   : > { %p4401_p5 = pnand %p4400_p2, %p4394_p12 }
 0x10b   : > { %4404 = shalt.err (!%p4401_p5)
}
 0x10c   : > { %3960 = dma.hbm_to_vmem [thread:$0]  (!%p4946_p6), %s5937_s10, 16, %s677_s6, [#allocation9]  }
 0x10d   : > { %s5938_s20 = sld [smem:[#allocation47_spill]] }
 0x113   : > { %s4405_s1 = scalar_lea.hbm %s5938_s20, 16 }
 0x114   : > { %p4406_p7 = scmp.ne.s32.totalorder %s5938_s20, %s4405_s1  ;;  %p4412_p1 = scmp.lt.u32.totalorder %s4405_s1, %s5938_s20 }
 0x116   : > { %p4408_p9 = pnand %p4406_p7, %p4960_p8 }
 0x118   : > { %p4409_p4 = pneg %p4408_p9 }
 0x11a   : > { %p4414_p3 = pnand %p4412_p1, %p4409_p4 }
 0x11c   : > { %4417 = shalt.err (!%p4414_p3)
}
 0x11d   : > { %s4418_s5 = scalar_lea.vmem %s702_s26, 16  ;;  %s4425_s6 = scalar_lea.vmem %s702_s26, 32 }
 0x11e   : > { %p4419_p10 = scmp.ne.s32.totalorder %s702_s26, %s4418_s5  ;;  %p4426_p13 = scmp.lt.s32.totalorder %s702_s26, %s702_s26 }
 0x11f   : > { %p4427_p0 = scmp.lt.s32.totalorder %s4425_s6, %s4418_s5 }
 0x120   : > { %p4421_p11 = pnand %p4419_p10, %p4960_p8 }
 0x121   : > { %p4428_p2 = por %p4427_p0, %p4426_p13 }
 0x122   : > { %p4422_p12 = pneg %p4421_p11 }
 0x124   : > { %p4429_p5 = pnand %p4428_p2, %p4422_p12 }
 0x126   : > { %4432 = shalt.err (!%p4429_p5)
}
 0x127   : > { %3966 = dma.hbm_to_vmem [thread:$0]  (!%p4946_p6), %s5938_s20, 16, %s702_s26, [#allocation12]  }
 0x128   : > { %s4748_s11 = smov [#allocation16]   ;;  %s4749_s1 = smov [#allocation19]  }
 0x129   : > { %s725_s30 = sshll.u32 %s4748_s11, 4  ;;  %s750_s25 = sshll.u32 %s4749_s1, 4  ;;  %s726_s30 = int_to_ptr.vmem [resolvable:$true] %s725_s30  ;;  %s751_s25 = int_to_ptr.vmem [resolvable:$true] %s750_s25 }
 0x12a   : > { %s5939_s22 = sld [smem:[#allocation49_spill]] }
 0x130   : > { %s4433_s10 = scalar_lea.hbm %s5939_s22, 16 }
 0x131   : > { %p4434_p7 = scmp.ne.s32.totalorder %s5939_s22, %s4433_s10  ;;  %p4440_p1 = scmp.lt.u32.totalorder %s4433_s10, %s5939_s22 }
 0x133   : > { %p4436_p9 = pnand %p4434_p7, %p4960_p8 }
 0x135   : > { %p4437_p4 = pneg %p4436_p9 }
 0x137   : > { %p4442_p3 = pnand %p4440_p1, %p4437_p4 }
 0x139   : > { %4445 = shalt.err (!%p4442_p3)
}
 0x13a   : > { %s4446_s26 = scalar_lea.vmem %s726_s30, 16  ;;  %s4453_s19 = scalar_lea.vmem %s726_s30, 32 }
 0x13b   : > { %p4447_p10 = scmp.ne.s32.totalorder %s726_s30, %s4446_s26  ;;  %p4454_p13 = scmp.lt.s32.totalorder %s726_s30, %s726_s30 }
 0x13c   : > { %p4455_p0 = scmp.lt.s32.totalorder %s4453_s19, %s4446_s26 }
 0x13d   : > { %p4449_p11 = pnand %p4447_p10, %p4960_p8 }
 0x13e   : > { %p4456_p2 = por %p4455_p0, %p4454_p13 }
 0x13f   : > { %p4450_p12 = pneg %p4449_p11 }
 0x141   : > { %p4457_p5 = pnand %p4456_p2, %p4450_p12 }
 0x143   : > { %4460 = shalt.err (!%p4457_p5)
}
 0x144   : > { %3972 = dma.hbm_to_vmem [thread:$0]  (!%p4946_p6), %s5939_s22, 16, %s726_s30, [#allocation15]  }
 0x145   : > { %s5940_s12 = sld [smem:[#allocation52_spill]] }
 0x14b   : > { %s4461_s23 = scalar_lea.hbm %s5940_s12, 64 }
 0x14c   : > { %p4462_p7 = scmp.ne.s32.totalorder %s5940_s12, %s4461_s23  ;;  %p4468_p1 = scmp.lt.u32.totalorder %s4461_s23, %s5940_s12 }
 0x14e   : > { %p4464_p9 = pnand %p4462_p7, %p4960_p8 }
 0x150   : > { %p4465_p4 = pneg %p4464_p9 }
 0x152   : > { %p4470_p3 = pnand %p4468_p1, %p4465_p4 }
 0x154   : > { %4473 = shalt.err (!%p4470_p3)
}
 0x155   : > { %s4474_s26 = scalar_lea.vmem %s751_s25, 64  ;;  %p4482_p13 = scmp.lt.s32.totalorder %s751_s25, %s751_s25 }
 0x156   : > { %p4475_p10 = scmp.ne.s32.totalorder %s751_s25, %s4474_s26  ;;  %p4483_p0 = scmp.lt.s32.totalorder %s4474_s26, %s4474_s26 }
 0x158   : > { %p4477_p11 = pnand %p4475_p10, %p4960_p8  ;;  %p4484_p2 = por %p4483_p0, %p4482_p13 }
 0x15a   : > { %p4478_p12 = pneg %p4477_p11 }
 0x15c   : > { %p4485_p5 = pnand %p4484_p2, %p4478_p12 }
 0x15e   : > { %4488 = shalt.err (!%p4485_p5)
}
 0x15f   : > { %3978 = dma.hbm_to_vmem [thread:$0]  (!%p4946_p6), %s5940_s12, 64, %s751_s25, [#allocation18]  }
 0x160   : > { %s4750_s11 = smov [#allocation22]   ;;  %s4751_s13 = smov [#allocation25]  }
 0x161   : > { %s775_s1 = sshll.u32 %s4750_s11, 4  ;;  %s799_s10 = sshll.u32 %s4751_s13, 4  ;;  %s776_s1 = int_to_ptr.vmem [resolvable:$true] %s775_s1  ;;  %s800_s10 = int_to_ptr.vmem [resolvable:$true] %s799_s10 }
 0x162   : > { %s5941_s15 = sld [smem:[#allocation54_spill]] }
 0x168   : > { %s4489_s5 = scalar_lea.hbm %s5941_s15, 16 }
 0x169   : > { %p4490_p7 = scmp.ne.s32.totalorder %s5941_s15, %s4489_s5  ;;  %p4496_p1 = scmp.lt.u32.totalorder %s4489_s5, %s5941_s15 }
 0x16b   : > { %p4492_p9 = pnand %p4490_p7, %p4960_p8 }
 0x16d   : > { %p4493_p4 = pneg %p4492_p9 }
 0x16f   : > { %p4498_p3 = pnand %p4496_p1, %p4493_p4 }
 0x171   : > { %4501 = shalt.err (!%p4498_p3)
}
 0x172   : > { %s4502_s25 = scalar_lea.vmem %s776_s1, 16  ;;  %s4509_s19 = scalar_lea.vmem %s776_s1, 32 }
 0x173   : > { %p4503_p10 = scmp.ne.s32.totalorder %s776_s1, %s4502_s25  ;;  %p4510_p13 = scmp.lt.s32.totalorder %s776_s1, %s776_s1 }
 0x174   : > { %p4511_p0 = scmp.lt.s32.totalorder %s4509_s19, %s4502_s25 }
 0x175   : > { %p4505_p11 = pnand %p4503_p10, %p4960_p8 }
 0x176   : > { %p4512_p2 = por %p4511_p0, %p4510_p13 }
 0x177   : > { %p4506_p12 = pneg %p4505_p11 }
 0x179   : > { %p4513_p5 = pnand %p4512_p2, %p4506_p12 }
 0x17b   : > { %4516 = shalt.err (!%p4513_p5)
}
 0x17c   : > { %3984 = dma.hbm_to_vmem [thread:$0]  (!%p4946_p6), %s5941_s15, 16, %s776_s1, [#allocation21]  }
 0x17d   : > { %s5942_s17 = sld [smem:[#allocation56_spill]] }
 0x183   : > { %s4517_s5 = scalar_lea.hbm %s5942_s17, 16 }
 0x184   : > { %p4518_p7 = scmp.ne.s32.totalorder %s5942_s17, %s4517_s5  ;;  %p4524_p1 = scmp.lt.u32.totalorder %s4517_s5, %s5942_s17 }
 0x186   : > { %p4520_p9 = pnand %p4518_p7, %p4960_p8 }
 0x188   : > { %p4521_p4 = pneg %p4520_p9 }
 0x18a   : > { %p4526_p3 = pnand %p4524_p1, %p4521_p4 }
 0x18c   : > { %4529 = shalt.err (!%p4526_p3)
}
 0x18d   : > { %s4530_s25 = scalar_lea.vmem %s800_s10, 16  ;;  %s4537_s1 = scalar_lea.vmem %s800_s10, 32 }
 0x18e   : > { %p4531_p10 = scmp.ne.s32.totalorder %s800_s10, %s4530_s25  ;;  %p4538_p13 = scmp.lt.s32.totalorder %s800_s10, %s800_s10 }
 0x18f   : > { %p4539_p0 = scmp.lt.s32.totalorder %s4537_s1, %s4530_s25 }
 0x190   : > { %p4533_p11 = pnand %p4531_p10, %p4960_p8 }
 0x191   : > { %p4540_p2 = por %p4539_p0, %p4538_p13 }
 0x192   : > { %p4534_p12 = pneg %p4533_p11 }
 0x194   : > { %p4541_p5 = pnand %p4540_p2, %p4534_p12 }
 0x196   : > { %4544 = shalt.err (!%p4541_p5)
}
 0x197   : > { %3990 = dma.hbm_to_vmem [thread:$0]  (!%p4946_p6), %s5942_s17, 16, %s800_s10, [#allocation24]  }
 0x198   : > { %s4752_s13 = smov [#allocation26]   ;;  %s4545_s6 = scalar_lea.hbm %s5868_s24, 1536 }
 0x199   : > { %s827_s23 = sshll.u32 %s4752_s13, 4  ;;  %p4546_p7 = scmp.ne.s32.totalorder %s5868_s24, %s4545_s6  ;;  %s828_s23 = int_to_ptr.vmem [resolvable:$true] %s827_s23 }
 0x19a   : > { %p4552_p1 = scmp.lt.u32.totalorder %s4545_s6, %s5868_s24 }
 0x19b   : > { %p4548_p9 = pnand %p4546_p7, %p4960_p8 }
 0x19d   : > { %p4549_p4 = pneg %p4548_p9 }
 0x19f   : > { %p4554_p3 = pnand %p4552_p1, %p4549_p4 }
 0x1a1   : > { %4557 = shalt.err (!%p4554_p3)
}
 0x1a2   : > { %s4558_s10 = scalar_lea.vmem %s828_s23, 1536  ;;  %p4566_p13 = scmp.lt.s32.totalorder %s828_s23, %s828_s23 }
 0x1a3   : > { %p4559_p10 = scmp.ne.s32.totalorder %s828_s23, %s4558_s10  ;;  %p4567_p0 = scmp.lt.s32.totalorder %s4558_s10, %s4558_s10 }
 0x1a5   : > { %p4561_p11 = pnand %p4559_p10, %p4960_p8  ;;  %p4568_p2 = por %p4567_p0, %p4566_p13 }
 0x1a7   : > { %p4562_p12 = pneg %p4561_p11 }
 0x1a9   : > { %p4569_p5 = pnand %p4568_p2, %p4562_p12 }
 0x1ab   : > { %4572 = shalt.err (!%p4569_p5)
}
 0x1ac   : > { %3993 = dma.hbm_to_vmem [thread:$0]  (!%p4946_p6), %s5868_s24, 1536, %s828_s23, [#allocation27], %s5933_s8, %s5933_s8, %s5932_s18  }
 0x1ad   : > { %s3443_s2 = sadd.s32 4294967294, %s4735_s28   ;;  %s5235_s9 = sadd.s32 1, %s4735_s28  }
 0x1ae   : > { %s56_s11 = ssub.s32 %s4735_s28, %s5235_s9  ;;  %s59_s13 = sadd.s32 1, %s4731_s7 }
 0x1af   : > { %p57_p8 = scmp.eq.s32.totalorder %s56_s11, 0  ;;  %p66_p7 = scmp.ne.s32.totalorder %s4731_s7, %s4727_s3 }
 0x1b0   : > { %p67_p9 = scmp.eq.s32.totalorder %s4735_s28, 0  ;;  %p72_p4 = scmp.ne.s32.totalorder %s4727_s3, %s4723_s27 }
 0x1b1   : > { %s5246_s4 = scalar_select %p57_p8, %s4731_s7, %s59_s13  }
 0x1b2   : > { %p5248_p1 = por %p67_p9, %p66_p7  ;;  %p5944_p3 = scmp.eq.s32.totalorder %s4930_s29, 0 }
 0x1b3   : > { %p626_p10 = scmp.eq.s32.totalorder %s4930_s29, 1  ;;  %p632_p11 = scmp.eq.s32.totalorder %s3443_s2, 1 }
 0x1b4   : > { %p5254_p6 = por %p5944_p3, %p72_p4  ;;  %p4019_p12 = scmp.lt.s32.totalorder %s4735_s28, 2 }
 0x1b5   : > { %s5261_s8 = sand.u32 1, %s4731_s7   ;;  %p5263_p13 = por %p626_p10, %p66_p7 }
 0x1b6   : > { %p5267_p0 = por %p632_p11, %p72_p4  ;;  %s3460_s21 = sshll.u32 %s5261_s8, 3 }
 0x1b7   : > { %s5946_s23 = scalar_select %p5263_p13, 1, 0 }
 0x1b8   : > { %s5947_s6 = scalar_select %p5267_p0, 1, 0 }
 0x1b9   : > { %s3461_s26 = sshll.u32 %s4735_s28, 7  ;;  %s5948_s10 = sld [smem:[#allocation40_spill]] }
 0x1ba   : > { %s848_s19 = scalar_lea.vmem [#allocation2], %s3460_s21  ;;  %p5282_p2 = pnand %p4019_p12, %p5248_p1 }
 0x1bb   : > { %s855_s2 = sshll.u32 %s848_s19, 4  ;;  %s3462_s13 = sshll.u32 %s5261_s8, 4  ;;  %s5278_s2 = int_to_ptr.vmem [resolvable:$true] %s855_s2 }
 0x1bc   : > { %s845_s30 = scalar_lea.sflag [#allocation3], %s5261_s8  ;;  %p4575_p8 = pneg %p5282_p2 }
 0x1bf   : > { %s5276_s1 = scalar_lea.hbm %s5948_s10, %s3461_s26  ;;  %s4578_s5 = scalar_lea.hbm %s5948_s10, 256 }
 0x1c0   : > { %s4573_s26 = scalar_lea.hbm %s5276_s1, 128  ;;  %p4579_p4 = scmp.lt.u32.totalorder %s5276_s1, %s5948_s10 }
 0x1c1   : > { %p4574_p5 = scmp.ne.s32.totalorder %s5276_s1, %s4573_s26  ;;  %p4580_p1 = scmp.lt.u32.totalorder %s4578_s5, %s4573_s26 }
 0x1c2   : > { %p4582_p10 = scmp.lt.u32.totalorder %s4573_s26, %s5276_s1 }
 0x1c3   : > { %p4576_p7 = pnand %p4575_p8, %p4574_p5  ;;  %p4581_p3 = por %p4580_p1, %p4579_p4 }
 0x1c5   : > { %p4577_p9 = pneg %p4576_p7  ;;  %p4583_p11 = por %p4582_p10, %p4581_p3 }
 0x1c7   : > { %p4584_p12 = pnand %p4583_p11, %p4577_p9 }
 0x1c9   : > { %4587 = shalt.err (!%p4584_p12)
}
 0x1ca   : > { %s4588_s12 = scalar_lea.vmem %s5278_s2, 128  ;;  %s4753_s21 = smov [#allocation2]  }
 0x1cb   : > { %p4589_p5 = scmp.ne.s32.totalorder %s5278_s2, %s4588_s12  ;;  %s4593_s25 = sshll.u32 %s4753_s21, 4  ;;  %s4594_s25 = int_to_ptr.vmem [resolvable:$false] %s4593_s25 }
 0x1cc   : > { %s4595_s15 = scalar_lea.vmem %s4594_s25, 256  ;;  %p4596_p13 = scmp.lt.s32.totalorder %s5278_s2, %s4594_s25 }
 0x1cd   : > { %p4591_p7 = pnand %p4589_p5, %p4575_p8  ;;  %p4597_p4 = scmp.lt.s32.totalorder %s4595_s15, %s4588_s12 }
 0x1cf   : > { %p4592_p0 = pneg %p4591_p7  ;;  %p4598_p1 = por %p4597_p4, %p4596_p13 }
 0x1d1   : > { %p4599_p3 = pnand %p4598_p1, %p4592_p0 }
 0x1d3   : > { %4602 = shalt.err (!%p4599_p3)
}
 0x1d4   : > { %3997 = dma.hbm_to_vmem [thread:$0]  (!%p5282_p2), %s5276_s1, 128, %s5278_s2, %s845_s30  }
 0x1d5   : > { %s866_s26 = scalar_lea.vmem [#allocation5], %s3462_s13  ;;  %s3570_s19 = sshll.u32 %s4735_s28, 8 }
 0x1d6   : > { %s873_s5 = sshll.u32 %s866_s26, 4  ;;  %s5950_s25 = sld [smem:[#allocation41_spill]]  ;;  %s5316_s5 = int_to_ptr.vmem [resolvable:$true] %s873_s5 }
 0x1d7   : > { %s5951_s10 = sand.u32 1, %s4735_s28  }
 0x1d8   : > { %s5326_s16 = scalar_lea.sflag [#allocation6], %s5951_s10 }
 0x1dc   : > { %s5322_s15 = scalar_lea.hbm %s5950_s25, %s3570_s19  ;;  %s4608_s2 = scalar_lea.hbm %s5950_s25, 512 }
 0x1dd   : > { %s4603_s17 = scalar_lea.hbm %s5322_s15, 256  ;;  %p4609_p10 = scmp.lt.u32.totalorder %s5322_s15, %s5950_s25 }
 0x1de   : > { %p4604_p13 = scmp.ne.s32.totalorder %s5322_s15, %s4603_s17  ;;  %p4610_p11 = scmp.lt.u32.totalorder %s4608_s2, %s4603_s17 }
 0x1df   : > { %p4612_p5 = scmp.lt.u32.totalorder %s4603_s17, %s5322_s15 }
 0x1e0   : > { %p4606_p0 = pnand %p4604_p13, %p4575_p8  ;;  %p4611_p12 = por %p4610_p11, %p4609_p10 }
 0x1e2   : > { %p4607_p9 = pneg %p4606_p0  ;;  %p4613_p7 = por %p4612_p5, %p4611_p12 }
 0x1e4   : > { %p4614_p4 = pnand %p4613_p7, %p4607_p9 }
 0x1e6   : > { %4617 = shalt.err (!%p4614_p4)
}
 0x1e7   : > { %s4618_s10 = scalar_lea.vmem %s5316_s5, 256  ;;  %s4754_s26 = smov [#allocation5]  }
 0x1e8   : > { %p4619_p1 = scmp.ne.s32.totalorder %s5316_s5, %s4618_s10  ;;  %s4623_s19 = sshll.u32 %s4754_s26, 4  ;;  %s4624_s19 = int_to_ptr.vmem [resolvable:$false] %s4623_s19 }
 0x1e9   : > { %s4625_s21 = scalar_lea.vmem %s4624_s19, 512  ;;  %p4626_p0 = scmp.lt.s32.totalorder %s5316_s5, %s4624_s19 }
 0x1ea   : > { %p4621_p3 = pnand %p4619_p1, %p4575_p8  ;;  %p4627_p10 = scmp.lt.s32.totalorder %s4625_s21, %s4618_s10 }
 0x1ec   : > { %p4622_p13 = pneg %p4621_p3  ;;  %p4628_p11 = por %p4627_p10, %p4626_p0 }
 0x1ee   : > { %p4629_p12 = pnand %p4628_p11, %p4622_p13 }
 0x1f0   : > { %4632 = shalt.err (!%p4629_p12)
}
 0x1f1   : > { %s4755_s17 = smov 128   ;;  %s4756_s12 = smov 8  }
 0x1f2   : > { %4000 = dma.hbm_to_vmem [thread:$0]  (!%p5282_p2), %s5322_s15, 256, %s5316_s5, %s5326_s16, %s4755_s17, %s4755_s17, %s4756_s12  }
 0x1f3   : > { %p5952_p8 = scmp.ne.s32.totalorder %s5925_s0, 0 }
 0x1f4   : > { %s5355_s8 = sand.u32 (!%p5952_p8), 1, %s4727_s3  }
 0x1f5   : > { %885 = sbr.rel (%p5952_p8) target bundleno = 5892 (0x1704), region = 124  ;;  %s5898_s1 = sshll.u32 (!%p5952_p8), %s5355_s8, 3 }
 0x1f6   : > { %s888_s2 = scalar_lea.sflag (!%p5952_p8), [#allocation3], %s5355_s8  ;;  %s5361_s13 = scalar_lea.vmem (!%p5952_p8), [#allocation2], %s5898_s1 }
 0x1fc   : > { %4678 = dma.done.wait (%p5254_p6), %s888_s2, 128  }
 0x1fd   : > { %4680 = vsyncadd (%p5254_p6), %s888_s2, 4294967168  ;;  %s896_s16 = sand.u32 1, %s4930_s29   ;;  %s3467_s0 = sshll.u32 %s5355_s8, 4 }
 0x1fe   : > { %s897_s11 = scalar_lea.sflag [#allocation6], %s896_s16  ;;  %s900_s5 = scalar_lea.vmem [#allocation5], %s3467_s0 }
 0x1ff   : > { %4682 = dma.done.wait (%p5254_p6), %s897_s11, 256  }
 0x200   : > { %4684 = vsyncadd (%p5254_p6), %s897_s11, 4294967040  ;;  %p5953_p2 = scmp.eq.s32.totalorder %s4930_s29, 0 }
 0x202   : > { %4686 = dma.done.wait (%p5953_p2), [#allocation6], 128   ;;  %p5954_p9 = pmov %p5953_p2 }
 0x203   : > { %p5955_p5 = pmov %p5953_p2 }
 0x204   : > { %4688 = vsyncadd (%p5954_p9), [#allocation6], 4294967168 }
 0x205   : > { %4690 = dma.done.wait (%p5955_p5), [#allocation9], 144   ;;  %p5956_p7 = pmov %p5953_p2 }
 0x206   : > { %p5957_p4 = pmov %p5953_p2 }
 0x207   : > { %4692 = vsyncadd (%p5956_p7), [#allocation9], 4294967152 }
 0x208   : > { %4694 = dma.done.wait (%p5957_p4), [#allocation12], 32   ;;  %p5958_p1 = pmov %p5953_p2 }
 0x20a   : > { %4696 = vsyncadd (%p5958_p1), [#allocation12], 4294967264  ;;  %p5959_p6 = pmov %p5958_p1 }
 0x20b   : > { %p5960_p3 = pmov %p5958_p1 }
 0x20c   : > { %4698 = dma.done.wait (%p5959_p6), [#allocation15], 272  }
 0x20d   : > { %4700 = vsyncadd (%p5960_p3), [#allocation15], 4294967024  ;;  %p5961_p13 = pmov %p5958_p1 }
 0x20e   : > { %p5962_p0 = pmov %p5958_p1 }
 0x20f   : > { %4702 = dma.done.wait (%p5961_p13), [#allocation18], 80  }
 0x210   : > { %4704 = vsyncadd (%p5962_p0), [#allocation18], 4294967216  ;;  %p5963_p10 = pmov %p5962_p0 }
 0x211   : > { %p5964_p11 = pmov %p5962_p0 }
 0x212   : > { %4706 = dma.done.wait (%p5963_p10), [#allocation21], 80  }
 0x213   : > { %4708 = vsyncadd (%p5964_p11), [#allocation21], 4294967216  ;;  %p5965_p12 = pmov %p5962_p0 }
 0x214   : > { %p5966_p8 = pmov %p5962_p0 }
 0x215   : > { %4710 = dma.done.wait (%p5965_p12), [#allocation24], 1552  }
 0x216   : > { %4712 = vsyncadd (%p5966_p8), [#allocation24], 4294965744  ;;  %p5967_p2 = pmov %p5962_p0 }
 0x217   : > { %p5968_p9 = pmov %p5962_p0 }
 0x218   : > { %4714 = dma.done.wait (%p5967_p2), [#allocation27], 1536  }
 0x219   : > { %4716 = vsyncadd (%p5968_p9), [#allocation27], 4294965760  ;;  %v4757_v0 = vmov 0.0   ;;  %vm4758_vm0 = vmmov 0   ;;  %vm1036_vm1 = vcmask 261120   ;;  %v1032_v1 = vld [vmem:[%s900_s5] sm:$0xff]  ;;  %v1286_v42 = vlaneseq }
 0x21a   : > { %3665 = vmatprep.subr.bf16.mxu0 %v4757_v0  ;;  %3669 = vmatprep.mubr.msk.bf16.mxu0 %vm4758_vm0, %v4757_v0  ;;  %v1033_v2 = vld [vmem:[%s900_s5 + $0x8] sm:$0xff]  ;;  %v1037_v3 = vsel %vm1036_vm1, %v1032_v1, 0.0  ;;  %s5969_s30 = sld [smem:[#allocation50_spill]]  ;;  %s5970_s17 = sld [smem:[#allocation46_spill]]  ;;  %v3483_v33 = vld [vmem:[#allocation10] ss:$0 sm:$0xff] }
 0x21b   : > { %3649 = vmatprep.subr.bf16.mxu1 %v4757_v0  ;;  %3653 = vmatprep.mubr.msk.bf16.mxu1 %vm4758_vm0, %v4757_v0  ;;  %v1040_v6 = vsel %vm1036_vm1, %v1033_v2, 0.0  ;;  %v1031_v7 = vld [vmem:[%s5361_s13] sm:$0xff]  ;;  %v5441_v45 = vshrl.u32 %v1286_v42, 7  ;;  %v3493_v47 = vld [vmem:[#allocation17] ss:$0 sm:$0xff]  ;;  %vm1303_vm2 = vcmask 64512  }
 0x21c   : > { %1038 = vadd.xlane.f32.xlu0 %v1037_v3  ;;  %v5421_v8 = vpack.c.bf16 %v1031_v7, %v1031_v7  ;;  %v3484_v37 = vld [vmem:[#allocation11] ss:$0 sm:$0xff]  ;;  %v4105_v41 = vld [vmem:[#allocation14] sm:$0xff]   ;;  %v4106_v44 = vld [vmem:[#allocation14 + $0x8] sm:$0xff]   ;;  %s4759_s16 = smov 1   ;;  %vm1354_vm3 = vcmask 7168  }
 0x21d   : > { %v1288_v46 = vsub.s32 0, %v5441_v45  ;;  %v5446_v48 = vld [vmem:[#allocation20] sm:$0xf]  ;;  %v3485_v55 = vld [vmem:[#allocation13] ss:$0 sm:$0xff]  ;;  %vm1359_vm4 = vcmask 1046528  }
 0x21e   : > { %v5448_v49 = vld [vmem:[#allocation8] sm:$0xff]   ;;  %v3489_v3 = vld [vmem:[#allocation16] ss:$0 sm:$0xff]  ;;  %s4760_s0 = smov 17   ;;  %s5899_s11 = smov 8   ;;  %vm1365_vm5 = vcmask 138240  }
 0x21f   : > { %v1295_v51 = vrot.slane %v5446_v48, %v1288_v46  ;;  %v1308_v52 = vsel %vm1303_vm2, %v5448_v49, 0  ;;  %v5463_v59 = vld [vmem:[#allocation19] sm:$0xf]  ;;  %s4762_s5 = smov 120   ;;  %s4763_s18 = smov 2   ;;  %vm1389_vm6 = vcmask 1040384  }
 0x220   : > { %v4101_v4 = vld [vmem:[%s5969_s30] sm:$0xff]   ;;  %v4102_v5 = vld [vmem:[%s5969_s30 + $0x8] sm:$0xff]   ;;  %1041 = vadd.xlane.f32.xlu0 %v1040_v6  ;;  %s4764_s15 = smov 4   ;;  %s4765_s10 = smov 3   ;;  %vm1391_vm7 = vcmask 1041408   ;;  %vm1393_vm8 = vcmask 1042432  }
 0x221   : > { %3666 = vmatpush3.bf16.msra.mxu0 %v4101_v4  ;;  %v4103_v19 = vld [vmem:[%s5970_s17] sm:$0xff]   ;;  %v4104_v20 = vld [vmem:[%s5970_s17 + $0x8] sm:$0xff]   ;;  %s4766_s26 = smov 5   ;;  %s4767_s19 = smov 6   ;;  %vm1395_vm9 = vcmask 1043456   ;;  %vm1397_vm10 = vcmask 1044480  }
 0x222   : > { %3667 = vmatprep.subr.bf16.mxu0 %v4757_v0  ;;  %3650 = vmatpush3.bf16.msra.mxu1 %v4103_v19  ;;  %s4768_s21 = smov 7   ;;  %vm1399_vm11 = vcmask 1045504   ;;  %vm1454_vm12 = vcmask 130048   ;;  %s4769_s12 = smov 16   ;;  %vm2213_vm13 = vcmask 195584  }
 0x223   : > { %3651 = vmatprep.subr.bf16.mxu1 %v4757_v0  ;;  %s4770_s2 = smov 112   ;;  %s4771_s1 = smov 24  }
 0x224   : > { %p5981_p7 = scmp.ne.s32.totalorder %s5946_s23, 0 }
 0x225   : > { %3668 = vmatpush3.bf16.msra.mxu0 %v4102_v5 }
 0x226   : > { %3679 = vmatprep.subr.bf16.mxu0 %v4757_v0  ;;  %3652 = vmatpush3.bf16.msra.mxu1 %v4104_v20  ;;  %v1512_v20 = vsub.s32 1, %v5441_v45 }
 0x227   : > { %3657 = vmatprep.subr.bf16.mxu1 %v4757_v0 }
 0x228   : > { %3670 = vmatmul.mubr.msk.bf16.vlgmr.msra.gmra.mrb[0].mxu0 %vm1036_vm1, %v5421_v8 }
 0x229   : > { %3681 = vmatprep.mubr.msk.bf16.mxu0 %vm4758_vm0, %v4757_v0 }
 0x2a9   : > { %v1039_v9 = vpop.xlane.xlu0 %1038 }
 0x2aa   : > { %v1044_v10 = vmul.f32 0.03125, %v1039_v9 }
 0x2ac   : > { %v1046_v11 = vsub.f32 %v1032_v1, %v1044_v10  ;;  %v1289_v1 = vrot.slane %v5463_v59, %v1288_v46 }
 0x2ad   : > { %v1042_v12 = vpop.xlane.xlu0 %1041 }
 0x2ae   : > { %v1045_v13 = vmul.f32 0.03125, %v1042_v12  ;;  %v1048_v14 = vmul.f32 %v1046_v11, %v1046_v11 }
 0x2b0   : > { %v1047_v15 = vsub.f32 %v1033_v2, %v1045_v13  ;;  %v1050_v16 = vsel %vm1036_vm1, %v1048_v14, 0.0 }
 0x2b1   : > { %1051 = vadd.xlane.f32.xlu1 %v1050_v16 }
 0x2b2   : > { %v1049_v17 = vmul.f32 %v1047_v15, %v1047_v15 }
 0x2b4   : > { %v1053_v18 = vsel %vm1036_vm1, %v1049_v17, 0.0 }
 0x2b5   : > { %1054 = vadd.xlane.f32.xlu1 %v1053_v18 }
 0x2fb   : > { %v1273_v21 = vpop.f32.mrb[0].mxu0 }
 0x2fc   : > { %v3671_v22 = vpop.f32.mrb[1].mxu0  ;;  %v5451_v50 = vadd.f32 %v3493_v47, %v1273_v21 }
 0x2fd   : > { %v1276_v23 = vpop.f32.mrb[2].mxu0 }
 0x2fe   : > { %v3672_v24 = vpop.f32.mrb[3].mxu0  ;;  %v1296_v53 = vadd.f32 %v1295_v51, %v5451_v50  ;;  %v1290_v6 = vadd.f32 %v1289_v1, %v5451_v50  ;;  %v1523_v23 = vrot.slane %v5446_v48, %v1512_v20 }
 0x300   : > { %v1297_v54 = vpack.c.bf16 %v1296_v53, %v1296_v53  ;;  %v1291_v13 = vpack.c.bf16 %v1290_v6, %v1290_v6 }
 0x33e   : > { %v1052_v25 = vpop.xlane.xlu1 %1051 }
 0x33f   : > { %v1056_v26 = vmul.f32 0.03125, %v1052_v25 }
 0x341   : > { %v1058_v27 = vadd.f32 1e-05, %v1056_v26 }
 0x342   : > { %v1055_v28 = vpop.xlane.xlu1 %1054 }
 0x343   : > { %4138 = vrsqrt.f32 %v1058_v27  ;;  %v1057_v29 = vmul.f32 0.03125, %v1055_v28 }
 0x345   : > { %v1059_v30 = vadd.f32 1e-05, %v1057_v29 }
 0x347   : > { %4140 = vrsqrt.f32 %v1059_v30 }
 0x34d   : > { %v4139_v31 = vpop.eup %4138 }
 0x34e   : > { %v1062_v32 = vmul.f32 %v4139_v31, %v1046_v11 }
 0x350   : > { %v1070_v36 = vmul.f32 %v3483_v33, %v1062_v32 }
 0x351   : > { %v4141_v34 = vpop.eup %4140 }
 0x352   : > { %v1063_v35 = vmul.f32 %v4141_v34, %v1047_v15  ;;  %v1078_v39 = vadd.f32 %v3484_v37, %v1070_v36 }
 0x354   : > { %v1071_v38 = vmul.f32 %v3483_v33, %v1063_v35 }
 0x356   : > { %v1079_v40 = vadd.f32 %v3484_v37, %v1071_v38 }
 0x358   : > { %v1080_v43 = vpack.c.bf16 %v1079_v40, %v1078_v39 }
 0x35a   : > { %3654 = vmatmul.mubr.msk.bf16.vlgmr.msra.gmra.mrb[0].mxu1 %vm1036_vm1, %v1080_v43 }
 0x35b   : > { %3658 = vmatpush3.bf16.msra.mxu1 %v4105_v41  ;;  %3661 = vmatprep.mubr.msk.bf16.mxu1 %vm4758_vm0, %v4757_v0 }
 0x35c   : > { %3659 = vmatprep.subr.bf16.mxu1 %v4757_v0 }
 0x35f   : > { %3660 = vmatpush3.bf16.msra.mxu1 %v4106_v44 }
 0x360   : > { %3673 = vmatprep.subr.bf16.mxu1 %v4757_v0 }
 0x362   : > { %3662 = vmatmul.mubr.msk.bf16.vlgmr.msra.gmra.mrb[4].mxu1 %vm1036_vm1, %v1080_v43 }
 0x363   : > { %3675 = vmatprep.mubr.msk.bf16.mxu1 %vm4758_vm0, %v4757_v0 }
 0x368   : > { %3674 = vmatpush3.bf16.xpose.msra.mxu1 %v1308_v52 }
 0x369   : > { %3685 = vmatprep.subr.bf16.mxu1 %v4757_v0 }
 0x36f   : > { %3676 = vmatmul.mubr.msk.bf16.vlgmr.msra.gmra.mrb[8].mxu1 %vm1303_vm2, %v1297_v54  ;;  %v1513_v54 = vrot.slane %v5463_v59, %v1512_v20 }
 0x370   : > { %3687 = vmatprep.mubr.msk.bf16.mxu1 %vm4758_vm0, %v4757_v0 }
 0x42d   : > { %v1142_v56 = vpop.f32.mrb[0].mxu1 }
 0x42e   : > { %v3655_v57 = vpop.f32.mrb[1].mxu1  ;;  %v1143_v60 = vadd.f32 %v3485_v55, %v1142_v56 }
 0x42f   : > { %v1145_v58 = vpop.f32.mrb[2].mxu1  ;;  %v5513_v57 = vld [vmem:[#allocation7] sm:$0xff] }
 0x430   : > { %v1146_v61 = vadd.f32 %v3485_v55, %v1145_v58  ;;  %v3656_v62 = vpop.f32.mrb[3].mxu1 }
 0x432   : > { %v5465_v63 = vpack.c.bf16 %v1146_v61, %v1143_v60 }
 0x434   : > { %v1410_v2 = vsel %vm1303_vm2, %v5465_v63, 0 }
 0x435   : > { %v1206_v4 = vpop.f32.mrb[4].mxu1  ;;  %3680 = vmatpush3.bf16.xpose.msra.mxu0 %v1410_v2 }
 0x436   : > { %v3663_v5 = vpop.f32.mrb[5].mxu1  ;;  %3691 = vmatprep.subr.bf16.mxu0 %v4757_v0  ;;  %v1207_v9 = vadd.f32 %v3489_v3, %v1206_v4 }
 0x437   : > { %v1209_v7 = vpop.f32.mrb[6].mxu1 }
 0x438   : > { %v1210_v10 = vadd.f32 %v3489_v3, %v1209_v7  ;;  %v3664_v11 = vpop.f32.mrb[7].mxu1 }
 0x43a   : > { %v5472_v12 = vpack.c.bf16 %v1210_v10, %v1207_v9 }
 0x43c   : > { %3682 = vmatmul.mubr.msk.bf16.vlgmr.msra.gmra.mrb[4].mxu0 %vm1303_vm2, %v1291_v13  ;;  %3686 = vmatpush3.bf16.msra.mxu1 %v5472_v12 }
 0x43d   : > { %3693 = vmatprep.mubr.msk.bf16.mxu0 %vm4758_vm0, %v4757_v0  ;;  %3697 = vmatprep.subr.bf16.mxu1 %v4757_v0 }
 0x442   : > { %v1344_v14 = vpop.f32.mrb[8].mxu1 }
 0x443   : > { %1351 = vrot.lane.b32.xlu0 %v1344_v14, %s4759_s16  ;;  %v3677_v15 = vpop.f32.mrb[9].mxu1  ;;  %v1743_v14 = vsub.s32 2, %v5441_v45 }
 0x444   : > { %v1347_v16 = vpop.f32.mrb[10].mxu1 }
 0x445   : > { %v3678_v17 = vpop.f32.mrb[11].mxu1  ;;  %v1754_v15 = vrot.slane %v5446_v48, %v1743_v14 }
 0x4b5   : > { %v1352_v18 = vpop.permute.xlu0 %1351 }
 0x4b6   : > { %v1355_v19 = vsel %vm1354_vm3, 0.0, %v1352_v18 }
 0x4b7   : > { %v1357_v21 = vrot.slane %v1355_v19, 1 }
 0x4b9   : > { %v1360_v22 = vsel %vm1359_vm4, %v1357_v21, 0.0 }
 0x4ba   : > { %1362 = vrot.lane.b32.xlu1 %v1360_v22, %s4760_s0 }
 0x4be   : > { %1525 = vrot.lane.b32.xlu1 %v1523_v23, %s5899_s11 }
 0x4c2   : > { %1533 = vrot.lane.b32.xlu1 %v5448_v49, %s4762_s5 }
 0x50f   : > { %v1446_v24 = vpop.f32.mrb[4].mxu0 }
 0x510   : > { %v3683_v25 = vpop.f32.mrb[5].mxu0 }
 0x511   : > { %v1449_v26 = vpop.f32.mrb[6].mxu0 }
 0x512   : > { %v3684_v27 = vpop.f32.mrb[7].mxu0 }
 0x52c   : > { %v1363_v28 = vpop.permute.xlu1 %1362 }
 0x52d   : > { %v1366_v29 = vsel %vm1365_vm5, %v1355_v19, %v1363_v28 }
 0x52e   : > { %1371 = vrot.lane.b32.xlu0 %v1366_v29, %s4763_s18  ;;  %1368 = vrot.lane.b32.xlu1 %v1366_v29, %s4759_s16 }
 0x530   : > { %v1526_v30 = vpop.permute.xlu1 %1525 }
 0x531   : > { %v1528_v31 = vadd.f32 %v1526_v30, %v5451_v50 }
 0x532   : > { %1377 = vrot.lane.b32.xlu0 %v1366_v29, %s4764_s15  ;;  %1374 = vrot.lane.b32.xlu1 %v1366_v29, %s4765_s10 }
 0x533   : > { %v1529_v34 = vpack.c.bf16 %v1528_v31, %v1528_v31 }
 0x534   : > { %v1534_v32 = vpop.permute.xlu1 %1533 }
 0x535   : > { %v1539_v33 = vsel %vm1303_vm2, %v1534_v32, 0 }
 0x536   : > { %1380 = vrot.lane.b32.xlu0 %v1366_v29, %s4766_s26  ;;  %1383 = vrot.lane.b32.xlu1 %v1366_v29, %s4767_s19 }
 0x537   : > { %3692 = vmatpush3.bf16.xpose.msra.mxu0 %v1539_v33 }
 0x538   : > { %3703 = vmatprep.subr.bf16.mxu0 %v4757_v0 }
 0x53a   : > { %1386 = vrot.lane.b32.xlu0 %v1366_v29, %s4768_s21  ;;  %1531 = vrot.lane.b32.xlu1 %v1529_v34, %s4762_s5 }
 0x5a0   : > { %v1372_v35 = vpop.permute.xlu0 %1371  ;;  %v1369_v36 = vpop.permute.xlu1 %1368 }
 0x5a1   : > { %v1390_v37 = vsel %vm1389_vm6, %v1366_v29, %v1369_v36 }
 0x5a2   : > { %v1392_v39 = vsel %vm1391_vm7, %v1390_v37, %v1372_v35 }
 0x5a4   : > { %v1378_v38 = vpop.permute.xlu0 %1377  ;;  %v1375_v40 = vpop.permute.xlu1 %1374 }
 0x5a5   : > { %v1394_v41 = vsel %vm1393_vm8, %v1392_v39, %v1375_v40 }
 0x5a6   : > { %v1396_v43 = vsel %vm1395_vm9, %v1394_v41, %v1378_v38 }
 0x5a8   : > { %v1381_v42 = vpop.permute.xlu0 %1380  ;;  %v1384_v44 = vpop.permute.xlu1 %1383 }
 0x5a9   : > { %v1398_v46 = vsel %vm1397_vm10, %v1396_v43, %v1381_v42 }
 0x5aa   : > { %v1400_v47 = vsel %vm1399_vm11, %v1398_v46, %v1384_v44 }
 0x5ac   : > { %v1387_v51 = vpop.permute.xlu0 %1386  ;;  %v1532_v52 = vpop.permute.xlu1 %1531 }
 0x5ad   : > { %3694 = vmatmul.mubr.msk.bf16.vlgmr.msra.gmra.mrb[8].mxu0 %vm1303_vm2, %v1532_v52  ;;  %v1401_v53 = vsel %vm1359_vm4, %v1400_v47, %v1387_v51  ;;  %v1744_v52 = vrot.slane %v5463_v59, %v1743_v14 }
 0x5ae   : > { %1403 = vrot.lane.b32.xlu0 %v1401_v53, %s4762_s5  ;;  %3705 = vmatprep.mubr.msk.bf16.mxu0 %vm4758_vm0, %v4757_v0 }
 0x5b2   : > { %1515 = vrot.lane.b32.xlu0 %v1513_v54, %s5899_s11  ;;  %s4772_s11 = smov 104  }
 0x620   : > { %v1404_v55 = vpop.permute.xlu0 %1403 }
 0x621   : > { %v1447_v56 = vadd.f32 %v1446_v24, %v1404_v55 }
 0x623   : > { %v1452_v58 = vmul.f32 0.35355338, %v1447_v56 }
 0x624   : > { %v1516_v62 = vpop.permute.xlu0 %1515 }
 0x625   : > { %v1453_v60 = vadd.f32 %v1452_v58, %v5513_v57  ;;  %v1518_v1 = vadd.f32 %v1516_v62, %v5451_v50 }
 0x627   : > { %v1455_v61 = vsel %vm1454_vm12, %v1453_v60, -inf  ;;  %v1519_v2 = vpack.c.bf16 %v1518_v1, %v1518_v1 }
 0x628   : > { %1456 = vmax.xlane.f32.xlu1 %v1455_v61 }
 0x639   : > { %1625 = vrot.lane.b32.xlu1 %v1519_v2, %s4762_s5 }
 0x680   : > { %v1575_v3 = vpop.f32.mrb[8].mxu0 }
 0x681   : > { %1582 = vrot.lane.b32.xlu1 %v1575_v3, %s4759_s16  ;;  %v3695_v4 = vpop.f32.mrb[9].mxu0 }
 0x682   : > { %v1578_v5 = vpop.f32.mrb[10].mxu0 }
 0x683   : > { %v3696_v6 = vpop.f32.mrb[11].mxu0 }
 0x6b5   : > { %v1457_v7 = vpop.xlane.xlu1 %1456 }
 0x6b6   : > { %v1458_v9 = vsub.f32 %v1453_v60, %v1457_v7 }
 0x6b8   : > { %v1459_v10 = vmul.f32 1.442695, %v1458_v9 }
 0x6b9   : > { %v1626_v16 = vpop.permute.xlu1 %1625 }
 0x6ba   : > { %4142 = vpow2.f32 %v1459_v10 }
 0x6c4   : > { %v4143_v11 = vpop.eup %4142 }
 0x6c5   : > { %v1461_v13 = vsel %vm1454_vm12, %v4143_v11, 0.0 }
 0x6c6   : > { %1462 = vadd.xlane.f32.xlu0 %v1461_v13 }
 0x6dc   : > { %1628 = vrot.lane.b32.xlu0 %v5465_v63, %s4762_s5 }
 0x6e0   : > { %1756 = vrot.lane.b32.xlu0 %v1754_v15, %s4769_s12 }
 0x6f3   : > { %v1583_v17 = vpop.permute.xlu1 %1582 }
 0x6f4   : > { %v1585_v18 = vsel %vm1354_vm3, 0.0, %v1583_v17 }
 0x6f5   : > { %v1587_v19 = vrot.slane %v1585_v18, 1 }
 0x6f7   : > { %v1589_v20 = vsel %vm1359_vm4, %v1587_v19, 0.0 }
 0x6f8   : > { %1591 = vrot.lane.b32.xlu1 %v1589_v20, %s4760_s0 }
 0x753   : > { %v1463_v21 = vpop.xlane.xlu0 %1462 }
 0x754   : > { %4144 = vrcp.f32 %v1463_v21 }
 0x757   : > { %v1629_v24 = vpop.permute.xlu0 %1628 }
 0x758   : > { %v1638_v26 = vsel %vm1303_vm2, %v1629_v24, 0 }
 0x75b   : > { %v1757_v29 = vpop.permute.xlu0 %1756 }
 0x75c   : > { %v1759_v30 = vadd.f32 %v1757_v29, %v5451_v50 }
 0x75e   : > { %v4145_v22 = vpop.eup %4144  ;;  %v1760_v31 = vpack.c.bf16 %v1759_v30, %v1759_v30 }
 0x75f   : > { %v1465_v23 = vmul.f32 %v4145_v22, %v4143_v11  ;;  %v1972_v11 = vsub.s32 3, %v5441_v45 }
 0x761   : > { %v1466_v25 = vpack.c.bf16 %v1465_v23, %v1465_v23  ;;  %v1983_v15 = vrot.slane %v5446_v48, %v1972_v11 }
 0x763   : > { %3688 = vmatmul.mubr.msk.bf16.vlgmr.msra.gmra.mrb[12].mxu1 %vm1454_vm12, %v1466_v25 }
 0x764   : > { %3698 = vmatpush3.bf16.xpose.msra.mxu1 %v1638_v26  ;;  %3699 = vmatprep.mubr.msk.bf16.mxu1 %vm4758_vm0, %v4757_v0 }
 0x765   : > { %3709 = vmatprep.subr.bf16.mxu1 %v4757_v0 }
 0x76a   : > { %v1592_v27 = vpop.permute.xlu1 %1591 }
 0x76b   : > { %v1594_v28 = vsel %vm1365_vm5, %v1585_v18, %v1592_v27  ;;  %3700 = vmatmul.mubr.msk.bf16.vlgmr.msra.gmra.mrb[16].mxu1 %vm1303_vm2, %v1626_v16 }
 0x76c   : > { %1599 = vrot.lane.b32.xlu0 %v1594_v28, %s4763_s18  ;;  %1596 = vrot.lane.b32.xlu1 %v1594_v28, %s4759_s16 }
 0x76d   : > { %3711 = vmatprep.mubr.msk.bf16.mxu1 %vm4758_vm0, %v4757_v0 }
 0x770   : > { %1605 = vrot.lane.b32.xlu0 %v1594_v28, %s4764_s15  ;;  %1602 = vrot.lane.b32.xlu1 %v1594_v28, %s4765_s10 }
 0x774   : > { %1608 = vrot.lane.b32.xlu0 %v1594_v28, %s4766_s26  ;;  %1764 = vrot.lane.b32.xlu1 %v5448_v49, %s4770_s2 }
 0x778   : > { %1614 = vrot.lane.b32.xlu0 %v1594_v28, %s4768_s21  ;;  %1611 = vrot.lane.b32.xlu1 %v1594_v28, %s4767_s19 }
 0x77c   : > { %1762 = vrot.lane.b32.xlu1 %v1760_v31, %s4770_s2 }
 0x7de   : > { %v1600_v32 = vpop.permute.xlu0 %1599  ;;  %v1597_v33 = vpop.permute.xlu1 %1596 }
 0x7df   : > { %v1617_v34 = vsel %vm1389_vm6, %v1594_v28, %v1597_v33 }
 0x7e0   : > { %v1618_v37 = vsel %vm1391_vm7, %v1617_v34, %v1600_v32 }
 0x7e2   : > { %v1606_v35 = vpop.permute.xlu0 %1605  ;;  %v1603_v36 = vpop.permute.xlu1 %1602 }
 0x7e3   : > { %v1619_v38 = vsel %vm1393_vm8, %v1618_v37, %v1603_v36 }
 0x7e4   : > { %v1620_v42 = vsel %vm1395_vm9, %v1619_v38, %v1606_v35 }
 0x7e6   : > { %v1609_v39 = vpop.permute.xlu0 %1608  ;;  %v1765_v40 = vpop.permute.xlu1 %1764 }
 0x7e7   : > { %v1770_v41 = vsel %vm1303_vm2, %v1765_v40, 0  ;;  %v1621_v43 = vsel %vm1397_vm10, %v1620_v42, %v1609_v39 }
 0x7e8   : > { %3710 = vmatpush3.bf16.xpose.msra.mxu1 %v1770_v41 }
 0x7e9   : > { %3721 = vmatprep.subr.bf16.mxu1 %v4757_v0 }
 0x7ea   : > { %v1615_v44 = vpop.permute.xlu0 %1614  ;;  %v1612_v46 = vpop.permute.xlu1 %1611 }
 0x7eb   : > { %v1622_v47 = vsel %vm1399_vm11, %v1621_v43, %v1612_v46 }
 0x7ec   : > { %v1623_v51 = vsel %vm1359_vm4, %v1622_v47, %v1615_v44 }
 0x7ed   : > { %1631 = vrot.lane.b32.xlu0 %v1623_v51, %s4762_s5 }
 0x7ee   : > { %v1763_v53 = vpop.permute.xlu1 %1762 }
 0x7ef   : > { %3712 = vmatmul.mubr.msk.bf16.vlgmr.msra.gmra.mrb[20].mxu1 %vm1303_vm2, %v1763_v53 }
 0x7f0   : > { %3723 = vmatprep.mubr.msk.bf16.mxu1 %vm4758_vm0, %v4757_v0 }
 0x7f1   : > { %1746 = vrot.lane.b32.xlu0 %v1744_v52, %s4769_s12 }
 0x836   : > { %v5564_v54 = vpop.f32.mrb[12].mxu1 }
 0x837   : > { %v3689_v55 = vpop.f32.mrb[13].mxu1 }
 0x838   : > { %v1507_v56 = vpop.f32.mrb[14].mxu1 }
 0x839   : > { %v3690_v58 = vpop.f32.mrb[15].mxu1 }
 0x83e   : > { %v1674_v60 = vpop.f32.mrb[16].mxu1 }
 0x83f   : > { %v3701_v61 = vpop.f32.mrb[17].mxu1 }
 0x840   : > { %v1677_v62 = vpop.f32.mrb[18].mxu1 }
 0x841   : > { %v3702_v1 = vpop.f32.mrb[19].mxu1  ;;  %v1973_v62 = vrot.slane %v5463_v59, %v1972_v11 }
 0x85f   : > { %v1632_v2 = vpop.permute.xlu0 %1631 }
 0x860   : > { %v1675_v3 = vadd.f32 %v1674_v60, %v1632_v2 }
 0x862   : > { %v1680_v4 = vmul.f32 0.35355338, %v1675_v3 }
 0x863   : > { %v1747_v7 = vpop.permute.xlu0 %1746 }
 0x864   : > { %v1681_v5 = vadd.f32 %v1680_v4, %v5513_v57  ;;  %v1749_v9 = vadd.f32 %v1747_v7, %v5451_v50 }
 0x866   : > { %v1682_v6 = vsel %vm1454_vm12, %v1681_v5, -inf  ;;  %v1750_v10 = vpack.c.bf16 %v1749_v9, %v1749_v9 }
 0x867   : > { %1683 = vmax.xlane.f32.xlu1 %v1682_v6 }
 0x878   : > { %1858 = vrot.lane.b32.xlu1 %v5465_v63, %s4770_s2 }
 0x87c   : > { %1856 = vrot.lane.b32.xlu1 %v1750_v10, %s4770_s2 }
 0x8c2   : > { %v1806_v13 = vpop.f32.mrb[20].mxu1 }
 0x8c3   : > { %1813 = vrot.lane.b32.xlu1 %v1806_v13, %s4759_s16  ;;  %v3713_v14 = vpop.f32.mrb[21].mxu1 }
 0x8c4   : > { %v1809_v16 = vpop.f32.mrb[22].mxu1 }
 0x8c5   : > { %v3714_v17 = vpop.f32.mrb[23].mxu1 }
 0x8c7   : > { %1985 = vrot.lane.b32.xlu1 %v1983_v15, %s4771_s1 }
 0x8f4   : > { %v1684_v18 = vpop.xlane.xlu1 %1683 }
 0x8f5   : > { %v1685_v19 = vsub.f32 %v1681_v5, %v1684_v18 }
 0x8f7   : > { %v1686_v20 = vmul.f32 1.442695, %v1685_v19 }
 0x8f8   : > { %v1859_v23 = vpop.permute.xlu1 %1858 }
 0x8f9   : > { %4146 = vpow2.f32 %v1686_v20  ;;  %v1868_v33 = vsel %vm1303_vm2, %v1859_v23, 0 }
 0x8fc   : > { %v1857_v24 = vpop.permute.xlu1 %1856 }
 0x903   : > { %v4147_v21 = vpop.eup %4146 }
 0x904   : > { %v1688_v22 = vsel %vm1454_vm12, %v4147_v21, 0.0 }
 0x905   : > { %1689 = vadd.xlane.f32.xlu0 %v1688_v22 }
 0x91b   : > { %1695 = vrot.lane.b32.xlu0 %v5472_v12, %s4762_s5 }
 0x935   : > { %v1814_v25 = vpop.permute.xlu1 %1813 }
 0x936   : > { %v1816_v48 = vsel %vm1354_vm3, 0.0, %v1814_v25 }
 0x937   : > { %v1818_v26 = vrot.slane %v1816_v48, 1 }
 0x939   : > { %v1820_v27 = vsel %vm1359_vm4, %v1818_v26, 0.0  ;;  %v1986_v36 = vpop.permute.xlu1 %1985 }
 0x93a   : > { %1822 = vrot.lane.b32.xlu0 %v1820_v27, %s4760_s0  ;;  %v1988_v38 = vadd.f32 %v1986_v36, %v5451_v50 }
 0x93c   : > { %v1989_v39 = vpack.c.bf16 %v1988_v38, %v1988_v38 }
 0x93e   : > { %1993 = vrot.lane.b32.xlu0 %v5448_v49, %s4772_s11 }
 0x992   : > { %v1690_v28 = vpop.xlane.xlu0 %1689 }
 0x993   : > { %4148 = vrcp.f32 %v1690_v28 }
 0x996   : > { %v1696_v29 = vpop.permute.xlu0 %1695 }
 0x997   : > { %3704 = vmatpush3.bf16.msra.mxu0 %v1696_v29 }
 0x998   : > { %3715 = vmatprep.subr.bf16.mxu0 %v4757_v0 }
 0x99d   : > { %v4149_v30 = vpop.eup %4148 }
 0x99e   : > { %v1692_v31 = vmul.f32 %v4149_v30, %v4147_v21 }
 0x9a0   : > { %v1693_v32 = vpack.c.bf16 %v1692_v31, %v1692_v31 }
 0x9a2   : > { %3706 = vmatmul.mubr.msk.bf16.vlgmr.msra.gmra.mrb[12].mxu0 %vm1454_vm12, %v1693_v32 }
 0x9a3   : > { %3716 = vmatpush3.bf16.xpose.msra.mxu0 %v1868_v33  ;;  %3717 = vmatprep.mubr.msk.bf16.mxu0 %vm4758_vm0, %v4757_v0 }
 0x9a4   : > { %3727 = vmatprep.subr.bf16.mxu0 %v4757_v0 }
 0x9aa   : > { %3718 = vmatmul.mubr.msk.bf16.vlgmr.msra.gmra.mrb[16].mxu0 %vm1303_vm2, %v1857_v24 }
 0x9ab   : > { %3729 = vmatprep.mubr.msk.bf16.mxu0 %vm4758_vm0, %v4757_v0 }
 0x9ac   : > { %v1823_v49 = vpop.permute.xlu0 %1822 }
 0x9ad   : > { %v1825_v34 = vsel %vm1365_vm5, %v1816_v48, %v1823_v49 }
 0x9ae   : > { %1830 = vrot.lane.b32.xlu1 %v1825_v34, %s4763_s18  ;;  %1827 = vrot.lane.b32.xlu0 %v1825_v34, %s4759_s16 }
 0x9b0   : > { %v1994_v35 = vpop.permute.xlu0 %1993 }
 0x9b1   : > { %v1999_v37 = vsel %vm1303_vm2, %v1994_v35, 0 }
 0x9b2   : > { %1836 = vrot.lane.b32.xlu1 %v1825_v34, %s4764_s15  ;;  %1833 = vrot.lane.b32.xlu0 %v1825_v34, %s4765_s10 }
 0x9b3   : > { %3728 = vmatpush3.bf16.xpose.msra.mxu0 %v1999_v37 }
 0x9b4   : > { %3739 = vmatprep.subr.bf16.mxu0 %v4757_v0 }
 0x9b6   : > { %1839 = vrot.lane.b32.xlu1 %v1825_v34, %s4766_s26  ;;  %1842 = vrot.lane.b32.xlu0 %v1825_v34, %s4767_s19 }
 0x9ba   : > { %1845 = vrot.lane.b32.xlu1 %v1825_v34, %s4768_s21  ;;  %1991 = vrot.lane.b32.xlu0 %v1989_v39, %s4772_s11 }
 0xa20   : > { %v1828_v40 = vpop.permute.xlu0 %1827  ;;  %v1831_v41 = vpop.permute.xlu1 %1830 }
 0xa21   : > { %v1848_v42 = vsel %vm1389_vm6, %v1825_v34, %v1828_v40 }
 0xa22   : > { %v1849_v43 = vsel %vm1391_vm7, %v1848_v42, %v1831_v41 }
 0xa24   : > { %v1834_v44 = vpop.permute.xlu0 %1833  ;;  %v1837_v46 = vpop.permute.xlu1 %1836 }
 0xa25   : > { %v1850_v47 = vsel %vm1393_vm8, %v1849_v43, %v1834_v44 }
 0xa26   : > { %v1851_v51 = vsel %vm1395_vm9, %v1850_v47, %v1837_v46 }
 0xa28   : > { %v1843_v52 = vpop.permute.xlu0 %1842  ;;  %v1840_v53 = vpop.permute.xlu1 %1839 }
 0xa29   : > { %v1852_v55 = vsel %vm1397_vm10, %v1851_v51, %v1840_v53 }
 0xa2a   : > { %v1853_v60 = vsel %vm1399_vm11, %v1852_v55, %v1843_v52 }
 0xa2c   : > { %v1992_v56 = vpop.permute.xlu0 %1991  ;;  %v1846_v58 = vpop.permute.xlu1 %1845 }
 0xa2d   : > { %3730 = vmatmul.mubr.msk.bf16.vlgmr.msra.gmra.mrb[20].mxu0 %vm1303_vm2, %v1992_v56  ;;  %v1854_v61 = vsel %vm1359_vm4, %v1853_v60, %v1846_v58 }
 0xa2e   : > { %1861 = vrot.lane.b32.xlu1 %v1854_v61, %s4762_s5  ;;  %3741 = vmatprep.mubr.msk.bf16.mxu0 %vm4758_vm0, %v4757_v0 }
 0xa32   : > { %1975 = vrot.lane.b32.xlu1 %v1973_v62, %s4771_s1 }
 0xa75   : > { %v5622_v1 = vpop.f32.mrb[12].mxu0 }
 0xa76   : > { %v3707_v2 = vpop.f32.mrb[13].mxu0 }
 0xa77   : > { %v1738_v3 = vpop.f32.mrb[14].mxu0 }
 0xa78   : > { %v3708_v4 = vpop.f32.mrb[15].mxu0 }
 0xa7d   : > { %v1904_v5 = vpop.f32.mrb[16].mxu0 }
 0xa7e   : > { %v3719_v6 = vpop.f32.mrb[17].mxu0 }
 0xa7f   : > { %v1907_v7 = vpop.f32.mrb[18].mxu0 }
 0xa80   : > { %v3720_v9 = vpop.f32.mrb[19].mxu0 }
 0xaa0   : > { %v1862_v10 = vpop.permute.xlu1 %1861 }
 0xaa1   : > { %v1905_v13 = vadd.f32 %v1904_v5, %v1862_v10 }
 0xaa3   : > { %v1910_v14 = vmul.f32 0.35355338, %v1905_v13 }
 0xaa4   : > { %v1976_v11 = vpop.permute.xlu1 %1975 }
 0xaa5   : > { %v1911_v45 = vadd.f32 %v1910_v14, %v5513_v57  ;;  %v1978_v15 = vadd.f32 %v1976_v11, %v5451_v50 }
 0xaa7   : > { %v1912_v59 = vsel %vm1454_vm12, %v1911_v45, -inf  ;;  %v1979_v16 = vpack.c.bf16 %v1978_v15, %v1978_v15 }
 0xaa8   : > { %1913 = vmax.xlane.f32.xlu0 %v1912_v59 }
 0xabe   : > { %1924 = vrot.lane.b32.xlu0 %v5472_v12, %s4770_s2  ;;  %s5977_s2 = sld [smem:[#allocation62_spill]] }
 0xac2   : > { %2085 = vrot.lane.b32.xlu0 %v1979_v16, %s4772_s11 }
 0xb00   : > { %v2035_v17 = vpop.f32.mrb[20].mxu0 }
 0xb01   : > { %2042 = vrot.lane.b32.xlu0 %v2035_v17, %s4759_s16  ;;  %v3731_v18 = vpop.f32.mrb[21].mxu0  ;;  %v4108_v17 = vld [vmem:[%s5858_s14] sm:$0xff]  }
 0xb02   : > { %v2038_v19 = vpop.f32.mrb[22].mxu0  ;;  %v4110_v18 = vld [vmem:[#allocation23 + $0x10] sm:$0xff]  }
 0xb03   : > { %v3732_v20 = vpop.f32.mrb[23].mxu0  ;;  %v4112_v19 = vld [vmem:[#allocation23 + $0x18] sm:$0xff]  }
 0xb04   : > { %v4114_v20 = vld [vmem:[#allocation23] sm:$0xff]  }
 0xb35   : > { %v1914_v21 = vpop.xlane.xlu0 %1913 }
 0xb36   : > { %v1915_v22 = vsub.f32 %v1911_v45, %v1914_v21 }
 0xb38   : > { %v1916_v23 = vmul.f32 1.442695, %v1915_v22 }
 0xb39   : > { %v1925_v24 = vpop.permute.xlu0 %1924 }
 0xb3a   : > { %4150 = vpow2.f32 %v1916_v23  ;;  %3722 = vmatpush3.bf16.msra.mxu1 %v1925_v24 }
 0xb3b   : > { %3733 = vmatprep.subr.bf16.mxu1 %v4757_v0 }
 0xb3d   : > { %v2086_v48 = vpop.permute.xlu0 %2085 }
 0xb44   : > { %v4151_v50 = vpop.eup %4150 }
 0xb45   : > { %v1918_v25 = vsel %vm1454_vm12, %v4151_v50, 0.0 }
 0xb46   : > { %1919 = vadd.xlane.f32.xlu1 %v1918_v25 }
 0xb57   : > { %2087 = vrot.lane.b32.xlu1 %v5465_v63, %s4772_s11 }
 0xb73   : > { %v2043_v26 = vpop.permute.xlu0 %2042 }
 0xb74   : > { %v2045_v27 = vsel %vm1354_vm3, 0.0, %v2043_v26 }
 0xb75   : > { %v2047_v28 = vrot.slane %v2045_v27, 1 }
 0xb77   : > { %v2049_v29 = vsel %vm1359_vm4, %v2047_v28, 0.0 }
 0xb78   : > { %2051 = vrot.lane.b32.xlu1 %v2049_v29, %s4760_s0  ;;  %v4111_v29 = vld [vmem:[#allocation23 + $0x30] sm:$0xff]   ;;  %s5974_s0 = sld [smem:[#allocation58_spill]] }
 0xbd3   : > { %v1920_v30 = vpop.xlane.xlu1 %1919 }
 0xbd4   : > { %4152 = vrcp.f32 %v1920_v30 }
 0xbd7   : > { %v2088_v33 = vpop.permute.xlu1 %2087 }
 0xbd8   : > { %v2097_v34 = vsel %vm1303_vm2, %v2088_v33, 0  ;;  %v4117_v33 = vld [vmem:[#allocation23 + $0x28] sm:$0xff]  }
 0xbde   : > { %v4153_v31 = vpop.eup %4152 }
 0xbdf   : > { %v1922_v32 = vmul.f32 %v4153_v31, %v4151_v50  ;;  %v4113_v31 = vld [vmem:[#allocation23 + $0x38] sm:$0xff]  }
 0xbe1   : > { %v1923_v49 = vpack.c.bf16 %v1922_v32, %v1922_v32  ;;  %v4116_v32 = vld [vmem:[#allocation23 + $0x8] sm:$0xff]  }
 0xbe3   : > { %3724 = vmatmul.mubr.msk.bf16.vlgmr.msra.gmra.mrb[24].mxu1 %vm1454_vm12, %v1923_v49  ;;  %v3510_v49 = vld [vmem:[#allocation22] ss:$0 sm:$0xff] }
 0xbe4   : > { %3734 = vmatpush3.bf16.xpose.msra.mxu1 %v2097_v34  ;;  %3735 = vmatprep.mubr.msk.bf16.mxu1 %vm4758_vm0, %v4757_v0 }
 0xbe5   : > { %3745 = vmatprep.subr.bf16.mxu1 %v4757_v0 }
 0xbea   : > { %v2052_v63 = vpop.permute.xlu1 %2051 }
 0xbeb   : > { %v2054_v35 = vsel %vm1365_vm5, %v2045_v27, %v2052_v63  ;;  %3736 = vmatmul.mubr.msk.bf16.vlgmr.msra.gmra.mrb[28].mxu1 %vm1303_vm2, %v2086_v48 }
 0xbec   : > { %2059 = vrot.lane.b32.xlu1 %v2054_v35, %s4763_s18  ;;  %2056 = vrot.lane.b32.xlu0 %v2054_v35, %s4759_s16  ;;  %s5971_s16 = smov 8   ;;  %s5975_s18 = sld [smem:[#allocation61_spill]] }
 0xbed   : > { %3749 = vmatprep.mubr.msk.bf16.mxu1 %vm4758_vm0, %v4757_v0  ;;  %3746 = vmatpush3.bf16.msra.mxu1 %v4108_v17 }
 0xbee   : > { %3747 = vmatprep.subr.bf16.mxu1 %v4757_v0 }
 0xbf0   : > { %2065 = vrot.lane.b32.xlu1 %v2054_v35, %s4764_s15  ;;  %2062 = vrot.lane.b32.xlu0 %v2054_v35, %s4765_s10  ;;  %s5972_s15 = sld [smem:[#allocation59_spill]] }
 0xbf4   : > { %2071 = vrot.lane.b32.xlu1 %v2054_v35, %s4767_s19  ;;  %2068 = vrot.lane.b32.xlu0 %v2054_v35, %s4766_s26  ;;  %s5976_s19 = sld [smem:[#allocation60_spill]] }
 0xbf8   : > { %2074 = vrot.lane.b32.xlu0 %v2054_v35, %s4768_s21  ;;  %s5980_s21 = sld [smem:[#allocation64_spill]] }
 0xc5e   : > { %v2060_v36 = vpop.permute.xlu1 %2059  ;;  %v2057_v37 = vpop.permute.xlu0 %2056 }
 0xc5f   : > { %v2077_v38 = vsel %vm1389_vm6, %v2054_v35, %v2057_v37 }
 0xc60   : > { %v2078_v40 = vsel %vm1391_vm7, %v2077_v38, %v2060_v36 }
 0xc62   : > { %v2066_v39 = vpop.permute.xlu1 %2065  ;;  %v2063_v41 = vpop.permute.xlu0 %2062 }
 0xc63   : > { %v2079_v42 = vsel %vm1393_vm8, %v2078_v40, %v2063_v41  ;;  %v4119_v40 = vld [vmem:[#allocation23 + $0x58] sm:$0xff]  }
 0xc64   : > { %v2080_v43 = vsel %vm1395_vm9, %v2079_v42, %v2066_v39  ;;  %v4118_v39 = vld [vmem:[#allocation23 + $0x50] sm:$0xff]  }
 0xc66   : > { %v2069_v44 = vpop.permute.xlu0 %2068  ;;  %v2072_v46 = vpop.permute.xlu1 %2071 }
 0xc67   : > { %v2081_v47 = vsel %vm1397_vm10, %v2080_v43, %v2069_v44 }
 0xc68   : > { %v2082_v52 = vsel %vm1399_vm11, %v2081_v47, %v2072_v46 }
 0xc6a   : > { %v2075_v51 = vpop.permute.xlu0 %2074 }
 0xc6b   : > { %v2083_v53 = vsel %vm1359_vm4, %v2082_v52, %v2075_v51 }
 0xc6c   : > { %2090 = vrot.lane.b32.xlu1 %v2083_v53, %s4762_s5  ;;  %s3567_s5 = sshll.u32 %s4930_s29, 7  ;;  %s3204_s29 = scalar_lea.sflag [#allocation4], %s5355_s8 }
 0xcb6   : > { %v1964_v55 = vpop.f32.mrb[24].mxu1 }
 0xcb7   : > { %v3725_v56 = vpop.f32.mrb[25].mxu1 }
 0xcb8   : > { %v1967_v58 = vpop.f32.mrb[26].mxu1 }
 0xcb9   : > { %v3726_v60 = vpop.f32.mrb[27].mxu1 }
 0xcba   : > { %v4180_v60 = vld [vmem:[%s5361_s13] sm:$0xff] }
 0xcbe   : > { %v2133_v61 = vpop.f32.mrb[28].mxu1 }
 0xcbf   : > { %v3737_v62 = vpop.f32.mrb[29].mxu1 }
 0xcc0   : > { %v2136_v2 = vpop.f32.mrb[30].mxu1  ;;  %v4120_v62 = vld [vmem:[#allocation23 + $0x40] sm:$0xff]  }
 0xcc1   : > { %v3738_v3 = vpop.f32.mrb[31].mxu1 }
 0xcc2   : > { %v4121_v3 = vld [vmem:[#allocation23 + $0x48] sm:$0xff]  }
 0xcde   : > { %v2091_v4 = vpop.permute.xlu1 %2090 }
 0xcdf   : > { %v2134_v5 = vadd.f32 %v2133_v61, %v2091_v4  ;;  %v4122_v4 = vld [vmem:[#allocation26 + $0x10] sm:$0xff]  }
 0xce1   : > { %v2139_v6 = vmul.f32 0.35355338, %v2134_v5  ;;  %v4123_v5 = vld [vmem:[#allocation26 + $0x18] sm:$0xff]  }
 0xce3   : > { %v2140_v7 = vadd.f32 %v2139_v6, %v5513_v57  ;;  %v3527_v6 = vld [vmem:[#allocation25] ss:$0 sm:$0xff] }
 0xce5   : > { %v2141_v9 = vsel %vm1454_vm12, %v2140_v7, -inf }
 0xce6   : > { %2142 = vmax.xlane.f32.xlu0 %v2141_v9 }
 0xcfc   : > { %2153 = vrot.lane.b32.xlu0 %v5472_v12, %s4772_s11  ;;  %s5978_s11 = sld [smem:[#allocation63_spill]] }
 0xd00   : > { %2204 = vrot.lane.b32.xlu0 %v1964_v55, %s4769_s12  ;;  %s5973_s12 = sld [smem:[#allocation57_spill]] }
 0xd73   : > { %v2143_v10 = vpop.xlane.xlu0 %2142 }
 0xd74   : > { %v2144_v13 = vsub.f32 %v2140_v7, %v2143_v10 }
 0xd76   : > { %v2145_v14 = vmul.f32 1.442695, %v2144_v13 }
 0xd77   : > { %v2154_v45 = vpop.permute.xlu0 %2153 }
 0xd78   : > { %4154 = vpow2.f32 %v2145_v14  ;;  %3740 = vmatpush3.bf16.msra.mxu0 %v2154_v45 }
 0xd79   : > { %3753 = vmatprep.subr.bf16.mxu0 %v4757_v0 }
 0xd7b   : > { %v2205_v48 = vpop.permute.xlu0 %2204 }
 0xd82   : > { %v4155_v59 = vpop.eup %4154 }
 0xd83   : > { %v2147_v11 = vsel %vm1454_vm12, %v4155_v59, 0.0 }
 0xd84   : > { %2148 = vadd.xlane.f32.xlu1 %v2147_v11 }
 0xd95   : > { %2200 = vrot.lane.b32.xlu1 %v5622_v1, %s5971_s16  ;;  %v4109_v1 = vld [vmem:[%s5858_s14 + $0x8] sm:$0xff]   ;;  %s4773_s16 = smov [#allocation28]  }
 0xd96   : > { %3748 = vmatpush3.bf16.msra.mxu1 %v4109_v1 }
 0xd97   : > { %3769 = vmatprep.subr.bf16.mxu1 %v4757_v0 }
 0xe11   : > { %v2149_v57 = vpop.xlane.xlu1 %2148 }
 0xe12   : > { %4156 = vrcp.f32 %v2149_v57 }
 0xe15   : > { %v2201_v50 = vpop.permute.xlu1 %2200 }
 0xe16   : > { %v2211_v25 = vsel %vm1303_vm2, %v5564_v54, %v2201_v50  ;;  %v4115_v54 = vld [vmem:[#allocation23 + $0x20] sm:$0xff]  }
 0xe17   : > { %v2212_v26 = vsel %vm1454_vm12, %v2211_v25, %v2205_v48  ;;  %v4124_v50 = vld [vmem:[%s5972_s15] sm:$0xff]   ;;  %v4125_v25 = vld [vmem:[%s5972_s15 + $0x8] sm:$0xff]  }
 0xe1c   : > { %v4157_v12 = vpop.eup %4156 }
 0xe1d   : > { %v2151_v15 = vmul.f32 %v4157_v12, %v4155_v59 }
 0xe1f   : > { %v2152_v16 = vpack.c.bf16 %v2151_v15, %v2151_v15 }
 0xe21   : > { %3742 = vmatmul.mubr.msk.bf16.vlgmr.msra.gmra.mrb[24].mxu0 %vm1454_vm12, %v2152_v16 }
 0xe22   : > { %3757 = vmatprep.mubr.msk.bf16.mxu0 %vm4758_vm0, %v4757_v0  ;;  %3754 = vmatpush3.bf16.msra.mxu0 %v4110_v18 }
 0xe23   : > { %3755 = vmatprep.subr.bf16.mxu0 %v4757_v0 }
 0xe26   : > { %3756 = vmatpush3.bf16.msra.mxu0 %v4112_v19 }
 0xe27   : > { %3761 = vmatprep.subr.bf16.mxu0 %v4757_v0 }
 0xe29   : > { %3758 = vmatmul.mubr.msk.bf16.vlgmr.msra.gmra.mrb[28].mxu0 %vm1036_vm1, %v5421_v8 }
 0xe2a   : > { %3762 = vmatpush3.bf16.msra.mxu0 %v4114_v20  ;;  %3765 = vmatprep.mubr.msk.bf16.mxu0 %vm4758_vm0, %v4757_v0 }
 0xe2b   : > { %3763 = vmatprep.subr.bf16.mxu0 %v4757_v0 }
 0xe2e   : > { %3764 = vmatpush3.bf16.msra.mxu0 %v4116_v32 }
 0xe2f   : > { %3785 = vmatprep.subr.bf16.mxu0 %v4757_v0 }
 0xef4   : > { %v2193_v21 = vpop.f32.mrb[24].mxu0 }
 0xef5   : > { %2208 = vrot.lane.b32.xlu1 %v2193_v21, %s4771_s1  ;;  %v3743_v22 = vpop.f32.mrb[25].mxu0  ;;  %s5979_s1 = sshll.u32 %s5355_s8, 3 }
 0xef6   : > { %v2196_v23 = vpop.f32.mrb[26].mxu0  ;;  %s1029_s13 = scalar_lea.vmem [#allocation28], %s5979_s1 }
 0xef7   : > { %v3744_v24 = vpop.f32.mrb[27].mxu0  ;;  %s3217_s10 = sshll.u32 %s1029_s13, 4  ;;  %s5801_s10 = int_to_ptr.vmem [resolvable:$true] %s3217_s10 }
 0xf67   : > { %v2209_v27 = vpop.permute.xlu1 %2208 }
 0xf68   : > { %v2214_v28 = vsel %vm2213_vm13, %v2212_v26, %v2209_v27 }
 0xf69   : > { %v2215_v30 = vpack.c.bf16 %v2214_v28, %v2214_v28 }
 0xf6b   : > { %3750 = vmatmul.mubr.msk.bf16.vlgmr.msra.gmra.mrb[32].mxu1 %vm1036_vm1, %v2215_v30 }
 0xf6c   : > { %3770 = vmatpush3.bf16.msra.mxu1 %v4111_v29  ;;  %3773 = vmatprep.mubr.msk.bf16.mxu1 %vm4758_vm0, %v4757_v0  ;;  %v3535_v29 = vld [vmem:[%s5973_s12] ss:$0 sm:$0xff]  ;;  %s5799_s12 = scalar_lea.hbm %s5980_s21, %s3567_s5 }
 0xf6d   : > { %3771 = vmatprep.subr.bf16.mxu1 %v4757_v0 }
 0xf70   : > { %3772 = vmatpush3.bf16.msra.mxu1 %v4113_v31  ;;  %v3536_v31 = vld [vmem:[%s5974_s0] ss:$0 sm:$0xff]  ;;  %s4637_s0 = sshll.u32 %s4773_s16, 4  ;;  %s4638_s0 = int_to_ptr.vmem [resolvable:$false] %s4637_s0 }
 0xf71   : > { %3777 = vmatprep.subr.bf16.mxu1 %v4757_v0  ;;  %p4640_p6 = scmp.lt.s32.totalorder %s5801_s10, %s4638_s0 }
 0xf73   : > { %3774 = vmatmul.mubr.msk.bf16.vlgmr.msra.gmra.mrb[36].mxu1 %vm1036_vm1, %v5421_v8 }
 0xf74   : > { %3781 = vmatprep.mubr.msk.bf16.mxu1 %vm4758_vm0, %v4757_v0  ;;  %3778 = vmatpush3.bf16.msra.mxu1 %v4115_v54 }
 0xf75   : > { %3779 = vmatprep.subr.bf16.mxu1 %v4757_v0 }
 0xf78   : > { %3780 = vmatpush3.bf16.msra.mxu1 %v4117_v33 }
 0xf79   : > { %3801 = vmatprep.subr.bf16.mxu1 %v4757_v0 }
0x103e   : > { %v2276_v34 = vpop.f32.mrb[32].mxu1 }
0x103f   : > { %v2277_v63 = vadd.f32 %v3510_v49, %v2276_v34  ;;  %v3751_v35 = vpop.f32.mrb[33].mxu1  ;;  %v4126_v49 = vld [vmem:[%s5975_s18] sm:$0xff]   ;;  %v4127_v34 = vld [vmem:[%s5975_s18 + $0x8] sm:$0xff]  }
0x1040   : > { %v2279_v8 = vpop.f32.mrb[34].mxu1  ;;  %v3537_v35 = vld [vmem:[%s5976_s19] ss:$0 sm:$0xff] }
0x1041   : > { %v2282_v36 = vmax.f32 %v2277_v63, 0.0  ;;  %v3752_v37 = vpop.f32.mrb[35].mxu1  ;;  %v4130_v63 = vld [vmem:[#allocation26] sm:$0xff]  }
0x1043   : > { %v2284_v38 = vpack.c.bf16 %v2282_v36, %v2282_v36 }
0x1045   : > { %3766 = vmatmul.mubr.msk.bf16.vlgmr.msra.gmra.mrb[28].mxu0 %vm1036_vm1, %v2284_v38  ;;  %3782 = vmatmul.mubr.msk.bf16.vlgmr.msra.gmra.mrb[36].mxu1 %vm1036_vm1, %v2284_v38 }
0x1046   : > { %3789 = vmatprep.mubr.msk.bf16.mxu0 %vm4758_vm0, %v4757_v0  ;;  %3805 = vmatprep.mubr.msk.bf16.mxu1 %vm4758_vm0, %v4757_v0 }
0x1047   : > { %3786 = vmatpush3.bf16.msra.mxu0 %v4118_v39  ;;  %3802 = vmatpush3.bf16.msra.mxu1 %v4124_v50 }
0x1048   : > { %3787 = vmatprep.subr.bf16.mxu0 %v4757_v0  ;;  %3803 = vmatprep.subr.bf16.mxu1 %v4757_v0 }
0x104b   : > { %3788 = vmatpush3.bf16.msra.mxu0 %v4119_v40  ;;  %3804 = vmatpush3.bf16.msra.mxu1 %v4125_v25 }
0x104c   : > { %3793 = vmatprep.subr.bf16.mxu0 %v4757_v0  ;;  %3809 = vmatprep.subr.bf16.mxu1 %v4757_v0 }
0x1118   : > { %v2395_v41 = vpop.f32.mrb[28].mxu0  ;;  %v2515_v42 = vpop.f32.mrb[36].mxu1 }
0x1119   : > { %v3520_v43 = vmul.f32 -1.442695, %v2395_v41  ;;  %v3767_v44 = vpop.f32.mrb[29].mxu0  ;;  %v3783_v46 = vpop.f32.mrb[37].mxu1  ;;  %v2527_v7 = vsub.f32 %v2515_v42, %v3527_v6  ;;  %v4128_v41 = vld [vmem:[#allocation26 + $0x30] sm:$0xff]  }
0x111a   : > { %v2398_v47 = vpop.f32.mrb[30].mxu0  ;;  %v2518_v51 = vpop.f32.mrb[38].mxu1  ;;  %v4131_v44 = vld [vmem:[#allocation26 + $0x20] sm:$0xff]   ;;  %v4132_v46 = vld [vmem:[#allocation26 + $0x8] sm:$0xff]  }
0x111b   : > { %4158 = vpow2.f32 %v3520_v43  ;;  %v3768_v52 = vpop.f32.mrb[31].mxu0  ;;  %v3784_v53 = vpop.f32.mrb[39].mxu1  ;;  %v3528_v9 = vmul.f32 -1.442695, %v2527_v7  ;;  %v4129_v43 = vld [vmem:[#allocation26 + $0x38] sm:$0xff]   ;;  %v4133_v47 = vld [vmem:[#allocation26 + $0x28] sm:$0xff]  }
0x111c   : > { %v3541_v51 = vld [vmem:[%s5977_s2] ss:$0 sm:$0xff]  ;;  %s4633_s2 = scalar_lea.vmem %s5801_s10, 128 }
0x111d   : > { %p4634_p5 = scmp.ne.s32.totalorder %s5801_s10, %s4633_s2 }
0x111f   : > { %p4635_p4 = pnand %p4634_p5, %p5981_p7 }
0x1121   : > { %p4636_p1 = pneg %p4635_p4 }
0x1125   : > { %v4159_v55 = vpop.eup %4158 }
0x1126   : > { %v2404_v56 = vadd.f32 1.0, %v4159_v55 }
0x1128   : > { %4160 = vrcp.f32 %v2404_v56 }
0x1129   : > { %4162 = vpow2.f32 %v3528_v9 }
0x1132   : > { %v4161_v58 = vpop.eup %4160 }
0x1133   : > { %v2539_v61 = vmul.f32 %v4180_v60, %v4161_v58  ;;  %v4163_v10 = vpop.eup %4162 }
0x1134   : > { %v2531_v13 = vadd.f32 1.0, %v4163_v10 }
0x1135   : > { %v2540_v2 = vpack.c.bf16 %v2539_v61, %v2539_v61 }
0x1136   : > { %4164 = vrcp.f32 %v2531_v13 }
0x1137   : > { %3790 = vmatmul.mubr.msk.bf16.vlgmr.msra.gmra.mrb[32].mxu0 %vm1036_vm1, %v2540_v2  ;;  %v4135_v2 = vld [vmem:[#allocation26 + $0x58] sm:$0xff]  }
0x1138   : > { %3794 = vmatpush3.bf16.msra.mxu0 %v4120_v62  ;;  %3797 = vmatprep.mubr.msk.bf16.mxu0 %vm4758_vm0, %v4757_v0  ;;  %v4134_v62 = vld [vmem:[#allocation26 + $0x50] sm:$0xff]  }
0x1139   : > { %3795 = vmatprep.subr.bf16.mxu0 %v4757_v0 }
0x113c   : > { %3796 = vmatpush3.bf16.msra.mxu0 %v4121_v3 }
0x113d   : > { %3817 = vmatprep.subr.bf16.mxu0 %v4757_v0 }
0x1140   : > { %v4165_v57 = vpop.eup %4164 }
0x1141   : > { %v2654_v12 = vsub.f32 1.0, %v4165_v57 }
0x1143   : > { %3798 = vmatmul.mubr.msk.bf16.vlgmr.msra.gmra.mrb[32].mxu0 %vm1036_vm1, %v2284_v38  ;;  %v2655_v17 = vmul.f32 %v4180_v60, %v2654_v12  ;;  %v4136_v12 = vld [vmem:[#allocation26 + $0x40] sm:$0xff]  }
0x1144   : > { %3821 = vmatprep.mubr.msk.bf16.mxu0 %vm4758_vm0, %v4757_v0  ;;  %3818 = vmatpush3.bf16.msra.mxu0 %v4122_v4 }
0x1145   : > { %3819 = vmatprep.subr.bf16.mxu0 %v4757_v0 }
0x1148   : > { %3820 = vmatpush3.bf16.msra.mxu0 %v4123_v5 }
0x1149   : > { %3825 = vmatprep.subr.bf16.mxu0 %v4757_v0 }
0x1216   : > { %v2647_v14 = vpop.f32.mrb[32].mxu0 }
0x1217   : > { %4166 = vtanh.f32 %v2647_v14  ;;  %v3799_v45 = vpop.f32.mrb[33].mxu0 }
0x1218   : > { %v2650_v59 = vpop.f32.mrb[34].mxu0 }
0x1219   : > { %v3800_v11 = vpop.f32.mrb[35].mxu0 }
0x1221   : > { %v4167_v15 = vpop.eup %4166 }
0x1222   : > { %v2656_v16 = vmul.f32 %v4167_v15, %v4165_v57 }
0x1224   : > { %v5724_v1 = vadd.f32 %v2656_v16, %v2655_v17  ;;  %v4137_v16 = vld [vmem:[#allocation26 + $0x48] sm:$0xff]   ;;  %v3558_v17 = vld [vmem:[%s5978_s11] ss:$0 sm:$0xff]  ;;  %s4639_s11 = scalar_lea.vmem %s4638_s0, 256 }
0x1225   : > { %p4641_p3 = scmp.lt.s32.totalorder %s4639_s11, %s4633_s2 }
0x1226   : > { %v2660_v18 = vsel %vm1036_vm1, %v5724_v1, 0.0  ;;  %v2824_v19 = vpack.c.bf16 %v5724_v1, %v5724_v1 }
0x1227   : > { %2661 = vadd.xlane.f32.xlu0 %v2660_v18  ;;  %p4642_p13 = por %p4641_p3, %p4640_p6 }
0x1228   : > { %3822 = vmatmul.mubr.msk.bf16.vlgmr.msra.gmra.mrb[36].mxu0 %vm1036_vm1, %v2824_v19 }
0x1229   : > { %3829 = vmatprep.mubr.msk.bf16.mxu0 %vm4758_vm0, %v4757_v0  ;;  %3826 = vmatpush3.bf16.msra.mxu0 %v4130_v63  ;;  %p4643_p0 = pnand %p4642_p13, %p4636_p1 }
0x122a   : > { %3827 = vmatprep.subr.bf16.mxu0 %v4757_v0 }
0x122d   : > { %3828 = vmatpush3.bf16.msra.mxu0 %v4132_v46 }
0x122e   : > { %3849 = vmatprep.subr.bf16.mxu0 %v4757_v0 }
0x12b4   : > { %v2662_v20 = vpop.xlane.xlu0 %2661 }
0x12b5   : > { %v2663_v21 = vmul.f32 0.03125, %v2662_v20 }
0x12b7   : > { %v2664_v22 = vsub.f32 %v5724_v1, %v2663_v21 }
0x12b9   : > { %v2665_v23 = vmul.f32 %v2664_v22, %v2664_v22 }
0x12bb   : > { %v2666_v24 = vsel %vm1036_vm1, %v2665_v23, 0.0 }
0x12bc   : > { %2667 = vadd.xlane.f32.xlu1 %v2666_v24 }
0x1349   : > { %v2668_v48 = vpop.xlane.xlu1 %2667 }
0x134a   : > { %v2669_v26 = vmul.f32 0.03125, %v2668_v48 }
0x134c   : > { %v2670_v27 = vadd.f32 1e-05, %v2669_v26 }
0x134e   : > { %4168 = vrsqrt.f32 %v2670_v27 }
0x1358   : > { %v4169_v28 = vpop.eup %4168 }
0x1359   : > { %v2672_v30 = vmul.f32 %v4169_v28, %v2664_v22 }
0x135b   : > { %v2679_v54 = vmul.f32 %v3535_v29, %v2672_v30 }
0x135d   : > { %v2686_v32 = vadd.f32 %v3536_v31, %v2679_v54 }
0x135f   : > { %v2687_v33 = vpack.c.bf16 %v2686_v32, %v2686_v32 }
0x1361   : > { %3806 = vmatmul.mubr.msk.bf16.vlgmr.msra.gmra.mrb[40].mxu1 %vm1036_vm1, %v2687_v33 }
0x1362   : > { %3813 = vmatprep.mubr.msk.bf16.mxu1 %vm4758_vm0, %v4757_v0  ;;  %3810 = vmatpush3.bf16.msra.mxu1 %v4126_v49 }
0x1363   : > { %3811 = vmatprep.subr.bf16.mxu1 %v4757_v0 }
0x1366   : > { %3812 = vmatpush3.bf16.msra.mxu1 %v4127_v34 }
0x1367   : > { %3833 = vmatprep.subr.bf16.mxu1 %v4757_v0 }
0x1434   : > { %v2748_v8 = vpop.f32.mrb[40].mxu1 }
0x1435   : > { %v2749_v36 = vadd.f32 %v3537_v35, %v2748_v8  ;;  %v3807_v37 = vpop.f32.mrb[41].mxu1 }
0x1436   : > { %v2751_v38 = vpop.f32.mrb[42].mxu1 }
0x1437   : > { %v2754_v39 = vmax.f32 %v2749_v36, 0.0  ;;  %v3808_v40 = vpop.f32.mrb[43].mxu1 }
0x1439   : > { %v2755_v42 = vpack.c.bf16 %v2754_v39, %v2754_v39 }
0x143b   : > { %3814 = vmatmul.mubr.msk.bf16.vlgmr.msra.gmra.mrb[44].mxu1 %vm1036_vm1, %v2755_v42 }
0x143c   : > { %3834 = vmatpush3.bf16.msra.mxu1 %v4128_v41  ;;  %3837 = vmatprep.mubr.msk.bf16.mxu1 %vm4758_vm0, %v4757_v0 }
0x143d   : > { %3835 = vmatprep.subr.bf16.mxu1 %v4757_v0 }
0x1440   : > { %3836 = vmatpush3.bf16.msra.mxu1 %v4129_v43 }
0x1441   : > { %3841 = vmatprep.subr.bf16.mxu1 %v4757_v0 }
0x1443   : > { %3838 = vmatmul.mubr.msk.bf16.vlgmr.msra.gmra.mrb[48].mxu1 %vm1036_vm1, %v2824_v19 }
0x1444   : > { %3845 = vmatprep.mubr.msk.bf16.mxu1 %vm4758_vm0, %v4757_v0  ;;  %3842 = vmatpush3.bf16.msra.mxu1 %v4131_v44 }
0x1445   : > { %3843 = vmatprep.subr.bf16.mxu1 %v4757_v0 }
0x1448   : > { %3844 = vmatpush3.bf16.msra.mxu1 %v4133_v47 }
0x150e   : > { %v2816_v52 = vpop.f32.mrb[44].mxu1 }
0x150f   : > { %v2817_v53 = vadd.f32 %v3541_v51, %v2816_v52  ;;  %v3815_v55 = vpop.f32.mrb[45].mxu1 }
0x1510   : > { %v2819_v56 = vpop.f32.mrb[46].mxu1 }
0x1511   : > { %v2822_v58 = vmax.f32 %v2817_v53, 0.0  ;;  %v3816_v60 = vpop.f32.mrb[47].mxu1 }
0x1513   : > { %v2825_v61 = vpack.c.bf16 %v2822_v58, %v2822_v58 }
0x1515   : > { %3830 = vmatmul.mubr.msk.bf16.vlgmr.msra.gmra.mrb[36].mxu0 %vm1036_vm1, %v2825_v61  ;;  %3846 = vmatmul.mubr.msk.bf16.vlgmr.msra.gmra.mrb[48].mxu1 %vm1036_vm1, %v2825_v61 }
0x1516   : > { %3853 = vmatprep.mubr.msk.bf16.mxu0 %vm4758_vm0, %v4757_v0  ;;  %3850 = vmatpush3.bf16.msra.mxu0 %v4134_v62 }
0x1517   : > { %3851 = vmatprep.subr.bf16.mxu0 %v4757_v0 }
0x151a   : > { %3852 = vmatpush3.bf16.msra.mxu0 %v4135_v2 }
0x151b   : > { %3857 = vmatprep.subr.bf16.mxu0 %v4757_v0 }
0x15e8   : > { %v2939_v3 = vpop.f32.mrb[36].mxu0  ;;  %v3059_v4 = vpop.f32.mrb[48].mxu1 }
0x15e9   : > { %v3551_v5 = vmul.f32 -1.442695, %v2939_v3  ;;  %v3831_v6 = vpop.f32.mrb[37].mxu0  ;;  %v3847_v7 = vpop.f32.mrb[49].mxu1  ;;  %v3071_v18 = vsub.f32 %v3059_v4, %v3558_v17 }
0x15ea   : > { %v2942_v9 = vpop.f32.mrb[38].mxu0  ;;  %v3062_v10 = vpop.f32.mrb[50].mxu1 }
0x15eb   : > { %4170 = vpow2.f32 %v3551_v5  ;;  %v3832_v13 = vpop.f32.mrb[39].mxu0  ;;  %v3848_v14 = vpop.f32.mrb[51].mxu1  ;;  %v3559_v19 = vmul.f32 -1.442695, %v3071_v18 }
0x15f5   : > { %v4171_v45 = vpop.eup %4170 }
0x15f6   : > { %v2948_v59 = vadd.f32 1.0, %v4171_v45 }
0x15f8   : > { %4172 = vrcp.f32 %v2948_v59 }
0x15f9   : > { %4174 = vpow2.f32 %v3559_v19 }
0x1602   : > { %v4173_v11 = vpop.eup %4172 }
0x1603   : > { %v3083_v57 = vmul.f32 %v4173_v11, %v5724_v1  ;;  %v4175_v20 = vpop.eup %4174 }
0x1604   : > { %v3075_v21 = vadd.f32 1.0, %v4175_v20 }
0x1605   : > { %v3084_v15 = vpack.c.bf16 %v3083_v57, %v3083_v57 }
0x1606   : > { %4176 = vrcp.f32 %v3075_v21 }
0x1607   : > { %3854 = vmatmul.mubr.msk.bf16.vlgmr.msra.gmra.mrb[40].mxu0 %vm1036_vm1, %v3084_v15 }
0x1608   : > { %3858 = vmatpush3.bf16.msra.mxu0 %v4136_v12  ;;  %3861 = vmatprep.mubr.msk.bf16.mxu0 %vm4758_vm0, %v4757_v0 }
0x1609   : > { %3859 = vmatprep.subr.bf16.mxu0 %v4757_v0 }
0x160c   : > { %3860 = vmatpush3.bf16.msra.mxu0 %v4137_v16 }
0x1610   : > { %v4177_v50 = vpop.eup %4176 }
0x1611   : > { %v3198_v25 = vsub.f32 1.0, %v4177_v50 }
0x1613   : > { %3862 = vmatmul.mubr.msk.bf16.vlgmr.msra.gmra.mrb[40].mxu0 %vm1036_vm1, %v2825_v61  ;;  %v3199_v26 = vmul.f32 %v3198_v25, %v5724_v1 }
0x16e6   : > { %v3191_v22 = vpop.f32.mrb[40].mxu0 }
0x16e7   : > { %4178 = vtanh.f32 %v3191_v22  ;;  %v3863_v23 = vpop.f32.mrb[41].mxu0 }
0x16e8   : > { %v3194_v0 = vpop.f32.mrb[42].mxu0 }
0x16e9   : > { %v3864_v24 = vpop.f32.mrb[43].mxu0 }
0x16f1   : > { %v4179_v48 = vpop.eup %4178 }
0x16f2   : > { %v3200_v27 = vmul.f32 %v4179_v48, %v4177_v50 }
0x16f4   : > { %v3201_v28 = vadd.f32 %v3200_v27, %v3199_v26 }
0x16f6   : > { %3202 = vst.msk [vmem:[%s1029_s13] sm:$0xff] %vm1036_vm1, %v3201_v28 }
0x16f7   : > { %4646 = shalt.err (!%p4643_p0)
}
0x16f8   : > { %s4647_s8 = scalar_lea.hbm %s5799_s12, 128  ;;  %s4651_s13 = scalar_lea.hbm %s5980_s21, 256 }
0x16f9   : > { %p4648_p10 = scmp.ne.s32.totalorder %s5799_s12, %s4647_s8  ;;  %p4652_p8 = scmp.lt.u32.totalorder %s5799_s12, %s5980_s21 }
0x16fa   : > { %p4653_p2 = scmp.lt.u32.totalorder %s4651_s13, %s4647_s8  ;;  %p4655_p5 = scmp.lt.u32.totalorder %s4647_s8, %s5799_s12 }
0x16fb   : > { %p4649_p11 = pnand %p4648_p10, %p5981_p7 }
0x16fc   : > { %p4654_p9 = por %p4653_p2, %p4652_p8 }
0x16fd   : > { %p4650_p12 = pneg %p4649_p11 }
0x16fe   : > { %p4656_p4 = por %p4655_p5, %p4654_p9 }
0x1700   : > { %p4657_p1 = pnand %p4656_p4, %p4650_p12 }
0x1702   : > { %4660 = shalt.err (!%p4657_p1)
}
0x1703   : > { %3949 = dma.vmem_to_hbm [thread:$0]  (%p5981_p7), %s5801_s10, 128, %s5799_s12, %s3204_s29  }
0x1704 PF: > { %s3229_s2 = sand.u32 1, %s4723_s27   ;;  %p5982_p6 = scmp.ne.s32.totalorder %s5947_s6, 0 }
0x1705   : > { %p5983_p3 = scmp.ge.s32.totalorder %s4735_s28, 2  ;;  %s3230_s16 = scalar_lea.sflag [#allocation4], %s3229_s2 }
0x1707   : > { %p4002_p13 = pnand %p5983_p3, %p5982_p6 }
0x1709   : > { %4718 = dma.done.wait (!%p4002_p13), %s3230_s16, 128  }
0x170a   : > { %4720 = vsyncadd (!%p4002_p13), %s3230_s16, 4294967168  ;;  %p49_p0 = scmp.ge.s32.totalorder %s5235_s9, 4   ;;  %s5984_s27 = smov %s4727_s3 }
0x170b   : > { %s5985_s3 = smov %s4731_s7  ;;  %s5986_s7 = smov %s5246_s4 }
0x170c   : > { %s5987_s28 = smov %s5235_s9  ;;  %51 = sbr.rel (!%p49_p0) target bundleno = 40 (0x28), region = 248 }
0x1713   :  { %3235 = vsyncpa [#allocation3], 1 }
0x1714   :  { %3237 = vsyncpa [#allocation3 + $0x1], 1 }
0x1715   :  { %3238 = vsyncpa [#allocation6], 1 }
0x1716   :  { %3240 = vsyncpa [#allocation6 + $0x1], 1 }
0x1717   :  { %3241 = vsyncpa [#allocation9], 1 }
0x1718   :  { %3242 = vsyncpa [#allocation12], 1 }
0x1719   :  { %3243 = vsyncpa [#allocation15], 1 }
0x171a   :  { %3244 = vsyncpa [#allocation18], 1 }
0x171b   :  { %3245 = vsyncpa [#allocation21], 1 }
0x171c   :  { %3246 = vsyncpa [#allocation24], 1 }
0x171d   :  { %3247 = vsyncpa [#allocation27], 1 }
0x171e   :  { %3248 = vsyncpa [#allocation4], 1 }
0x171f   :  { %3250 = vsyncpa [#allocation4 + $0x1], 1 }

</bundles_post_ra>
